<compile_context>
chip_gen: v7x
topology: tpu7x:2x2x1
jax: 0.10.0
libtpu: 0.0.40
codegen_flags: <defaults>
</compile_context>

<pallas_src>
import functools
import numpy as np

import jax
import jax.numpy as jnp
from jax import lax
from jax.experimental import pallas as pl
from jax.experimental.pallas import tpu as pltpu

# Matmul operands go to the MXU as bf16 (f32 accumulation); softmax / LayerNorm /
# residual / sigmoid math stays in f32 (per perf review, safe on v5e/v6e/v7x).
_MXU_DTYPE = jnp.bfloat16
_EPS = 1e-5


# ----------------------------------------------------------------------------
# In-kernel helpers
# ----------------------------------------------------------------------------
def _mm(a, b):
    return jnp.dot(a.astype(_MXU_DTYPE), b.astype(_MXU_DTYPE),
                   preferred_element_type=jnp.float32)


def _bmm(eq, a, b):
    return jnp.einsum(eq, a.astype(_MXU_DTYPE), b.astype(_MXU_DTYPE),
                      preferred_element_type=jnp.float32)


def _layernorm(x, g, b, eps=_EPS):
    mean = jnp.mean(x, axis=-1, keepdims=True)
    var = jnp.mean(jnp.square(x - mean), axis=-1, keepdims=True)
    return (x - mean) * lax.rsqrt(var + eps) * g + b


def _stable_sigmoid(x):
    # sigmoid(x) = 0.5 * (tanh(x/2) + 1): stable, tanh goes to the EUP slot.
    return 0.5 * (jnp.tanh(0.5 * x) + 1.0)


def _mha(x_flat, v_flat, bt, s, n_heads, wq, bq, wv, bv, wo, bo):
    """Causal multi-head attention with query == key (kq_same at every call site).

    x_flat / v_flat: (bt*s, D) f32.  Projections run as full flattened matmuls;
    the (S,S) score einsums are batched over the batch tile so batches never mix.
    Head outputs accumulate through the row-sliced output projection (no lane-dim
    concatenate of narrow head chunks).
    """
    d = wq.shape[0]
    assert d % n_heads == 0
    dk = d // n_heads
    scale = 1.0 / float(dk) ** 0.5

    q = _mm(x_flat, wq) + bq                       # (bt*s, d) f32 accumulation
    v = _mm(v_flat, wv) + bv
    q3 = q.reshape(bt, s, d)
    v3 = v.reshape(bt, s, d)

    row = lax.broadcasted_iota(jnp.int32, (bt, s, s), 1)
    col = lax.broadcasted_iota(jnp.int32, (bt, s, s), 2)
    neg = jnp.where(col <= row, 0.0, -1e30).astype(jnp.float32)  # additive causal mask

    out = None
    for h in range(n_heads):                       # static head loop, batched over bt
        qh = q3[:, :, h * dk:(h + 1) * dk]
        vh = v3[:, :, h * dk:(h + 1) * dk]
        sc = _bmm('bqd,bkd->bqk', qh, qh) * scale + neg          # f32 scores
        m = jnp.max(sc, axis=-1, keepdims=True)
        p = jnp.exp(sc - m)
        p = p * pl.reciprocal(jnp.sum(p, axis=-1, keepdims=True), approx=True)
        oh = _bmm('bqk,bkd->bqd', p, vh).reshape(bt * s, dk)
        term = _mm(oh, wo[h * dk:(h + 1) * dk, :])               # fold into out-proj
        out = term if out is None else out + term
    return out + bo


# ----------------------------------------------------------------------------
# Fused context-encoder kernel: two TransformerLayers (apply_pos=False) + proj FFN
# ----------------------------------------------------------------------------
def _encoder_kernel(xe_ref, qae_ref, ye_ref,
                    xwq, xbq, xwv, xbv, xwo, xbo, xg, xc,
                    ywq, ybq, ywv, ybv, ywo, ybo, yg, yc,
                    pw1x, pw1y, pb1, pw2, pb2,
                    o_ref, *, n_heads):
    bt, s, d = xe_ref.shape
    xe = xe_ref[...].reshape(bt * s, d).astype(jnp.float32)
    qae = qae_ref[...].reshape(bt * s, d).astype(jnp.float32)
    ye = ye_ref[...].reshape(bt * s, d).astype(jnp.float32)

    ax = _mha(xe, xe, bt, s, n_heads,
              xwq[...], xbq[...], xwv[...], xbv[...], xwo[...], xbo[...])
    x_out = _layernorm(xe + ax, xg[...], xc[...])

    ay = _mha(qae, ye, bt, s, n_heads,
              ywq[...], ybq[...], ywv[...], ybv[...], ywo[...], ybo[...])
    y_out = _layernorm(qae + ay, yg[...], yc[...])

    # proj(torch.cat([x_out, y_out], -1)) with w1 split -> no concat / HBM trip.
    h = jnp.maximum(_mm(x_out, pw1x[...]) + _mm(y_out, pw1y[...]) + pb1[...], 0.0)
    out = _mm(h, pw2[...]) + pb2[...]
    o_ref[...] = out.reshape(bt, s, -1).astype(o_ref.dtype)


# ----------------------------------------------------------------------------
# Fused TCN-stack kernel: all M dilated-causal levels in one call
# ----------------------------------------------------------------------------
def _tcn_stack_kernel(x_ref, *args, K, M, has_down):
    if has_down:
        wd_ref, bd_ref = args[0], args[1]
        rest = args[2:]
    else:
        wd_ref = bd_ref = None
        rest = args
    o_ref = rest[-1]
    wrefs = rest[:-1]                               # 4 refs per level

    bt, s, _ = x_ref.shape
    c_out = o_ref.shape[-1]
    t_idx = lax.broadcasted_iota(jnp.int32, (bt, s, s), 1)
    u_idx = lax.broadcasted_iota(jnp.int32, (bt, s, s), 2)

    def causal_conv(inp3, w_ref, b_ref, dilation):
        c_in = inp3.shape[-1]
        inp_flat = inp3.reshape(bt * s, c_in)
        acc = None
        for j in range(K):                          # static tap loop
            shift = (K - 1 - j) * dilation
            if shift >= s:
                continue                            # tap reads only left padding -> 0
            if shift == 0:
                xs_flat = inp_flat
            else:
                # Batch-safe causal shift as an exact 0/1 operator matmul (f32).
                # (pltpu.roll would also work on the XLU, but this keeps batches
                #  independent on the flattened layout with no relayout copies.)
                shift_op = (t_idx - u_idx == shift).astype(jnp.float32)
                xs = jnp.einsum('btu,buc->btc', shift_op, inp3,
                                preferred_element_type=jnp.float32)
                xs_flat = xs.reshape(bt * s, c_in)
            term = _mm(xs_flat, w_ref[j * c_in:(j + 1) * c_in, :])
            acc = term if acc is None else acc + term
        return acc + b_ref[...]

    h3 = x_ref[...].astype(jnp.float32)
    for m in range(M):                              # levels stay resident in VMEM
        w1_ref, b1_ref, w2_ref, b2_ref = wrefs[4 * m:4 * m + 4]
        dilation = 2 ** m
        y1 = jnp.maximum(causal_conv(h3, w1_ref, b1_ref, dilation), 0.0)
        y2 = jnp.maximum(causal_conv(y1.reshape(bt, s, c_out), w2_ref, b2_ref,
                                     dilation), 0.0)
        if m == 0 and has_down:
            res = _mm(h3.reshape(bt * s, -1), wd_ref[...]) + bd_ref[...]
        else:
            res = h3.reshape(bt * s, -1)
        h3 = jnp.maximum(y2 + res, 0.0).reshape(bt, s, c_out)
        o_ref[m] = h3.astype(o_ref.dtype)           # level m output slot


# ----------------------------------------------------------------------------
# Fused branch kernel: P TransformerLayers (apply_pos=True) + mean + ffc + sigmoid
# ----------------------------------------------------------------------------
def _branch_kernel(x_ref,
                   wq_ref, bq_ref, wv_ref, bv_ref, wo_ref, bo_ref, g1_ref, c1_ref,
                   w1_ref, b1_ref, w2_ref, b2_ref, g2_ref, c2_ref,
                   fw1_ref, fb1_ref, fw2_ref, fb2_ref,
                   o_ref, acc_ref, *, n_heads, inv_p):
    p_idx = pl.program_id(1)
    _, bt, s, d = x_ref.shape
    x = x_ref[0].reshape(bt * s, d).astype(jnp.float32)

    # AKT-style TransformerLayer, apply_pos=True (query == key == values).
    attn = _mha(x, x, bt, s, n_heads,
                wq_ref[0], bq_ref[0], wv_ref[0], bv_ref[0], wo_ref[0], bo_ref[0])
    z = _layernorm(x + attn, g1_ref[0], c1_ref[0])
    hid = jnp.maximum(_mm(z, w1_ref[0]) + b1_ref[0], 0.0)
    z = _layernorm(z + _mm(hid, w2_ref[0]) + b2_ref[0], g2_ref[0], c2_ref[0])

    @pl.when(p_idx == 0)
    def _():
        acc_ref[...] = jnp.zeros_like(acc_ref)

    acc_ref[...] = acc_ref[...] + z                  # branch sum stays in VMEM

    @pl.when(p_idx == pl.num_programs(1) - 1)
    def _():
        mean = acc_ref[...] * inv_p                  # mean over the P branches
        h = jnp.maximum(_mm(mean, fw1_ref[...]) + fb1_ref[...], 0.0)
        y = _mm(h, fw2_ref[...]) + fb2_ref[...]
        o_ref[...] = _stable_sigmoid(y).reshape(bt, s, -1).astype(o_ref.dtype)


# ----------------------------------------------------------------------------
# pallas_call wrappers
# ----------------------------------------------------------------------------
def _pick_bt(batch, seq, row_cap=1024):
    """Largest divisor of `batch` whose flattened rows fit a comfortable block.
    For large batches this yields >=2 batch tiles on the 'parallel' axis."""
    best = 1
    for bt in range(1, batch + 1):
        if batch % bt == 0 and bt * seq <= row_cap:
            best = bt
    return best


def _const_spec(arr, grid_rank):
    n = arr.ndim
    if grid_rank == 1:
        return pl.BlockSpec(arr.shape, lambda i: (0,) * n)
    return pl.BlockSpec(arr.shape, lambda i, j: (0,) * n)
    # v7x note: pipeline_mode=pl.Buffered(1) would single-buffer these constant
    # weights; unnecessary at these tiny weight sizes.


def encoder_forward(p, x, y, q_num, n_heads):
    x_embed = jnp.take(p["q_embed"], x, axis=0)          # gathers stay in XLA
    y_embed = jnp.take(p["a_embed"], y, axis=0)
    qa_embed = jnp.take(p["qa_embed"], x + q_num * y, axis=0)

    B, S, D = x_embed.shape
    out_size = p["proj_w2"].shape[-1]
    bt = _pick_bt(B, S)
    nb = B // bt
    act = lambda c: pl.BlockSpec((bt, S, c), lambda i: (i, 0, 0))

    weights = [p["tx"][k] for k in ("wq", "bq", "wv", "bv", "wo", "bo", "ln1_g", "ln1_b")]
    weights += [p["ty"][k] for k in ("wq", "bq", "wv", "bv", "wo", "bo", "ln1_g", "ln1_b")]
    weights += [p["proj_w1x"], p["proj_w1y"], p["proj_b1"], p["proj_w2"], p["proj_b2"]]

    return pl.pallas_call(
        functools.partial(_encoder_kernel, n_heads=n_heads),
        out_shape=jax.ShapeDtypeStruct((B, S, out_size), x_embed.dtype),
        grid=(nb,),
        in_specs=[act(D), act(D), act(D)] + [_const_spec(w, 1) for w in weights],
        out_specs=act(out_size),
        compiler_params=pltpu.CompilerParams(dimension_semantics=("parallel",)),
    )(x_embed, qa_embed, y_embed, *weights)


def tcn_stack_forward(levels, x, kernel_size):
    """One fused kernel for a whole TCN stack; returns (M, B, S, C) level outputs."""
    B, S, c_in = x.shape
    c_out = levels[0]["b1"].shape[-1]
    M = len(levels)
    has_down = levels[0]["wd"] is not None
    bt = _pick_bt(B, S)
    nb = B // bt

    args = [x]
    in_specs = [pl.BlockSpec((bt, S, c_in), lambda i: (i, 0, 0))]
    if has_down:
        for a in (levels[0]["wd"], levels[0]["bd"]):
            args.append(a)
            in_specs.append(_const_spec(a, 1))
    for lv in levels:
        for name in ("w1", "b1", "w2", "b2"):
            args.append(lv[name])
            in_specs.append(_const_spec(lv[name], 1))

    return pl.pallas_call(
        functools.partial(_tcn_stack_kernel, K=kernel_size, M=M, has_down=has_down),
        out_shape=jax.ShapeDtypeStruct((M, B, S, c_out), x.dtype),
        grid=(nb,),
        in_specs=in_specs,
        out_specs=pl.BlockSpec((M, bt, S, c_out), lambda i: (0, i, 0, 0)),
        compiler_params=pltpu.CompilerParams(dimension_semantics=("parallel",)),
    )(*args)


def branches_classifier_forward(atn, ffc, tcn_stack, n_heads):
    """All P attention branches + mean + ffc head fused into one pallas_call."""
    P, B, S, D = tcn_stack.shape
    q_num = ffc["w2"].shape[-1]
    bt = _pick_bt(B, S)
    nb = B // bt

    def pstack(a):
        n = a.ndim
        return pl.BlockSpec((1,) + a.shape[1:], lambda b, p: (p,) + (0,) * (n - 1))

    branch_names = ("wq", "bq", "wv", "bv", "wo", "bo", "ln1_g", "ln1_b",
                    "ffn_w1", "ffn_b1", "ffn_w2", "ffn_b2", "ln2_g", "ln2_b")
    args = ([tcn_stack] + [atn[k] for k in branch_names]
            + [ffc["w1"], ffc["b1"], ffc["w2"], ffc["b2"]])
    in_specs = ([pl.BlockSpec((1, bt, S, D), lambda b, p: (p, b, 0, 0))]
                + [pstack(atn[k]) for k in branch_names]
                + [_const_spec(ffc[k], 2) for k in ("w1", "b1", "w2", "b2")])

    return pl.pallas_call(
        functools.partial(_branch_kernel, n_heads=n_heads, inv_p=1.0 / P),
        out_shape=jax.ShapeDtypeStruct((B, S, q_num), tcn_stack.dtype),
        grid=(nb, P),                                 # batch tiles parallel, P arbitrary
        in_specs=in_specs,
        out_specs=pl.BlockSpec((bt, S, q_num), lambda b, p: (b, 0, 0)),
        scratch_shapes=[pltpu.VMEM((bt * S, D), jnp.float32)],
        compiler_params=pltpu.CompilerParams(
            dimension_semantics=("parallel", "arbitrary")),
    )(*args)


# ----------------------------------------------------------------------------
# Parameter initialization (deterministic, PyTorch-Linear-like uniform)
# ----------------------------------------------------------------------------
def _dense_init(key, din, dout):
    kw, kb = jax.random.split(key)
    lim = 1.0 / float(np.sqrt(din))
    w = jax.random.uniform(kw, (din, dout), jnp.float32, -lim, lim)
    b = jax.random.uniform(kb, (1, dout), jnp.float32, -lim, lim)
    return w, b


def init_transformer(key, d_model, d_ff):
    ks = jax.random.split(key, 5)
    wq, bq = _dense_init(ks[0], d_model, d_model)      # kq_same -> shared q/k proj
    wv, bv = _dense_init(ks[1], d_model, d_model)
    wo, bo = _dense_init(ks[2], d_model, d_model)
    w1, b1 = _dense_init(ks[3], d_model, d_ff)
    w2, b2 = _dense_init(ks[4], d_ff, d_model)
    ones = jnp.ones((1, d_model), jnp.float32)
    zeros = jnp.zeros((1, d_model), jnp.float32)
    return dict(wq=wq, bq=bq, wv=wv, bv=bv, wo=wo, bo=bo,
                ln1_g=ones, ln1_b=zeros,
                ffn_w1=w1, ffn_b1=b1, ffn_w2=w2, ffn_b2=b2,
                ln2_g=ones, ln2_b=zeros)


def init_attens_stacked(key, num_branches, d_model, d_ff):
    layers = [init_transformer(jax.random.fold_in(key, i), d_model, d_ff)
              for i in range(num_branches)]
    return {k: jnp.stack([l[k] for l in layers], axis=0) for k in layers[0]}


def init_tcn(key, in_ch, num_channels, kernel_size):
    """Conv weights stored tap-major as (K*Cin, Cout); dilation=2**level is static."""
    levels = []
    for m, out_ch in enumerate(num_channels):
        cin = in_ch if m == 0 else num_channels[m - 1]
        ks = jax.random.split(jax.random.fold_in(key, m), 3)
        lim1 = 1.0 / float(np.sqrt(cin * kernel_size))
        w1 = jax.random.uniform(ks[0], (kernel_size * cin, out_ch), jnp.float32, -lim1, lim1)
        lim2 = 1.0 / float(np.sqrt(out_ch * kernel_size))
        w2 = jax.random.uniform(ks[1], (kernel_size * out_ch, out_ch), jnp.float32, -lim2, lim2)
        if cin != out_ch:
            wd, bd = _dense_init(ks[2], cin, out_ch)
        else:
            wd, bd = None, None
        levels.append(dict(w1=w1, b1=jnp.zeros((1, out_ch), jnp.float32),
                           w2=w2, b2=jnp.zeros((1, out_ch), jnp.float32),
                           wd=wd, bd=bd))
    return levels


def init_encoder(key, q_num, d_model, out_size, d_ff):
    ks = jax.random.split(key, 7)
    emb = lambda k, n, d: 0.02 * jax.random.normal(k, (n, d), jnp.float32)
    w1, b1 = _dense_init(ks[5], 2 * out_size, out_size)
    w2, b2 = _dense_init(ks[6], out_size, out_size)
    return dict(
        q_embed=emb(ks[0], q_num, d_model),
        a_embed=emb(ks[1], 2, d_model),
        qa_embed=emb(ks[2], 2 * q_num, d_model),
        tx=init_transformer(ks[3], d_model, d_ff),
        ty=init_transformer(ks[4], d_model, d_ff),
        proj_w1x=w1[:out_size], proj_w1y=w1[out_size:],  # split = no concat in fwd
        proj_b1=b1, proj_w2=w2, proj_b2=b2)


def init_lsktns(key, cfg):
    ks = jax.random.split(key, 5)
    M = len(cfg["num_channels"])
    P = cfg["N"] * M
    assert all(c == cfg["num_channels"][-1] for c in cfg["num_channels"]), \
        "attention branches require equal channel width at every TCN level"
    encoder = init_encoder(ks[0], cfg["q_num"], cfg["d_model"],
                           cfg["encoder_out"], cfg["d_ff"])
    attens = init_attens_stacked(ks[1], P, cfg["out_size"], cfg["d_ff"])
    tcns = [init_tcn(jax.random.fold_in(ks[2], i), cfg["encoder_out"],
                     cfg["num_channels"], cfg["kernel_size"] * 2 ** i)
            for i in range(cfg["N"])]
    ffc_w1, ffc_b1 = _dense_init(ks[3], cfg["out_size"], cfg["ffn_h_num"])
    ffc_w2, ffc_b2 = _dense_init(ks[4], cfg["ffn_h_num"], cfg["q_num"])
    return dict(encoder=encoder, attens=attens, tcns=tcns,
                ffc=dict(w1=ffc_w1, b1=ffc_b1, w2=ffc_w2, b2=ffc_b2))


# ----------------------------------------------------------------------------
# Model forward: 1 encoder kernel + N TCN-stack kernels + 1 fused branch kernel
# ----------------------------------------------------------------------------
def lsktns_forward(params, x, y, cfg):
    enc = encoder_forward(params["encoder"], x, y, cfg["q_num"], cfg["n_heads"])
    stacks = [tcn_stack_forward(tcn, enc, cfg["kernel_size"] * 2 ** i)
              for i, tcn in enumerate(params["tcns"])]
    tcn_stack = stacks[0] if len(stacks) == 1 else jnp.concatenate(stacks, axis=0)
    return branches_classifier_forward(params["attens"], params["ffc"],
                                       tcn_stack, cfg["n_heads"])


# ----------------------------------------------------------------------------
if __name__ == "__main__":
    cfg = dict(kernel_size=2, num_channels=[32, 32], q_num=16, d_model=32,
               encoder_out=32, ffn_h_num=32, N=1, d_ff=64, n_heads=4)
    cfg["out_size"] = cfg["num_channels"][-1]

    key = jax.random.PRNGKey(0)
    kp, kx, ky = jax.random.split(key, 3)
    params = init_lsktns(kp, cfg)

    B, S = 2, 8
    x = jax.random.randint(kx, (B, S), 0, cfg["q_num"], dtype=jnp.int32)
    y = jax.random.randint(ky, (B, S), 0, 2, dtype=jnp.int32)

    fwd = jax.jit(functools.partial(lsktns_forward, cfg=cfg))
    out = jax.block_until_ready(fwd(params, x, y))
    assert out.shape == (B, S, cfg["q_num"]), out.shape
    assert bool(jnp.all(jnp.isfinite(out)))
    assert bool(jnp.all((out >= 0.0) & (out <= 1.0)))
    print("KERNEL_OK")
</pallas_src>

<mosaic_0001>
module attributes {stable_mosaic.version = 11 : i64} {
  func.func @_tcn_stack_kernel(%arg0: i32, %arg1: memref<2x8x32xf32, #tpu.memory_space<vmem>>, %arg2: memref<64x32xf32, #tpu.memory_space<vmem>>, %arg3: memref<1x32xf32, #tpu.memory_space<vmem>>, %arg4: memref<64x32xf32, #tpu.memory_space<vmem>>, %arg5: memref<1x32xf32, #tpu.memory_space<vmem>>, %arg6: memref<64x32xf32, #tpu.memory_space<vmem>>, %arg7: memref<1x32xf32, #tpu.memory_space<vmem>>, %arg8: memref<64x32xf32, #tpu.memory_space<vmem>>, %arg9: memref<1x32xf32, #tpu.memory_space<vmem>>, %arg10: memref<2x2x8x32xf32, #tpu.memory_space<vmem>>) attributes {dimension_semantics = [#tpu.dimension_semantics<parallel>], iteration_bounds = array<i64: 1>, scalar_prefetch = 0 : i64, scratch_operands = 0 : i64, tpu.core_type = #tpu.core_type<tc>, window_params = [{transform_indices = @transform_0, window_bounds = array<i64: 2, 8, 32>}, {pipeline_mode = #tpu.pipeline_mode<synchronous>, transform_indices = @transform_1, window_bounds = array<i64: 64, 32>}, {pipeline_mode = #tpu.pipeline_mode<synchronous>, transform_indices = @transform_2, window_bounds = array<i64: 1, 32>}, {pipeline_mode = #tpu.pipeline_mode<synchronous>, transform_indices = @transform_3, window_bounds = array<i64: 64, 32>}, {pipeline_mode = #tpu.pipeline_mode<synchronous>, transform_indices = @transform_4, window_bounds = array<i64: 1, 32>}, {pipeline_mode = #tpu.pipeline_mode<synchronous>, transform_indices = @transform_5, window_bounds = array<i64: 64, 32>}, {pipeline_mode = #tpu.pipeline_mode<synchronous>, transform_indices = @transform_6, window_bounds = array<i64: 1, 32>}, {pipeline_mode = #tpu.pipeline_mode<synchronous>, transform_indices = @transform_7, window_bounds = array<i64: 64, 32>}, {pipeline_mode = #tpu.pipeline_mode<synchronous>, transform_indices = @transform_8, window_bounds = array<i64: 1, 32>}, {transform_indices = @transform_9, window_bounds = array<i64: 2, 2, 8, 32>}]} {
    %0 = tpu.iota {dimensions = array<i32: 1>} : vector<2x8x8xi32>
    %1 = tpu.iota {dimensions = array<i32: 2>} : vector<2x8x8xi32>
    %c0 = arith.constant 0 : index
    %c0_0 = arith.constant 0 : index
    %c0_1 = arith.constant 0 : index
    %2 = vector.load %arg1[%c0, %c0_0, %c0_1] : memref<2x8x32xf32, #tpu.memory_space<vmem>>, vector<2x8x32xf32>
    %3 = vector.shape_cast %2 : vector<2x8x32xf32> to vector<16x32xf32>
    %4 = arith.subi %0, %1 : vector<2x8x8xi32>
    %c1_i32 = arith.constant 1 : i32
    %5 = vector.broadcast %c1_i32 : i32 to vector<2x8x8xi32>
    %6 = arith.cmpi eq, %4, %5 : vector<2x8x8xi32>
    %7 = arith.extui %6 : vector<2x8x8xi1> to vector<2x8x8xi32>
    %8 = arith.sitofp %7 : vector<2x8x8xi32> to vector<2x8x8xf32>
    "tpu.trace_start"() <{level = 10 : i32, message = "btu,buc->btc"}> : () -> ()
    %cst = arith.constant dense<0.000000e+00> : vector<2x8x32xf32>
    %9 = tpu.matmul %8, %2, %cst {dimension_numbers = #tpu.dot_dimension_numbers<[2], [1], [1], [2], [0, 0, 0, 1, 1, 2], [0], [0]>} : vector<2x8x8xf32>, vector<2x8x32xf32>, vector<2x8x32xf32> -> vector<2x8x32xf32>
    "tpu.trace_stop"() : () -> ()
    %10 = vector.shape_cast %9 : vector<2x8x32xf32> to vector<16x32xf32>
    %c0_2 = arith.constant 0 : index
    %c0_3 = arith.constant 0 : index
    %11 = vector.load %arg2[%c0_2, %c0_3] : memref<64x32xf32, #tpu.memory_space<vmem>>, vector<32x32xf32>
    %12 = arith.truncf %10 : vector<16x32xf32> to vector<16x32xbf16>
    %13 = arith.truncf %11 : vector<32x32xf32> to vector<32x32xbf16>
    %cst_4 = arith.constant dense<0.000000e+00> : vector<16x32xf32>
    %14 = tpu.matmul %12, %13, %cst_4 {dimension_numbers = #tpu.dot_dimension_numbers<[1], [0], [0], [1], [0, 0, 1, 1], [], []>} : vector<16x32xbf16>, vector<32x32xbf16>, vector<16x32xf32> -> vector<16x32xf32>
    %c32 = arith.constant 32 : index
    %c0_5 = arith.constant 0 : index
    %15 = vector.load %arg2[%c32, %c0_5] : memref<64x32xf32, #tpu.memory_space<vmem>>, vector<32x32xf32>
    %16 = arith.truncf %3 : vector<16x32xf32> to vector<16x32xbf16>
    %17 = arith.truncf %15 : vector<32x32xf32> to vector<32x32xbf16>
    %cst_6 = arith.constant dense<0.000000e+00> : vector<16x32xf32>
    %18 = tpu.matmul %16, %17, %cst_6 {dimension_numbers = #tpu.dot_dimension_numbers<[1], [0], [0], [1], [0, 0, 1, 1], [], []>} : vector<16x32xbf16>, vector<32x32xbf16>, vector<16x32xf32> -> vector<16x32xf32>
    %19 = arith.addf %14, %18 : vector<16x32xf32>
    %c0_7 = arith.constant 0 : index
    %c0_8 = arith.constant 0 : index
    %20 = vector.load %arg3[%c0_7, %c0_8] : memref<1x32xf32, #tpu.memory_space<vmem>>, vector<1x32xf32>
    %21 = vector.broadcast %20 : vector<1x32xf32> to vector<16x32xf32>
    %22 = arith.addf %19, %21 : vector<16x32xf32>
    %cst_9 = arith.constant 0.000000e+00 : f32
    %23 = vector.broadcast %cst_9 : f32 to vector<16x32xf32>
    %24 = arith.maximumf %22, %23 : vector<16x32xf32>
    %25 = vector.shape_cast %24 : vector<16x32xf32> to vector<2x8x32xf32>
    %26 = vector.shape_cast %25 : vector<2x8x32xf32> to vector<16x32xf32>
    %27 = arith.subi %0, %1 : vector<2x8x8xi32>
    %c1_i32_10 = arith.constant 1 : i32
    %28 = vector.broadcast %c1_i32_10 : i32 to vector<2x8x8xi32>
    %29 = arith.cmpi eq, %27, %28 : vector<2x8x8xi32>
    %30 = arith.extui %29 : vector<2x8x8xi1> to vector<2x8x8xi32>
    %31 = arith.sitofp %30 : vector<2x8x8xi32> to vector<2x8x8xf32>
    "tpu.trace_start"() <{level = 10 : i32, message = "btu,buc->btc"}> : () -> ()
    %cst_11 = arith.constant dense<0.000000e+00> : vector<2x8x32xf32>
    %32 = tpu.matmul %31, %25, %cst_11 {dimension_numbers = #tpu.dot_dimension_numbers<[2], [1], [1], [2], [0, 0, 0, 1, 1, 2], [0], [0]>} : vector<2x8x8xf32>, vector<2x8x32xf32>, vector<2x8x32xf32> -> vector<2x8x32xf32>
    "tpu.trace_stop"() : () -> ()
    %33 = vector.shape_cast %32 : vector<2x8x32xf32> to vector<16x32xf32>
    %c0_12 = arith.constant 0 : index
    %c0_13 = arith.constant 0 : index
    %34 = vector.load %arg4[%c0_12, %c0_13] : memref<64x32xf32, #tpu.memory_space<vmem>>, vector<32x32xf32>
    %35 = arith.truncf %33 : vector<16x32xf32> to vector<16x32xbf16>
    %36 = arith.truncf %34 : vector<32x32xf32> to vector<32x32xbf16>
    %cst_14 = arith.constant dense<0.000000e+00> : vector<16x32xf32>
    %37 = tpu.matmul %35, %36, %cst_14 {dimension_numbers = #tpu.dot_dimension_numbers<[1], [0], [0], [1], [0, 0, 1, 1], [], []>} : vector<16x32xbf16>, vector<32x32xbf16>, vector<16x32xf32> -> vector<16x32xf32>
    %c32_15 = arith.constant 32 : index
    %c0_16 = arith.constant 0 : index
    %38 = vector.load %arg4[%c32_15, %c0_16] : memref<64x32xf32, #tpu.memory_space<vmem>>, vector<32x32xf32>
    %39 = arith.truncf %26 : vector<16x32xf32> to vector<16x32xbf16>
    %40 = arith.truncf %38 : vector<32x32xf32> to vector<32x32xbf16>
    %cst_17 = arith.constant dense<0.000000e+00> : vector<16x32xf32>
    %41 = tpu.matmul %39, %40, %cst_17 {dimension_numbers = #tpu.dot_dimension_numbers<[1], [0], [0], [1], [0, 0, 1, 1], [], []>} : vector<16x32xbf16>, vector<32x32xbf16>, vector<16x32xf32> -> vector<16x32xf32>
    %42 = arith.addf %37, %41 : vector<16x32xf32>
    %c0_18 = arith.constant 0 : index
    %c0_19 = arith.constant 0 : index
    %43 = vector.load %arg5[%c0_18, %c0_19] : memref<1x32xf32, #tpu.memory_space<vmem>>, vector<1x32xf32>
    %44 = vector.broadcast %43 : vector<1x32xf32> to vector<16x32xf32>
    %45 = arith.addf %42, %44 : vector<16x32xf32>
    %cst_20 = arith.constant 0.000000e+00 : f32
    %46 = vector.broadcast %cst_20 : f32 to vector<16x32xf32>
    %47 = arith.maximumf %45, %46 : vector<16x32xf32>
    %48 = vector.shape_cast %2 : vector<2x8x32xf32> to vector<16x32xf32>
    %49 = arith.addf %47, %48 : vector<16x32xf32>
    %cst_21 = arith.constant 0.000000e+00 : f32
    %50 = vector.broadcast %cst_21 : f32 to vector<16x32xf32>
    %51 = arith.maximumf %49, %50 : vector<16x32xf32>
    %52 = vector.shape_cast %51 : vector<16x32xf32> to vector<2x8x32xf32>
    %c0_22 = arith.constant 0 : index
    %c0_23 = arith.constant 0 : index
    %c0_24 = arith.constant 0 : index
    %c0_25 = arith.constant 0 : index
    %53 = vector.load %arg10[%c0_22, %c0_23, %c0_24, %c0_25] : memref<2x2x8x32xf32, #tpu.memory_space<vmem>>, vector<1x2x8x32xf32>
    %54 = vector.shape_cast %53 : vector<1x2x8x32xf32> to vector<2x8x32xf32>
    %55 = vector.shape_cast %52 : vector<2x8x32xf32> to vector<1x2x8x32xf32>
    tpu.vector_store %arg10[%c0_22, %c0_23, %c0_24, %c0_25], %55 {strides = array<i32>} : memref<2x2x8x32xf32, #tpu.memory_space<vmem>>, vector<1x2x8x32xf32>,
    %56 = vector.shape_cast %52 : vector<2x8x32xf32> to vector<16x32xf32>
    %57 = arith.subi %0, %1 : vector<2x8x8xi32>
    %c2_i32 = arith.constant 2 : i32
    %58 = vector.broadcast %c2_i32 : i32 to vector<2x8x8xi32>
    %59 = arith.cmpi eq, %57, %58 : vector<2x8x8xi32>
    %60 = arith.extui %59 : vector<2x8x8xi1> to vector<2x8x8xi32>
    %61 = arith.sitofp %60 : vector<2x8x8xi32> to vector<2x8x8xf32>
    "tpu.trace_start"() <{level = 10 : i32, message = "btu,buc->btc"}> : () -> ()
    %cst_26 = arith.constant dense<0.000000e+00> : vector<2x8x32xf32>
    %62 = tpu.matmul %61, %52, %cst_26 {dimension_numbers = #tpu.dot_dimension_numbers<[2], [1], [1], [2], [0, 0, 0, 1, 1, 2], [0], [0]>} : vector<2x8x8xf32>, vector<2x8x32xf32>, vector<2x8x32xf32> -> vector<2x8x32xf32>
    "tpu.trace_stop"() : () -> ()
    %63 = vector.shape_cast %62 : vector<2x8x32xf32> to vector<16x32xf32>
    %c0_27 = arith.constant 0 : index
    %c0_28 = arith.constant 0 : index
    %64 = vector.load %arg6[%c0_27, %c0_28] : memref<64x32xf32, #tpu.memory_space<vmem>>, vector<32x32xf32>
    %65 = arith.truncf %63 : vector<16x32xf32> to vector<16x32xbf16>
    %66 = arith.truncf %64 : vector<32x32xf32> to vector<32x32xbf16>
    %cst_29 = arith.constant dense<0.000000e+00> : vector<16x32xf32>
    %67 = tpu.matmul %65, %66, %cst_29 {dimension_numbers = #tpu.dot_dimension_numbers<[1], [0], [0], [1], [0, 0, 1, 1], [], []>} : vector<16x32xbf16>, vector<32x32xbf16>, vector<16x32xf32> -> vector<16x32xf32>
    %c32_30 = arith.constant 32 : index
    %c0_31 = arith.constant 0 : index
    %68 = vector.load %arg6[%c32_30, %c0_31] : memref<64x32xf32, #tpu.memory_space<vmem>>, vector<32x32xf32>
    %69 = arith.truncf %56 : vector<16x32xf32> to vector<16x32xbf16>
    %70 = arith.truncf %68 : vector<32x32xf32> to vector<32x32xbf16>
    %cst_32 = arith.constant dense<0.000000e+00> : vector<16x32xf32>
    %71 = tpu.matmul %69, %70, %cst_32 {dimension_numbers = #tpu.dot_dimension_numbers<[1], [0], [0], [1], [0, 0, 1, 1], [], []>} : vector<16x32xbf16>, vector<32x32xbf16>, vector<16x32xf32> -> vector<16x32xf32>
    %72 = arith.addf %67, %71 : vector<16x32xf32>
    %c0_33 = arith.constant 0 : index
    %c0_34 = arith.constant 0 : index
    %73 = vector.load %arg7[%c0_33, %c0_34] : memref<1x32xf32, #tpu.memory_space<vmem>>, vector<1x32xf32>
    %74 = vector.broadcast %73 : vector<1x32xf32> to vector<16x32xf32>
    %75 = arith.addf %72, %74 : vector<16x32xf32>
    %cst_35 = arith.constant 0.000000e+00 : f32
    %76 = vector.broadcast %cst_35 : f32 to vector<16x32xf32>
    %77 = arith.maximumf %75, %76 : vector<16x32xf32>
    %78 = vector.shape_cast %77 : vector<16x32xf32> to vector<2x8x32xf32>
    %79 = vector.shape_cast %78 : vector<2x8x32xf32> to vector<16x32xf32>
    %80 = arith.subi %0, %1 : vector<2x8x8xi32>
    %c2_i32_36 = arith.constant 2 : i32
    %81 = vector.broadcast %c2_i32_36 : i32 to vector<2x8x8xi32>
    %82 = arith.cmpi eq, %80, %81 : vector<2x8x8xi32>
    %83 = arith.extui %82 : vector<2x8x8xi1> to vector<2x8x8xi32>
    %84 = arith.sitofp %83 : vector<2x8x8xi32> to vector<2x8x8xf32>
    "tpu.trace_start"() <{level = 10 : i32, message = "btu,buc->btc"}> : () -> ()
    %cst_37 = arith.constant dense<0.000000e+00> : vector<2x8x32xf32>
    %85 = tpu.matmul %84, %78, %cst_37 {dimension_numbers = #tpu.dot_dimension_numbers<[2], [1], [1], [2], [0, 0, 0, 1, 1, 2], [0], [0]>} : vector<2x8x8xf32>, vector<2x8x32xf32>, vector<2x8x32xf32> -> vector<2x8x32xf32>
    "tpu.trace_stop"() : () -> ()
    %86 = vector.shape_cast %85 : vector<2x8x32xf32> to vector<16x32xf32>
    %c0_38 = arith.constant 0 : index
    %c0_39 = arith.constant 0 : index
    %87 = vector.load %arg8[%c0_38, %c0_39] : memref<64x32xf32, #tpu.memory_space<vmem>>, vector<32x32xf32>
    %88 = arith.truncf %86 : vector<16x32xf32> to vector<16x32xbf16>
    %89 = arith.truncf %87 : vector<32x32xf32> to vector<32x32xbf16>
    %cst_40 = arith.constant dense<0.000000e+00> : vector<16x32xf32>
    %90 = tpu.matmul %88, %89, %cst_40 {dimension_numbers = #tpu.dot_dimension_numbers<[1], [0], [0], [1], [0, 0, 1, 1], [], []>} : vector<16x32xbf16>, vector<32x32xbf16>, vector<16x32xf32> -> vector<16x32xf32>
    %c32_41 = arith.constant 32 : index
    %c0_42 = arith.constant 0 : index
    %91 = vector.load %arg8[%c32_41, %c0_42] : memref<64x32xf32, #tpu.memory_space<vmem>>, vector<32x32xf32>
    %92 = arith.truncf %79 : vector<16x32xf32> to vector<16x32xbf16>
    %93 = arith.truncf %91 : vector<32x32xf32> to vector<32x32xbf16>
    %cst_43 = arith.constant dense<0.000000e+00> : vector<16x32xf32>
    %94 = tpu.matmul %92, %93, %cst_43 {dimension_numbers = #tpu.dot_dimension_numbers<[1], [0], [0], [1], [0, 0, 1, 1], [], []>} : vector<16x32xbf16>, vector<32x32xbf16>, vector<16x32xf32> -> vector<16x32xf32>
    %95 = arith.addf %90, %94 : vector<16x32xf32>
    %c0_44 = arith.constant 0 : index
    %c0_45 = arith.constant 0 : index
    %96 = vector.load %arg9[%c0_44, %c0_45] : memref<1x32xf32, #tpu.memory_space<vmem>>, vector<1x32xf32>
    %97 = vector.broadcast %96 : vector<1x32xf32> to vector<16x32xf32>
    %98 = arith.addf %95, %97 : vector<16x32xf32>
    %cst_46 = arith.constant 0.000000e+00 : f32
    %99 = vector.broadcast %cst_46 : f32 to vector<16x32xf32>
    %100 = arith.maximumf %98, %99 : vector<16x32xf32>
    %101 = vector.shape_cast %52 : vector<2x8x32xf32> to vector<16x32xf32>
    %102 = arith.addf %100, %101 : vector<16x32xf32>
    %cst_47 = arith.constant 0.000000e+00 : f32
    %103 = vector.broadcast %cst_47 : f32 to vector<16x32xf32>
    %104 = arith.maximumf %102, %103 : vector<16x32xf32>
    %105 = vector.shape_cast %104 : vector<16x32xf32> to vector<2x8x32xf32>
    %c1 = arith.constant 1 : index
    %c0_48 = arith.constant 0 : index
    %c0_49 = arith.constant 0 : index
    %c0_50 = arith.constant 0 : index
    %106 = vector.load %arg10[%c1, %c0_48, %c0_49, %c0_50] : memref<2x2x8x32xf32, #tpu.memory_space<vmem>>, vector<1x2x8x32xf32>
    %107 = vector.shape_cast %106 : vector<1x2x8x32xf32> to vector<2x8x32xf32>
    %108 = vector.shape_cast %105 : vector<2x8x32xf32> to vector<1x2x8x32xf32>
    tpu.vector_store %arg10[%c1, %c0_48, %c0_49, %c0_50], %108 {strides = array<i32>} : memref<2x2x8x32xf32, #tpu.memory_space<vmem>>, vector<1x2x8x32xf32>,
    return
  }
  func.func @transform_0(%arg0: i32) -> (i32, i32, i32) {
    %c0_i32 = arith.constant 0 : i32
    %c0_i32_0 = arith.constant 0 : i32
    %c0_i32_1 = arith.constant 0 : i32
    return %arg0, %c0_i32, %c0_i32_0 : i32, i32, i32
  }
  func.func @transform_1(%arg0: i32) -> (i32, i32) {
    %c0_i32 = arith.constant 0 : i32
    %c0_i32_0 = arith.constant 0 : i32
    %c0_i32_1 = arith.constant 0 : i32
    return %c0_i32, %c0_i32_0 : i32, i32
  }
  func.func @transform_2(%arg0: i32) -> (i32, i32) {
    %c0_i32 = arith.constant 0 : i32
    %c0_i32_0 = arith.constant 0 : i32
    %c0_i32_1 = arith.constant 0 : i32
    return %c0_i32, %c0_i32_0 : i32, i32
  }
  func.func @transform_3(%arg0: i32) -> (i32, i32) {
    %c0_i32 = arith.constant 0 : i32
    %c0_i32_0 = arith.constant 0 : i32
    %c0_i32_1 = arith.constant 0 : i32
    return %c0_i32, %c0_i32_0 : i32, i32
  }
  func.func @transform_4(%arg0: i32) -> (i32, i32) {
    %c0_i32 = arith.constant 0 : i32
    %c0_i32_0 = arith.constant 0 : i32
    %c0_i32_1 = arith.constant 0 : i32
    return %c0_i32, %c0_i32_0 : i32, i32
  }
  func.func @transform_5(%arg0: i32) -> (i32, i32) {
    %c0_i32 = arith.constant 0 : i32
    %c0_i32_0 = arith.constant 0 : i32
    %c0_i32_1 = arith.constant 0 : i32
    return %c0_i32, %c0_i32_0 : i32, i32
  }
  func.func @transform_6(%arg0: i32) -> (i32, i32) {
    %c0_i32 = arith.constant 0 : i32
    %c0_i32_0 = arith.constant 0 : i32
    %c0_i32_1 = arith.constant 0 : i32
    return %c0_i32, %c0_i32_0 : i32, i32
  }
  func.func @transform_7(%arg0: i32) -> (i32, i32) {
    %c0_i32 = arith.constant 0 : i32
    %c0_i32_0 = arith.constant 0 : i32
    %c0_i32_1 = arith.constant 0 : i32
    return %c0_i32, %c0_i32_0 : i32, i32
  }
  func.func @transform_8(%arg0: i32) -> (i32, i32) {
    %c0_i32 = arith.constant 0 : i32
    %c0_i32_0 = arith.constant 0 : i32
    %c0_i32_1 = arith.constant 0 : i32
    return %c0_i32, %c0_i32_0 : i32, i32
  }
  func.func @transform_9(%arg0: i32) -> (i32, i32, i32, i32) {
    %c0_i32 = arith.constant 0 : i32
    %c0_i32_0 = arith.constant 0 : i32
    %c0_i32_1 = arith.constant 0 : i32
    %c0_i32_2 = arith.constant 0 : i32
    return %c0_i32, %arg0, %c0_i32_0, %c0_i32_1 : i32, i32, i32, i32
  }
}

module attributes {stable_mosaic.version = 11 : i64} {
  func.func @_encoder_kernel(%arg0: i32, %arg1: memref<2x8x32xf32, #tpu.memory_space<vmem>>, %arg2: memref<2x8x32xf32, #tpu.memory_space<vmem>>, %arg3: memref<2x8x32xf32, #tpu.memory_space<vmem>>, %arg4: memref<32x32xf32, #tpu.memory_space<vmem>>, %arg5: memref<1x32xf32, #tpu.memory_space<vmem>>, %arg6: memref<32x32xf32, #tpu.memory_space<vmem>>, %arg7: memref<1x32xf32, #tpu.memory_space<vmem>>, %arg8: memref<32x32xf32, #tpu.memory_space<vmem>>, %arg9: memref<1x32xf32, #tpu.memory_space<vmem>>, %arg10: memref<1x32xf32, #tpu.memory_space<vmem>>, %arg11: memref<1x32xf32, #tpu.memory_space<vmem>>, %arg12: memref<32x32xf32, #tpu.memory_space<vmem>>, %arg13: memref<1x32xf32, #tpu.memory_space<vmem>>, %arg14: memref<32x32xf32, #tpu.memory_space<vmem>>, %arg15: memref<1x32xf32, #tpu.memory_space<vmem>>, %arg16: memref<32x32xf32, #tpu.memory_space<vmem>>, %arg17: memref<1x32xf32, #tpu.memory_space<vmem>>, %arg18: memref<1x32xf32, #tpu.memory_space<vmem>>, %arg19: memref<1x32xf32, #tpu.memory_space<vmem>>, %arg20: memref<32x32xf32, #tpu.memory_space<vmem>>, %arg21: memref<32x32xf32, #tpu.memory_space<vmem>>, %arg22: memref<1x32xf32, #tpu.memory_space<vmem>>, %arg23: memref<32x32xf32, #tpu.memory_space<vmem>>, %arg24: memref<1x32xf32, #tpu.memory_space<vmem>>, %arg25: memref<2x8x32xf32, #tpu.memory_space<vmem>>) attributes {dimension_semantics = [#tpu.dimension_semantics<parallel>], iteration_bounds = array<i64: 1>, scalar_prefetch = 0 : i64, scratch_operands = 0 : i64, tpu.core_type = #tpu.core_type<tc>, window_params = [{transform_indices = @transform_0, window_bounds = array<i64: 2, 8, 32>}, {transform_indices = @transform_1, window_bounds = array<i64: 2, 8, 32>}, {transform_indices = @transform_2, window_bounds = array<i64: 2, 8, 32>}, {pipeline_mode = #tpu.pipeline_mode<synchronous>, transform_indices = @transform_3, window_bounds = array<i64: 32, 32>}, {pipeline_mode = #tpu.pipeline_mode<synchronous>, transform_indices = @transform_4, window_bounds = array<i64: 1, 32>}, {pipeline_mode = #tpu.pipeline_mode<synchronous>, transform_indices = @transform_5, window_bounds = array<i64: 32, 32>}, {pipeline_mode = #tpu.pipeline_mode<synchronous>, transform_indices = @transform_6, window_bounds = array<i64: 1, 32>}, {pipeline_mode = #tpu.pipeline_mode<synchronous>, transform_indices = @transform_7, window_bounds = array<i64: 32, 32>}, {pipeline_mode = #tpu.pipeline_mode<synchronous>, transform_indices = @transform_8, window_bounds = array<i64: 1, 32>}, {pipeline_mode = #tpu.pipeline_mode<synchronous>, transform_indices = @transform_9, window_bounds = array<i64: 1, 32>}, {pipeline_mode = #tpu.pipeline_mode<synchronous>, transform_indices = @transform_10, window_bounds = array<i64: 1, 32>}, {pipeline_mode = #tpu.pipeline_mode<synchronous>, transform_indices = @transform_11, window_bounds = array<i64: 32, 32>}, {pipeline_mode = #tpu.pipeline_mode<synchronous>, transform_indices = @transform_12, window_bounds = array<i64: 1, 32>}, {pipeline_mode = #tpu.pipeline_mode<synchronous>, transform_indices = @transform_13, window_bounds = array<i64: 32, 32>}, {pipeline_mode = #tpu.pipeline_mode<synchronous>, transform_indices = @transform_14, window_bounds = array<i64: 1, 32>}, {pipeline_mode = #tpu.pipeline_mode<synchronous>, transform_indices = @transform_15, window_bounds = array<i64: 32, 32>}, {pipeline_mode = #tpu.pipeline_mode<synchronous>, transform_indices = @transform_16, window_bounds = array<i64: 1, 32>}, {pipeline_mode = #tpu.pipeline_mode<synchronous>, transform_indices = @transform_17, window_bounds = array<i64: 1, 32>}, {pipeline_mode = #tpu.pipeline_mode<synchronous>, transform_indices = @transform_18, window_bounds = array<i64: 1, 32>}, {pipeline_mode = #tpu.pipeline_mode<synchronous>, transform_indices = @transform_19, window_bounds = array<i64: 32, 32>}, {pipeline_mode = #tpu.pipeline_mode<synchronous>, transform_indices = @transform_20, window_bounds = array<i64: 32, 32>}, {pipeline_mode = #tpu.pipeline_mode<synchronous>, transform_indices = @transform_21, window_bounds = array<i64: 1, 32>}, {pipeline_mode = #tpu.pipeline_mode<synchronous>, transform_indices = @transform_22, window_bounds = array<i64: 32, 32>}, {pipeline_mode = #tpu.pipeline_mode<synchronous>, transform_indices = @transform_23, window_bounds = array<i64: 1, 32>}, {transform_indices = @transform_24, window_bounds = array<i64: 2, 8, 32>}]} {
    %c0 = arith.constant 0 : index
    %c0_0 = arith.constant 0 : index
    %c0_1 = arith.constant 0 : index
    %0 = vector.load %arg1[%c0, %c0_0, %c0_1] : memref<2x8x32xf32, #tpu.memory_space<vmem>>, vector<2x8x32xf32>
    %1 = vector.shape_cast %0 : vector<2x8x32xf32> to vector<16x32xf32>
    %c0_2 = arith.constant 0 : index
    %c0_3 = arith.constant 0 : index
    %c0_4 = arith.constant 0 : index
    %2 = vector.load %arg2[%c0_2, %c0_3, %c0_4] : memref<2x8x32xf32, #tpu.memory_space<vmem>>, vector<2x8x32xf32>
    %3 = vector.shape_cast %2 : vector<2x8x32xf32> to vector<16x32xf32>
    %c0_5 = arith.constant 0 : index
    %c0_6 = arith.constant 0 : index
    %c0_7 = arith.constant 0 : index
    %4 = vector.load %arg3[%c0_5, %c0_6, %c0_7] : memref<2x8x32xf32, #tpu.memory_space<vmem>>, vector<2x8x32xf32>
    %5 = vector.shape_cast %4 : vector<2x8x32xf32> to vector<16x32xf32>
    %c0_8 = arith.constant 0 : index
    %c0_9 = arith.constant 0 : index
    %6 = vector.load %arg4[%c0_8, %c0_9] : memref<32x32xf32, #tpu.memory_space<vmem>>, vector<32x32xf32>
    %c0_10 = arith.constant 0 : index
    %c0_11 = arith.constant 0 : index
    %7 = vector.load %arg5[%c0_10, %c0_11] : memref<1x32xf32, #tpu.memory_space<vmem>>, vector<1x32xf32>
    %c0_12 = arith.constant 0 : index
    %c0_13 = arith.constant 0 : index
    %8 = vector.load %arg6[%c0_12, %c0_13] : memref<32x32xf32, #tpu.memory_space<vmem>>, vector<32x32xf32>
    %c0_14 = arith.constant 0 : index
    %c0_15 = arith.constant 0 : index
    %9 = vector.load %arg7[%c0_14, %c0_15] : memref<1x32xf32, #tpu.memory_space<vmem>>, vector<1x32xf32>
    %c0_16 = arith.constant 0 : index
    %c0_17 = arith.constant 0 : index
    %10 = vector.load %arg8[%c0_16, %c0_17] : memref<32x32xf32, #tpu.memory_space<vmem>>, vector<32x32xf32>
    %c0_18 = arith.constant 0 : index
    %c0_19 = arith.constant 0 : index
    %11 = vector.load %arg9[%c0_18, %c0_19] : memref<1x32xf32, #tpu.memory_space<vmem>>, vector<1x32xf32>
    %12 = arith.truncf %1 : vector<16x32xf32> to vector<16x32xbf16>
    %13 = arith.truncf %6 : vector<32x32xf32> to vector<32x32xbf16>
    %cst = arith.constant dense<0.000000e+00> : vector<16x32xf32>
    %14 = tpu.matmul %12, %13, %cst {dimension_numbers = #tpu.dot_dimension_numbers<[1], [0], [0], [1], [0, 0, 1, 1], [], []>} : vector<16x32xbf16>, vector<32x32xbf16>, vector<16x32xf32> -> vector<16x32xf32>
    %15 = vector.broadcast %7 : vector<1x32xf32> to vector<16x32xf32>
    %16 = arith.addf %14, %15 : vector<16x32xf32>
    %17 = arith.truncf %1 : vector<16x32xf32> to vector<16x32xbf16>
    %18 = arith.truncf %8 : vector<32x32xf32> to vector<32x32xbf16>
    %cst_20 = arith.constant dense<0.000000e+00> : vector<16x32xf32>
    %19 = tpu.matmul %17, %18, %cst_20 {dimension_numbers = #tpu.dot_dimension_numbers<[1], [0], [0], [1], [0, 0, 1, 1], [], []>} : vector<16x32xbf16>, vector<32x32xbf16>, vector<16x32xf32> -> vector<16x32xf32>
    %20 = vector.broadcast %9 : vector<1x32xf32> to vector<16x32xf32>
    %21 = arith.addf %19, %20 : vector<16x32xf32>
    %22 = vector.shape_cast %16 : vector<16x32xf32> to vector<2x8x32xf32>
    %23 = vector.shape_cast %21 : vector<16x32xf32> to vector<2x8x32xf32>
    %24 = tpu.iota {dimensions = array<i32: 1>} : vector<2x8x8xi32>
    %25 = tpu.iota {dimensions = array<i32: 2>} : vector<2x8x8xi32>
    %26 = arith.cmpi sle, %25, %24 : vector<2x8x8xi32>
    %cst_21 = arith.constant 0.000000e+00 : f32
    %cst_22 = arith.constant -1.000000e+30 : f32
    %27 = vector.broadcast %cst_21 : f32 to vector<2x8x8xf32>
    %28 = vector.broadcast %cst_22 : f32 to vector<2x8x8xf32>
    %29 = arith.select %26, %27, %28 : vector<2x8x8xi1>, vector<2x8x8xf32>
    %30 = vector.extract_strided_slice %22 {offsets = [0, 0, 0], sizes = [2, 8, 8], strides = [1, 1, 1]} : vector<2x8x32xf32> to vector<2x8x8xf32>
    %31 = vector.extract_strided_slice %23 {offsets = [0, 0, 0], sizes = [2, 8, 8], strides = [1, 1, 1]} : vector<2x8x32xf32> to vector<2x8x8xf32>
    %32 = arith.truncf %30 : vector<2x8x8xf32> to vector<2x8x8xbf16>
    %33 = arith.truncf %30 : vector<2x8x8xf32> to vector<2x8x8xbf16>
    "tpu.trace_start"() <{level = 10 : i32, message = "bqd,bkd->bqk"}> : () -> ()
    %cst_23 = arith.constant dense<0.000000e+00> : vector<2x8x8xf32>
    %34 = tpu.matmul %32, %33, %cst_23 {dimension_numbers = #tpu.dot_dimension_numbers<[2], [2], [1], [1], [0, 0, 0, 1, 1, 1], [0], [0]>} : vector<2x8x8xbf16>, vector<2x8x8xbf16>, vector<2x8x8xf32> -> vector<2x8x8xf32>
    "tpu.trace_stop"() : () -> ()
    %cst_24 = arith.constant 0.353553385 : f32
    %35 = vector.broadcast %cst_24 : f32 to vector<2x8x8xf32>
    %36 = arith.mulf %34, %35 : vector<2x8x8xf32>
    %37 = arith.addf %36, %29 : vector<2x8x8xf32>
    %cst_25 = arith.constant dense<0xFF800000> : vector<2x8xf32>
    %38 = vector.multi_reduction <maximumf>, %37, %cst_25 [2] : vector<2x8x8xf32> to vector<2x8xf32>
    %39 = vector.shape_cast %38 : vector<2x8xf32> to vector<2x8x1xf32>
    %40 = vector.broadcast %39 : vector<2x8x1xf32> to vector<2x8x8xf32>
    %41 = arith.subf %37, %40 : vector<2x8x8xf32>
    %42 = math.exp %41 : vector<2x8x8xf32>
    %cst_26 = arith.constant dense<0.000000e+00> : vector<2x8xf32>
    %43 = vector.multi_reduction <add>, %42, %cst_26 [2] : vector<2x8x8xf32> to vector<2x8xf32>
    %44 = vector.shape_cast %43 : vector<2x8xf32> to vector<2x8x1xf32>
    %45 = tpu.reciprocal %44 {approx = true} : vector<2x8x1xf32> -> vector<2x8x1xf32>
    %46 = vector.broadcast %45 : vector<2x8x1xf32> to vector<2x8x8xf32>
    %47 = arith.mulf %42, %46 : vector<2x8x8xf32>
    %48 = arith.truncf %47 : vector<2x8x8xf32> to vector<2x8x8xbf16>
    %49 = arith.truncf %31 : vector<2x8x8xf32> to vector<2x8x8xbf16>
    "tpu.trace_start"() <{level = 10 : i32, message = "bqk,bkd->bqd"}> : () -> ()
    %cst_27 = arith.constant dense<0.000000e+00> : vector<2x8x8xf32>
    %50 = tpu.matmul %48, %49, %cst_27 {dimension_numbers = #tpu.dot_dimension_numbers<[2], [1], [1], [2], [0, 0, 0, 1, 1, 2], [0], [0]>} : vector<2x8x8xbf16>, vector<2x8x8xbf16>, vector<2x8x8xf32> -> vector<2x8x8xf32>
    "tpu.trace_stop"() : () -> ()
    %51 = vector.shape_cast %50 : vector<2x8x8xf32> to vector<16x8xf32>
    %52 = vector.extract_strided_slice %10 {offsets = [0, 0], sizes = [8, 32], strides = [1, 1]} : vector<32x32xf32> to vector<8x32xf32>
    %53 = arith.truncf %51 : vector<16x8xf32> to vector<16x8xbf16>
    %54 = arith.truncf %52 : vector<8x32xf32> to vector<8x32xbf16>
    %cst_28 = arith.constant dense<0.000000e+00> : vector<16x32xf32>
    %55 = tpu.matmul %53, %54, %cst_28 {dimension_numbers = #tpu.dot_dimension_numbers<[1], [0], [0], [1], [0, 0, 1, 1], [], []>} : vector<16x8xbf16>, vector<8x32xbf16>, vector<16x32xf32> -> vector<16x32xf32>
    %56 = vector.extract_strided_slice %22 {offsets = [0, 0, 8], sizes = [2, 8, 8], strides = [1, 1, 1]} : vector<2x8x32xf32> to vector<2x8x8xf32>
    %57 = vector.extract_strided_slice %23 {offsets = [0, 0, 8], sizes = [2, 8, 8], strides = [1, 1, 1]} : vector<2x8x32xf32> to vector<2x8x8xf32>
    %58 = arith.truncf %56 : vector<2x8x8xf32> to vector<2x8x8xbf16>
    %59 = arith.truncf %56 : vector<2x8x8xf32> to vector<2x8x8xbf16>
    "tpu.trace_start"() <{level = 10 : i32, message = "bqd,bkd->bqk"}> : () -> ()
    %cst_29 = arith.constant dense<0.000000e+00> : vector<2x8x8xf32>
    %60 = tpu.matmul %58, %59, %cst_29 {dimension_numbers = #tpu.dot_dimension_numbers<[2], [2], [1], [1], [0, 0, 0, 1, 1, 1], [0], [0]>} : vector<2x8x8xbf16>, vector<2x8x8xbf16>, vector<2x8x8xf32> -> vector<2x8x8xf32>
    "tpu.trace_stop"() : () -> ()
    %cst_30 = arith.constant 0.353553385 : f32
    %61 = vector.broadcast %cst_30 : f32 to vector<2x8x8xf32>
    %62 = arith.mulf %60, %61 : vector<2x8x8xf32>
    %63 = arith.addf %62, %29 : vector<2x8x8xf32>
    %cst_31 = arith.constant dense<0xFF800000> : vector<2x8xf32>
    %64 = vector.multi_reduction <maximumf>, %63, %cst_31 [2] : vector<2x8x8xf32> to vector<2x8xf32>
    %65 = vector.shape_cast %64 : vector<2x8xf32> to vector<2x8x1xf32>
    %66 = vector.broadcast %65 : vector<2x8x1xf32> to vector<2x8x8xf32>
    %67 = arith.subf %63, %66 : vector<2x8x8xf32>
    %68 = math.exp %67 : vector<2x8x8xf32>
    %cst_32 = arith.constant dense<0.000000e+00> : vector<2x8xf32>
    %69 = vector.multi_reduction <add>, %68, %cst_32 [2] : vector<2x8x8xf32> to vector<2x8xf32>
    %70 = vector.shape_cast %69 : vector<2x8xf32> to vector<2x8x1xf32>
    %71 = tpu.reciprocal %70 {approx = true} : vector<2x8x1xf32> -> vector<2x8x1xf32>
    %72 = vector.broadcast %71 : vector<2x8x1xf32> to vector<2x8x8xf32>
    %73 = arith.mulf %68, %72 : vector<2x8x8xf32>
    %74 = arith.truncf %73 : vector<2x8x8xf32> to vector<2x8x8xbf16>
    %75 = arith.truncf %57 : vector<2x8x8xf32> to vector<2x8x8xbf16>
    "tpu.trace_start"() <{level = 10 : i32, message = "bqk,bkd->bqd"}> : () -> ()
    %cst_33 = arith.constant dense<0.000000e+00> : vector<2x8x8xf32>
    %76 = tpu.matmul %74, %75, %cst_33 {dimension_numbers = #tpu.dot_dimension_numbers<[2], [1], [1], [2], [0, 0, 0, 1, 1, 2], [0], [0]>} : vector<2x8x8xbf16>, vector<2x8x8xbf16>, vector<2x8x8xf32> -> vector<2x8x8xf32>
    "tpu.trace_stop"() : () -> ()
    %77 = vector.shape_cast %76 : vector<2x8x8xf32> to vector<16x8xf32>
    %78 = vector.extract_strided_slice %10 {offsets = [8, 0], sizes = [8, 32], strides = [1, 1]} : vector<32x32xf32> to vector<8x32xf32>
    %79 = arith.truncf %77 : vector<16x8xf32> to vector<16x8xbf16>
    %80 = arith.truncf %78 : vector<8x32xf32> to vector<8x32xbf16>
    %cst_34 = arith.constant dense<0.000000e+00> : vector<16x32xf32>
    %81 = tpu.matmul %79, %80, %cst_34 {dimension_numbers = #tpu.dot_dimension_numbers<[1], [0], [0], [1], [0, 0, 1, 1], [], []>} : vector<16x8xbf16>, vector<8x32xbf16>, vector<16x32xf32> -> vector<16x32xf32>
    %82 = arith.addf %55, %81 : vector<16x32xf32>
    %83 = vector.extract_strided_slice %22 {offsets = [0, 0, 16], sizes = [2, 8, 8], strides = [1, 1, 1]} : vector<2x8x32xf32> to vector<2x8x8xf32>
    %84 = vector.extract_strided_slice %23 {offsets = [0, 0, 16], sizes = [2, 8, 8], strides = [1, 1, 1]} : vector<2x8x32xf32> to vector<2x8x8xf32>
    %85 = arith.truncf %83 : vector<2x8x8xf32> to vector<2x8x8xbf16>
    %86 = arith.truncf %83 : vector<2x8x8xf32> to vector<2x8x8xbf16>
    "tpu.trace_start"() <{level = 10 : i32, message = "bqd,bkd->bqk"}> : () -> ()
    %cst_35 = arith.constant dense<0.000000e+00> : vector<2x8x8xf32>
    %87 = tpu.matmul %85, %86, %cst_35 {dimension_numbers = #tpu.dot_dimension_numbers<[2], [2], [1], [1], [0, 0, 0, 1, 1, 1], [0], [0]>} : vector<2x8x8xbf16>, vector<2x8x8xbf16>, vector<2x8x8xf32> -> vector<2x8x8xf32>
    "tpu.trace_stop"() : () -> ()
    %cst_36 = arith.constant 0.353553385 : f32
    %88 = vector.broadcast %cst_36 : f32 to vector<2x8x8xf32>
    %89 = arith.mulf %87, %88 : vector<2x8x8xf32>
    %90 = arith.addf %89, %29 : vector<2x8x8xf32>
    %cst_37 = arith.constant dense<0xFF800000> : vector<2x8xf32>
    %91 = vector.multi_reduction <maximumf>, %90, %cst_37 [2] : vector<2x8x8xf32> to vector<2x8xf32>
    %92 = vector.shape_cast %91 : vector<2x8xf32> to vector<2x8x1xf32>
    %93 = vector.broadcast %92 : vector<2x8x1xf32> to vector<2x8x8xf32>
    %94 = arith.subf %90, %93 : vector<2x8x8xf32>
    %95 = math.exp %94 : vector<2x8x8xf32>
    %cst_38 = arith.constant dense<0.000000e+00> : vector<2x8xf32>
    %96 = vector.multi_reduction <add>, %95, %cst_38 [2] : vector<2x8x8xf32> to vector<2x8xf32>
    %97 = vector.shape_cast %96 : vector<2x8xf32> to vector<2x8x1xf32>
    %98 = tpu.reciprocal %97 {approx = true} : vector<2x8x1xf32> -> vector<2x8x1xf32>
    %99 = vector.broadcast %98 : vector<2x8x1xf32> to vector<2x8x8xf32>
    %100 = arith.mulf %95, %99 : vector<2x8x8xf32>
    %101 = arith.truncf %100 : vector<2x8x8xf32> to vector<2x8x8xbf16>
    %102 = arith.truncf %84 : vector<2x8x8xf32> to vector<2x8x8xbf16>
    "tpu.trace_start"() <{level = 10 : i32, message = "bqk,bkd->bqd"}> : () -> ()
    %cst_39 = arith.constant dense<0.000000e+00> : vector<2x8x8xf32>
    %103 = tpu.matmul %101, %102, %cst_39 {dimension_numbers = #tpu.dot_dimension_numbers<[2], [1], [1], [2], [0, 0, 0, 1, 1, 2], [0], [0]>} : vector<2x8x8xbf16>, vector<2x8x8xbf16>, vector<2x8x8xf32> -> vector<2x8x8xf32>
    "tpu.trace_stop"() : () -> ()
    %104 = vector.shape_cast %103 : vector<2x8x8xf32> to vector<16x8xf32>
    %105 = vector.extract_strided_slice %10 {offsets = [16, 0], sizes = [8, 32], strides = [1, 1]} : vector<32x32xf32> to vector<8x32xf32>
    %106 = arith.truncf %104 : vector<16x8xf32> to vector<16x8xbf16>
    %107 = arith.truncf %105 : vector<8x32xf32> to vector<8x32xbf16>
    %cst_40 = arith.constant dense<0.000000e+00> : vector<16x32xf32>
    %108 = tpu.matmul %106, %107, %cst_40 {dimension_numbers = #tpu.dot_dimension_numbers<[1], [0], [0], [1], [0, 0, 1, 1], [], []>} : vector<16x8xbf16>, vector<8x32xbf16>, vector<16x32xf32> -> vector<16x32xf32>
    %109 = arith.addf %82, %108 : vector<16x32xf32>
    %110 = vector.extract_strided_slice %22 {offsets = [0, 0, 24], sizes = [2, 8, 8], strides = [1, 1, 1]} : vector<2x8x32xf32> to vector<2x8x8xf32>
    %111 = vector.extract_strided_slice %23 {offsets = [0, 0, 24], sizes = [2, 8, 8], strides = [1, 1, 1]} : vector<2x8x32xf32> to vector<2x8x8xf32>
    %112 = arith.truncf %110 : vector<2x8x8xf32> to vector<2x8x8xbf16>
    %113 = arith.truncf %110 : vector<2x8x8xf32> to vector<2x8x8xbf16>
    "tpu.trace_start"() <{level = 10 : i32, message = "bqd,bkd->bqk"}> : () -> ()
    %cst_41 = arith.constant dense<0.000000e+00> : vector<2x8x8xf32>
    %114 = tpu.matmul %112, %113, %cst_41 {dimension_numbers = #tpu.dot_dimension_numbers<[2], [2], [1], [1], [0, 0, 0, 1, 1, 1], [0], [0]>} : vector<2x8x8xbf16>, vector<2x8x8xbf16>, vector<2x8x8xf32> -> vector<2x8x8xf32>
    "tpu.trace_stop"() : () -> ()
    %cst_42 = arith.constant 0.353553385 : f32
    %115 = vector.broadcast %cst_42 : f32 to vector<2x8x8xf32>
    %116 = arith.mulf %114, %115 : vector<2x8x8xf32>
    %117 = arith.addf %116, %29 : vector<2x8x8xf32>
    %cst_43 = arith.constant dense<0xFF800000> : vector<2x8xf32>
    %118 = vector.multi_reduction <maximumf>, %117, %cst_43 [2] : vector<2x8x8xf32> to vector<2x8xf32>
    %119 = vector.shape_cast %118 : vector<2x8xf32> to vector<2x8x1xf32>
    %120 = vector.broadcast %119 : vector<2x8x1xf32> to vector<2x8x8xf32>
    %121 = arith.subf %117, %120 : vector<2x8x8xf32>
    %122 = math.exp %121 : vector<2x8x8xf32>
    %cst_44 = arith.constant dense<0.000000e+00> : vector<2x8xf32>
    %123 = vector.multi_reduction <add>, %122, %cst_44 [2] : vector<2x8x8xf32> to vector<2x8xf32>
    %124 = vector.shape_cast %123 : vector<2x8xf32> to vector<2x8x1xf32>
    %125 = tpu.reciprocal %124 {approx = true} : vector<2x8x1xf32> -> vector<2x8x1xf32>
    %126 = vector.broadcast %125 : vector<2x8x1xf32> to vector<2x8x8xf32>
    %127 = arith.mulf %122, %126 : vector<2x8x8xf32>
    %128 = arith.truncf %127 : vector<2x8x8xf32> to vector<2x8x8xbf16>
    %129 = arith.truncf %111 : vector<2x8x8xf32> to vector<2x8x8xbf16>
    "tpu.trace_start"() <{level = 10 : i32, message = "bqk,bkd->bqd"}> : () -> ()
    %cst_45 = arith.constant dense<0.000000e+00> : vector<2x8x8xf32>
    %130 = tpu.matmul %128, %129, %cst_45 {dimension_numbers = #tpu.dot_dimension_numbers<[2], [1], [1], [2], [0, 0, 0, 1, 1, 2], [0], [0]>} : vector<2x8x8xbf16>, vector<2x8x8xbf16>, vector<2x8x8xf32> -> vector<2x8x8xf32>
    "tpu.trace_stop"() : () -> ()
    %131 = vector.shape_cast %130 : vector<2x8x8xf32> to vector<16x8xf32>
    %132 = vector.extract_strided_slice %10 {offsets = [24, 0], sizes = [8, 32], strides = [1, 1]} : vector<32x32xf32> to vector<8x32xf32>
    %133 = arith.truncf %131 : vector<16x8xf32> to vector<16x8xbf16>
    %134 = arith.truncf %132 : vector<8x32xf32> to vector<8x32xbf16>
    %cst_46 = arith.constant dense<0.000000e+00> : vector<16x32xf32>
    %135 = tpu.matmul %133, %134, %cst_46 {dimension_numbers = #tpu.dot_dimension_numbers<[1], [0], [0], [1], [0, 0, 1, 1], [], []>} : vector<16x8xbf16>, vector<8x32xbf16>, vector<16x32xf32> -> vector<16x32xf32>
    %136 = arith.addf %109, %135 : vector<16x32xf32>
    %137 = vector.broadcast %11 : vector<1x32xf32> to vector<16x32xf32>
    %138 = arith.addf %136, %137 : vector<16x32xf32>
    %139 = arith.addf %1, %138 : vector<16x32xf32>
    %c0_47 = arith.constant 0 : index
    %c0_48 = arith.constant 0 : index
    %140 = vector.load %arg10[%c0_47, %c0_48] : memref<1x32xf32, #tpu.memory_space<vmem>>, vector<1x32xf32>
    %c0_49 = arith.constant 0 : index
    %c0_50 = arith.constant 0 : index
    %141 = vector.load %arg11[%c0_49, %c0_50] : memref<1x32xf32, #tpu.memory_space<vmem>>, vector<1x32xf32>
    %cst_51 = arith.constant dense<0.000000e+00> : vector<16xf32>
    %142 = vector.multi_reduction <add>, %139, %cst_51 [1] : vector<16x32xf32> to vector<16xf32>
    %143 = vector.shape_cast %142 : vector<16xf32> to vector<16x1xf32>
    %cst_52 = arith.constant 3.200000e+01 : f32
    %144 = vector.broadcast %cst_52 : f32 to vector<16x1xf32>
    %145 = arith.divf %143, %144 : vector<16x1xf32>
    %146 = vector.broadcast %145 : vector<16x1xf32> to vector<16x32xf32>
    %147 = arith.subf %139, %146 : vector<16x32xf32>
    %148 = arith.mulf %147, %147 : vector<16x32xf32>
    %cst_53 = arith.constant dense<0.000000e+00> : vector<16xf32>
    %149 = vector.multi_reduction <add>, %148, %cst_53 [1] : vector<16x32xf32> to vector<16xf32>
    %150 = vector.shape_cast %149 : vector<16xf32> to vector<16x1xf32>
    %cst_54 = arith.constant 3.200000e+01 : f32
    %151 = vector.broadcast %cst_54 : f32 to vector<16x1xf32>
    %152 = arith.divf %150, %151 : vector<16x1xf32>
    %153 = vector.broadcast %145 : vector<16x1xf32> to vector<16x32xf32>
    %154 = arith.subf %139, %153 : vector<16x32xf32>
    %cst_55 = arith.constant 9.99999974E-6 : f32
    %155 = vector.broadcast %cst_55 : f32 to vector<16x1xf32>
    %156 = arith.addf %152, %155 : vector<16x1xf32>
    %157 = math.rsqrt %156 : vector<16x1xf32>
    %158 = vector.broadcast %157 : vector<16x1xf32> to vector<16x32xf32>
    %159 = arith.mulf %154, %158 : vector<16x32xf32>
    %160 = vector.broadcast %140 : vector<1x32xf32> to vector<16x32xf32>
    %161 = arith.mulf %159, %160 : vector<16x32xf32>
    %162 = vector.broadcast %141 : vector<1x32xf32> to vector<16x32xf32>
    %163 = arith.addf %161, %162 : vector<16x32xf32>
    %c0_56 = arith.constant 0 : index
    %c0_57 = arith.constant 0 : index
    %164 = vector.load %arg12[%c0_56, %c0_57] : memref<32x32xf32, #tpu.memory_space<vmem>>, vector<32x32xf32>
    %c0_58 = arith.constant 0 : index
    %c0_59 = arith.constant 0 : index
    %165 = vector.load %arg13[%c0_58, %c0_59] : memref<1x32xf32, #tpu.memory_space<vmem>>, vector<1x32xf32>
    %c0_60 = arith.constant 0 : index
    %c0_61 = arith.constant 0 : index
    %166 = vector.load %arg14[%c0_60, %c0_61] : memref<32x32xf32, #tpu.memory_space<vmem>>, vector<32x32xf32>
    %c0_62 = arith.constant 0 : index
    %c0_63 = arith.constant 0 : index
    %167 = vector.load %arg15[%c0_62, %c0_63] : memref<1x32xf32, #tpu.memory_space<vmem>>, vector<1x32xf32>
    %c0_64 = arith.constant 0 : index
    %c0_65 = arith.constant 0 : index
    %168 = vector.load %arg16[%c0_64, %c0_65] : memref<32x32xf32, #tpu.memory_space<vmem>>, vector<32x32xf32>
    %c0_66 = arith.constant 0 : index
    %c0_67 = arith.constant 0 : index
    %169 = vector.load %arg17[%c0_66, %c0_67] : memref<1x32xf32, #tpu.memory_space<vmem>>, vector<1x32xf32>
    %170 = arith.truncf %3 : vector<16x32xf32> to vector<16x32xbf16>
    %171 = arith.truncf %164 : vector<32x32xf32> to vector<32x32xbf16>
    %cst_68 = arith.constant dense<0.000000e+00> : vector<16x32xf32>
    %172 = tpu.matmul %170, %171, %cst_68 {dimension_numbers = #tpu.dot_dimension_numbers<[1], [0], [0], [1], [0, 0, 1, 1], [], []>} : vector<16x32xbf16>, vector<32x32xbf16>, vector<16x32xf32> -> vector<16x32xf32>
    %173 = vector.broadcast %165 : vector<1x32xf32> to vector<16x32xf32>
    %174 = arith.addf %172, %173 : vector<16x32xf32>
    %175 = arith.truncf %5 : vector<16x32xf32> to vector<16x32xbf16>
    %176 = arith.truncf %166 : vector<32x32xf32> to vector<32x32xbf16>
    %cst_69 = arith.constant dense<0.000000e+00> : vector<16x32xf32>
    %177 = tpu.matmul %175, %176, %cst_69 {dimension_numbers = #tpu.dot_dimension_numbers<[1], [0], [0], [1], [0, 0, 1, 1], [], []>} : vector<16x32xbf16>, vector<32x32xbf16>, vector<16x32xf32> -> vector<16x32xf32>
    %178 = vector.broadcast %167 : vector<1x32xf32> to vector<16x32xf32>
    %179 = arith.addf %177, %178 : vector<16x32xf32>
    %180 = vector.shape_cast %174 : vector<16x32xf32> to vector<2x8x32xf32>
    %181 = vector.shape_cast %179 : vector<16x32xf32> to vector<2x8x32xf32>
    %182 = tpu.iota {dimensions = array<i32: 1>} : vector<2x8x8xi32>
    %183 = tpu.iota {dimensions = array<i32: 2>} : vector<2x8x8xi32>
    %184 = arith.cmpi sle, %183, %182 : vector<2x8x8xi32>
    %cst_70 = arith.constant 0.000000e+00 : f32
    %cst_71 = arith.constant -1.000000e+30 : f32
    %185 = vector.broadcast %cst_70 : f32 to vector<2x8x8xf32>
    %186 = vector.broadcast %cst_71 : f32 to vector<2x8x8xf32>
    %187 = arith.select %184, %185, %186 : vector<2x8x8xi1>, vector<2x8x8xf32>
    %188 = vector.extract_strided_slice %180 {offsets = [0, 0, 0], sizes = [2, 8, 8], strides = [1, 1, 1]} : vector<2x8x32xf32> to vector<2x8x8xf32>
    %189 = vector.extract_strided_slice %181 {offsets = [0, 0, 0], sizes = [2, 8, 8], strides = [1, 1, 1]} : vector<2x8x32xf32> to vector<2x8x8xf32>
    %190 = arith.truncf %188 : vector<2x8x8xf32> to vector<2x8x8xbf16>
    %191 = arith.truncf %188 : vector<2x8x8xf32> to vector<2x8x8xbf16>
    "tpu.trace_start"() <{level = 10 : i32, message = "bqd,bkd->bqk"}> : () -> ()
    %cst_72 = arith.constant dense<0.000000e+00> : vector<2x8x8xf32>
    %192 = tpu.matmul %190, %191, %cst_72 {dimension_numbers = #tpu.dot_dimension_numbers<[2], [2], [1], [1], [0, 0, 0, 1, 1, 1], [0], [0]>} : vector<2x8x8xbf16>, vector<2x8x8xbf16>, vector<2x8x8xf32> -> vector<2x8x8xf32>
    "tpu.trace_stop"() : () -> ()
    %cst_73 = arith.constant 0.353553385 : f32
    %193 = vector.broadcast %cst_73 : f32 to vector<2x8x8xf32>
    %194 = arith.mulf %192, %193 : vector<2x8x8xf32>
    %195 = arith.addf %194, %187 : vector<2x8x8xf32>
    %cst_74 = arith.constant dense<0xFF800000> : vector<2x8xf32>
    %196 = vector.multi_reduction <maximumf>, %195, %cst_74 [2] : vector<2x8x8xf32> to vector<2x8xf32>
    %197 = vector.shape_cast %196 : vector<2x8xf32> to vector<2x8x1xf32>
    %198 = vector.broadcast %197 : vector<2x8x1xf32> to vector<2x8x8xf32>
    %199 = arith.subf %195, %198 : vector<2x8x8xf32>
    %200 = math.exp %199 : vector<2x8x8xf32>
    %cst_75 = arith.constant dense<0.000000e+00> : vector<2x8xf32>
    %201 = vector.multi_reduction <add>, %200, %cst_75 [2] : vector<2x8x8xf32> to vector<2x8xf32>
    %202 = vector.shape_cast %201 : vector<2x8xf32> to vector<2x8x1xf32>
    %203 = tpu.reciprocal %202 {approx = true} : vector<2x8x1xf32> -> vector<2x8x1xf32>
    %204 = vector.broadcast %203 : vector<2x8x1xf32> to vector<2x8x8xf32>
    %205 = arith.mulf %200, %204 : vector<2x8x8xf32>
    %206 = arith.truncf %205 : vector<2x8x8xf32> to vector<2x8x8xbf16>
    %207 = arith.truncf %189 : vector<2x8x8xf32> to vector<2x8x8xbf16>
    "tpu.trace_start"() <{level = 10 : i32, message = "bqk,bkd->bqd"}> : () -> ()
    %cst_76 = arith.constant dense<0.000000e+00> : vector<2x8x8xf32>
    %208 = tpu.matmul %206, %207, %cst_76 {dimension_numbers = #tpu.dot_dimension_numbers<[2], [1], [1], [2], [0, 0, 0, 1, 1, 2], [0], [0]>} : vector<2x8x8xbf16>, vector<2x8x8xbf16>, vector<2x8x8xf32> -> vector<2x8x8xf32>
    "tpu.trace_stop"() : () -> ()
    %209 = vector.shape_cast %208 : vector<2x8x8xf32> to vector<16x8xf32>
    %210 = vector.extract_strided_slice %168 {offsets = [0, 0], sizes = [8, 32], strides = [1, 1]} : vector<32x32xf32> to vector<8x32xf32>
    %211 = arith.truncf %209 : vector<16x8xf32> to vector<16x8xbf16>
    %212 = arith.truncf %210 : vector<8x32xf32> to vector<8x32xbf16>
    %cst_77 = arith.constant dense<0.000000e+00> : vector<16x32xf32>
    %213 = tpu.matmul %211, %212, %cst_77 {dimension_numbers = #tpu.dot_dimension_numbers<[1], [0], [0], [1], [0, 0, 1, 1], [], []>} : vector<16x8xbf16>, vector<8x32xbf16>, vector<16x32xf32> -> vector<16x32xf32>
    %214 = vector.extract_strided_slice %180 {offsets = [0, 0, 8], sizes = [2, 8, 8], strides = [1, 1, 1]} : vector<2x8x32xf32> to vector<2x8x8xf32>
    %215 = vector.extract_strided_slice %181 {offsets = [0, 0, 8], sizes = [2, 8, 8], strides = [1, 1, 1]} : vector<2x8x32xf32> to vector<2x8x8xf32>
    %216 = arith.truncf %214 : vector<2x8x8xf32> to vector<2x8x8xbf16>
    %217 = arith.truncf %214 : vector<2x8x8xf32> to vector<2x8x8xbf16>
    "tpu.trace_start"() <{level = 10 : i32, message = "bqd,bkd->bqk"}> : () -> ()
    %cst_78 = arith.constant dense<0.000000e+00> : vector<2x8x8xf32>
    %218 = tpu.matmul %216, %217, %cst_78 {dimension_numbers = #tpu.dot_dimension_numbers<[2], [2], [1], [1], [0, 0, 0, 1, 1, 1], [0], [0]>} : vector<2x8x8xbf16>, vector<2x8x8xbf16>, vector<2x8x8xf32> -> vector<2x8x8xf32>
    "tpu.trace_stop"() : () -> ()
    %cst_79 = arith.constant 0.353553385 : f32
    %219 = vector.broadcast %cst_79 : f32 to vector<2x8x8xf32>
    %220 = arith.mulf %218, %219 : vector<2x8x8xf32>
    %221 = arith.addf %220, %187 : vector<2x8x8xf32>
    %cst_80 = arith.constant dense<0xFF800000> : vector<2x8xf32>
    %222 = vector.multi_reduction <maximumf>, %221, %cst_80 [2] : vector<2x8x8xf32> to vector<2x8xf32>
    %223 = vector.shape_cast %222 : vector<2x8xf32> to vector<2x8x1xf32>
    %224 = vector.broadcast %223 : vector<2x8x1xf32> to vector<2x8x8xf32>
    %225 = arith.subf %221, %224 : vector<2x8x8xf32>
    %226 = math.exp %225 : vector<2x8x8xf32>
    %cst_81 = arith.constant dense<0.000000e+00> : vector<2x8xf32>
    %227 = vector.multi_reduction <add>, %226, %cst_81 [2] : vector<2x8x8xf32> to vector<2x8xf32>
    %228 = vector.shape_cast %227 : vector<2x8xf32> to vector<2x8x1xf32>
    %229 = tpu.reciprocal %228 {approx = true} : vector<2x8x1xf32> -> vector<2x8x1xf32>
    %230 = vector.broadcast %229 : vector<2x8x1xf32> to vector<2x8x8xf32>
    %231 = arith.mulf %226, %230 : vector<2x8x8xf32>
    %232 = arith.truncf %231 : vector<2x8x8xf32> to vector<2x8x8xbf16>
    %233 = arith.truncf %215 : vector<2x8x8xf32> to vector<2x8x8xbf16>
    "tpu.trace_start"() <{level = 10 : i32, message = "bqk,bkd->bqd"}> : () -> ()
    %cst_82 = arith.constant dense<0.000000e+00> : vector<2x8x8xf32>
    %234 = tpu.matmul %232, %233, %cst_82 {dimension_numbers = #tpu.dot_dimension_numbers<[2], [1], [1], [2], [0, 0, 0, 1, 1, 2], [0], [0]>} : vector<2x8x8xbf16>, vector<2x8x8xbf16>, vector<2x8x8xf32> -> vector<2x8x8xf32>
    "tpu.trace_stop"() : () -> ()
    %235 = vector.shape_cast %234 : vector<2x8x8xf32> to vector<16x8xf32>
    %236 = vector.extract_strided_slice %168 {offsets = [8, 0], sizes = [8, 32], strides = [1, 1]} : vector<32x32xf32> to vector<8x32xf32>
    %237 = arith.truncf %235 : vector<16x8xf32> to vector<16x8xbf16>
    %238 = arith.truncf %236 : vector<8x32xf32> to vector<8x32xbf16>
    %cst_83 = arith.constant dense<0.000000e+00> : vector<16x32xf32>
    %239 = tpu.matmul %237, %238, %cst_83 {dimension_numbers = #tpu.dot_dimension_numbers<[1], [0], [0], [1], [0, 0, 1, 1], [], []>} : vector<16x8xbf16>, vector<8x32xbf16>, vector<16x32xf32> -> vector<16x32xf32>
    %240 = arith.addf %213, %239 : vector<16x32xf32>
    %241 = vector.extract_strided_slice %180 {offsets = [0, 0, 16], sizes = [2, 8, 8], strides = [1, 1, 1]} : vector<2x8x32xf32> to vector<2x8x8xf32>
    %242 = vector.extract_strided_slice %181 {offsets = [0, 0, 16], sizes = [2, 8, 8], strides = [1, 1, 1]} : vector<2x8x32xf32> to vector<2x8x8xf32>
    %243 = arith.truncf %241 : vector<2x8x8xf32> to vector<2x8x8xbf16>
    %244 = arith.truncf %241 : vector<2x8x8xf32> to vector<2x8x8xbf16>
    "tpu.trace_start"() <{level = 10 : i32, message = "bqd,bkd->bqk"}> : () -> ()
    %cst_84 = arith.constant dense<0.000000e+00> : vector<2x8x8xf32>
    %245 = tpu.matmul %243, %244, %cst_84 {dimension_numbers = #tpu.dot_dimension_numbers<[2], [2], [1], [1], [0, 0, 0, 1, 1, 1], [0], [0]>} : vector<2x8x8xbf16>, vector<2x8x8xbf16>, vector<2x8x8xf32> -> vector<2x8x8xf32>
    "tpu.trace_stop"() : () -> ()
    %cst_85 = arith.constant 0.353553385 : f32
    %246 = vector.broadcast %cst_85 : f32 to vector<2x8x8xf32>
    %247 = arith.mulf %245, %246 : vector<2x8x8xf32>
    %248 = arith.addf %247, %187 : vector<2x8x8xf32>
    %cst_86 = arith.constant dense<0xFF800000> : vector<2x8xf32>
    %249 = vector.multi_reduction <maximumf>, %248, %cst_86 [2] : vector<2x8x8xf32> to vector<2x8xf32>
    %250 = vector.shape_cast %249 : vector<2x8xf32> to vector<2x8x1xf32>
    %251 = vector.broadcast %250 : vector<2x8x1xf32> to vector<2x8x8xf32>
    %252 = arith.subf %248, %251 : vector<2x8x8xf32>
    %253 = math.exp %252 : vector<2x8x8xf32>
    %cst_87 = arith.constant dense<0.000000e+00> : vector<2x8xf32>
    %254 = vector.multi_reduction <add>, %253, %cst_87 [2] : vector<2x8x8xf32> to vector<2x8xf32>
    %255 = vector.shape_cast %254 : vector<2x8xf32> to vector<2x8x1xf32>
    %256 = tpu.reciprocal %255 {approx = true} : vector<2x8x1xf32> -> vector<2x8x1xf32>
    %257 = vector.broadcast %256 : vector<2x8x1xf32> to vector<2x8x8xf32>
    %258 = arith.mulf %253, %257 : vector<2x8x8xf32>
    %259 = arith.truncf %258 : vector<2x8x8xf32> to vector<2x8x8xbf16>
    %260 = arith.truncf %242 : vector<2x8x8xf32> to vector<2x8x8xbf16>
    "tpu.trace_start"() <{level = 10 : i32, message = "bqk,bkd->bqd"}> : () -> ()
    %cst_88 = arith.constant dense<0.000000e+00> : vector<2x8x8xf32>
    %261 = tpu.matmul %259, %260, %cst_88 {dimension_numbers = #tpu.dot_dimension_numbers<[2], [1], [1], [2], [0, 0, 0, 1, 1, 2], [0], [0]>} : vector<2x8x8xbf16>, vector<2x8x8xbf16>, vector<2x8x8xf32> -> vector<2x8x8xf32>
    "tpu.trace_stop"() : () -> ()
    %262 = vector.shape_cast %261 : vector<2x8x8xf32> to vector<16x8xf32>
    %263 = vector.extract_strided_slice %168 {offsets = [16, 0], sizes = [8, 32], strides = [1, 1]} : vector<32x32xf32> to vector<8x32xf32>
    %264 = arith.truncf %262 : vector<16x8xf32> to vector<16x8xbf16>
    %265 = arith.truncf %263 : vector<8x32xf32> to vector<8x32xbf16>
    %cst_89 = arith.constant dense<0.000000e+00> : vector<16x32xf32>
    %266 = tpu.matmul %264, %265, %cst_89 {dimension_numbers = #tpu.dot_dimension_numbers<[1], [0], [0], [1], [0, 0, 1, 1], [], []>} : vector<16x8xbf16>, vector<8x32xbf16>, vector<16x32xf32> -> vector<16x32xf32>
    %267 = arith.addf %240, %266 : vector<16x32xf32>
    %268 = vector.extract_strided_slice %180 {offsets = [0, 0, 24], sizes = [2, 8, 8], strides = [1, 1, 1]} : vector<2x8x32xf32> to vector<2x8x8xf32>
    %269 = vector.extract_strided_slice %181 {offsets = [0, 0, 24], sizes = [2, 8, 8], strides = [1, 1, 1]} : vector<2x8x32xf32> to vector<2x8x8xf32>
    %270 = arith.truncf %268 : vector<2x8x8xf32> to vector<2x8x8xbf16>
    %271 = arith.truncf %268 : vector<2x8x8xf32> to vector<2x8x8xbf16>
    "tpu.trace_start"() <{level = 10 : i32, message = "bqd,bkd->bqk"}> : () -> ()
    %cst_90 = arith.constant dense<0.000000e+00> : vector<2x8x8xf32>
    %272 = tpu.matmul %270, %271, %cst_90 {dimension_numbers = #tpu.dot_dimension_numbers<[2], [2], [1], [1], [0, 0, 0, 1, 1, 1], [0], [0]>} : vector<2x8x8xbf16>, vector<2x8x8xbf16>, vector<2x8x8xf32> -> vector<2x8x8xf32>
    "tpu.trace_stop"() : () -> ()
    %cst_91 = arith.constant 0.353553385 : f32
    %273 = vector.broadcast %cst_91 : f32 to vector<2x8x8xf32>
    %274 = arith.mulf %272, %273 : vector<2x8x8xf32>
    %275 = arith.addf %274, %187 : vector<2x8x8xf32>
    %cst_92 = arith.constant dense<0xFF800000> : vector<2x8xf32>
    %276 = vector.multi_reduction <maximumf>, %275, %cst_92 [2] : vector<2x8x8xf32> to vector<2x8xf32>
    %277 = vector.shape_cast %276 : vector<2x8xf32> to vector<2x8x1xf32>
    %278 = vector.broadcast %277 : vector<2x8x1xf32> to vector<2x8x8xf32>
    %279 = arith.subf %275, %278 : vector<2x8x8xf32>
    %280 = math.exp %279 : vector<2x8x8xf32>
    %cst_93 = arith.constant dense<0.000000e+00> : vector<2x8xf32>
    %281 = vector.multi_reduction <add>, %280, %cst_93 [2] : vector<2x8x8xf32> to vector<2x8xf32>
    %282 = vector.shape_cast %281 : vector<2x8xf32> to vector<2x8x1xf32>
    %283 = tpu.reciprocal %282 {approx = true} : vector<2x8x1xf32> -> vector<2x8x1xf32>
    %284 = vector.broadcast %283 : vector<2x8x1xf32> to vector<2x8x8xf32>
    %285 = arith.mulf %280, %284 : vector<2x8x8xf32>
    %286 = arith.truncf %285 : vector<2x8x8xf32> to vector<2x8x8xbf16>
    %287 = arith.truncf %269 : vector<2x8x8xf32> to vector<2x8x8xbf16>
    "tpu.trace_start"() <{level = 10 : i32, message = "bqk,bkd->bqd"}> : () -> ()
    %cst_94 = arith.constant dense<0.000000e+00> : vector<2x8x8xf32>
    %288 = tpu.matmul %286, %287, %cst_94 {dimension_numbers = #tpu.dot_dimension_numbers<[2], [1], [1], [2], [0, 0, 0, 1, 1, 2], [0], [0]>} : vector<2x8x8xbf16>, vector<2x8x8xbf16>, vector<2x8x8xf32> -> vector<2x8x8xf32>
    "tpu.trace_stop"() : () -> ()
    %289 = vector.shape_cast %288 : vector<2x8x8xf32> to vector<16x8xf32>
    %290 = vector.extract_strided_slice %168 {offsets = [24, 0], sizes = [8, 32], strides = [1, 1]} : vector<32x32xf32> to vector<8x32xf32>
    %291 = arith.truncf %289 : vector<16x8xf32> to vector<16x8xbf16>
    %292 = arith.truncf %290 : vector<8x32xf32> to vector<8x32xbf16>
    %cst_95 = arith.constant dense<0.000000e+00> : vector<16x32xf32>
    %293 = tpu.matmul %291, %292, %cst_95 {dimension_numbers = #tpu.dot_dimension_numbers<[1], [0], [0], [1], [0, 0, 1, 1], [], []>} : vector<16x8xbf16>, vector<8x32xbf16>, vector<16x32xf32> -> vector<16x32xf32>
    %294 = arith.addf %267, %293 : vector<16x32xf32>
    %295 = vector.broadcast %169 : vector<1x32xf32> to vector<16x32xf32>
    %296 = arith.addf %294, %295 : vector<16x32xf32>
    %297 = arith.addf %3, %296 : vector<16x32xf32>
    %c0_96 = arith.constant 0 : index
    %c0_97 = arith.constant 0 : index
    %298 = vector.load %arg18[%c0_96, %c0_97] : memref<1x32xf32, #tpu.memory_space<vmem>>, vector<1x32xf32>
    %c0_98 = arith.constant 0 : index
    %c0_99 = arith.constant 0 : index
    %299 = vector.load %arg19[%c0_98, %c0_99] : memref<1x32xf32, #tpu.memory_space<vmem>>, vector<1x32xf32>
    %cst_100 = arith.constant dense<0.000000e+00> : vector<16xf32>
    %300 = vector.multi_reduction <add>, %297, %cst_100 [1] : vector<16x32xf32> to vector<16xf32>
    %301 = vector.shape_cast %300 : vector<16xf32> to vector<16x1xf32>
    %cst_101 = arith.constant 3.200000e+01 : f32
    %302 = vector.broadcast %cst_101 : f32 to vector<16x1xf32>
    %303 = arith.divf %301, %302 : vector<16x1xf32>
    %304 = vector.broadcast %303 : vector<16x1xf32> to vector<16x32xf32>
    %305 = arith.subf %297, %304 : vector<16x32xf32>
    %306 = arith.mulf %305, %305 : vector<16x32xf32>
    %cst_102 = arith.constant dense<0.000000e+00> : vector<16xf32>
    %307 = vector.multi_reduction <add>, %306, %cst_102 [1] : vector<16x32xf32> to vector<16xf32>
    %308 = vector.shape_cast %307 : vector<16xf32> to vector<16x1xf32>
    %cst_103 = arith.constant 3.200000e+01 : f32
    %309 = vector.broadcast %cst_103 : f32 to vector<16x1xf32>
    %310 = arith.divf %308, %309 : vector<16x1xf32>
    %311 = vector.broadcast %303 : vector<16x1xf32> to vector<16x32xf32>
    %312 = arith.subf %297, %311 : vector<16x32xf32>
    %cst_104 = arith.constant 9.99999974E-6 : f32
    %313 = vector.broadcast %cst_104 : f32 to vector<16x1xf32>
    %314 = arith.addf %310, %313 : vector<16x1xf32>
    %315 = math.rsqrt %314 : vector<16x1xf32>
    %316 = vector.broadcast %315 : vector<16x1xf32> to vector<16x32xf32>
    %317 = arith.mulf %312, %316 : vector<16x32xf32>
    %318 = vector.broadcast %298 : vector<1x32xf32> to vector<16x32xf32>
    %319 = arith.mulf %317, %318 : vector<16x32xf32>
    %320 = vector.broadcast %299 : vector<1x32xf32> to vector<16x32xf32>
    %321 = arith.addf %319, %320 : vector<16x32xf32>
    %c0_105 = arith.constant 0 : index
    %c0_106 = arith.constant 0 : index
    %322 = vector.load %arg20[%c0_105, %c0_106] : memref<32x32xf32, #tpu.memory_space<vmem>>, vector<32x32xf32>
    %323 = arith.truncf %163 : vector<16x32xf32> to vector<16x32xbf16>
    %324 = arith.truncf %322 : vector<32x32xf32> to vector<32x32xbf16>
    %cst_107 = arith.constant dense<0.000000e+00> : vector<16x32xf32>
    %325 = tpu.matmul %323, %324, %cst_107 {dimension_numbers = #tpu.dot_dimension_numbers<[1], [0], [0], [1], [0, 0, 1, 1], [], []>} : vector<16x32xbf16>, vector<32x32xbf16>, vector<16x32xf32> -> vector<16x32xf32>
    %c0_108 = arith.constant 0 : index
    %c0_109 = arith.constant 0 : index
    %326 = vector.load %arg21[%c0_108, %c0_109] : memref<32x32xf32, #tpu.memory_space<vmem>>, vector<32x32xf32>
    %327 = arith.truncf %321 : vector<16x32xf32> to vector<16x32xbf16>
    %328 = arith.truncf %326 : vector<32x32xf32> to vector<32x32xbf16>
    %cst_110 = arith.constant dense<0.000000e+00> : vector<16x32xf32>
    %329 = tpu.matmul %327, %328, %cst_110 {dimension_numbers = #tpu.dot_dimension_numbers<[1], [0], [0], [1], [0, 0, 1, 1], [], []>} : vector<16x32xbf16>, vector<32x32xbf16>, vector<16x32xf32> -> vector<16x32xf32>
    %330 = arith.addf %325, %329 : vector<16x32xf32>
    %c0_111 = arith.constant 0 : index
    %c0_112 = arith.constant 0 : index
    %331 = vector.load %arg22[%c0_111, %c0_112] : memref<1x32xf32, #tpu.memory_space<vmem>>, vector<1x32xf32>
    %332 = vector.broadcast %331 : vector<1x32xf32> to vector<16x32xf32>
    %333 = arith.addf %330, %332 : vector<16x32xf32>
    %cst_113 = arith.constant 0.000000e+00 : f32
    %334 = vector.broadcast %cst_113 : f32 to vector<16x32xf32>
    %335 = arith.maximumf %333, %334 : vector<16x32xf32>
    %c0_114 = arith.constant 0 : index
    %c0_115 = arith.constant 0 : index
    %336 = vector.load %arg23[%c0_114, %c0_115] : memref<32x32xf32, #tpu.memory_space<vmem>>, vector<32x32xf32>
    %337 = arith.truncf %335 : vector<16x32xf32> to vector<16x32xbf16>
    %338 = arith.truncf %336 : vector<32x32xf32> to vector<32x32xbf16>
    %cst_116 = arith.constant dense<0.000000e+00> : vector<16x32xf32>
    %339 = tpu.matmul %337, %338, %cst_116 {dimension_numbers = #tpu.dot_dimension_numbers<[1], [0], [0], [1], [0, 0, 1, 1], [], []>} : vector<16x32xbf16>, vector<32x32xbf16>, vector<16x32xf32> -> vector<16x32xf32>
    %c0_117 = arith.constant 0 : index
    %c0_118 = arith.constant 0 : index
    %340 = vector.load %arg24[%c0_117, %c0_118] : memref<1x32xf32, #tpu.memory_space<vmem>>, vector<1x32xf32>
    %341 = vector.broadcast %340 : vector<1x32xf32> to vector<16x32xf32>
    %342 = arith.addf %339, %341 : vector<16x32xf32>
    %343 = vector.shape_cast %342 : vector<16x32xf32> to vector<2x8x32xf32>
    %c0_119 = arith.constant 0 : index
    %c0_120 = arith.constant 0 : index
    %c0_121 = arith.constant 0 : index
    %344 = vector.load %arg25[%c0_119, %c0_120, %c0_121] : memref<2x8x32xf32, #tpu.memory_space<vmem>>, vector<2x8x32xf32>
    tpu.vector_store %arg25[%c0_119, %c0_120, %c0_121], %343 {strides = array<i32>} : memref<2x8x32xf32, #tpu.memory_space<vmem>>, vector<2x8x32xf32>,
    return
  }
  func.func @transform_0(%arg0: i32) -> (i32, i32, i32) {
    %c0_i32 = arith.constant 0 : i32
    %c0_i32_0 = arith.constant 0 : i32
    %c0_i32_1 = arith.constant 0 : i32
    return %arg0, %c0_i32, %c0_i32_0 : i32, i32, i32
  }
  func.func @transform_1(%arg0: i32) -> (i32, i32, i32) {
    %c0_i32 = arith.constant 0 : i32
    %c0_i32_0 = arith.constant 0 : i32
    %c0_i32_1 = arith.constant 0 : i32
    return %arg0, %c0_i32, %c0_i32_0 : i32, i32, i32
  }
  func.func @transform_2(%arg0: i32) -> (i32, i32, i32) {
    %c0_i32 = arith.constant 0 : i32
    %c0_i32_0 = arith.constant 0 : i32
    %c0_i32_1 = arith.constant 0 : i32
    return %arg0, %c0_i32, %c0_i32_0 : i32, i32, i32
  }
  func.func @transform_3(%arg0: i32) -> (i32, i32) {
    %c0_i32 = arith.constant 0 : i32
    %c0_i32_0 = arith.constant 0 : i32
    %c0_i32_1 = arith.constant 0 : i32
    return %c0_i32, %c0_i32_0 : i32, i32
  }
  func.func @transform_4(%arg0: i32) -> (i32, i32) {
    %c0_i32 = arith.constant 0 : i32
    %c0_i32_0 = arith.constant 0 : i32
    %c0_i32_1 = arith.constant 0 : i32
    return %c0_i32, %c0_i32_0 : i32, i32
  }
  func.func @transform_5(%arg0: i32) -> (i32, i32) {
    %c0_i32 = arith.constant 0 : i32
    %c0_i32_0 = arith.constant 0 : i32
    %c0_i32_1 = arith.constant 0 : i32
    return %c0_i32, %c0_i32_0 : i32, i32
  }
  func.func @transform_6(%arg0: i32) -> (i32, i32) {
    %c0_i32 = arith.constant 0 : i32
    %c0_i32_0 = arith.constant 0 : i32
    %c0_i32_1 = arith.constant 0 : i32
    return %c0_i32, %c0_i32_0 : i32, i32
  }
  func.func @transform_7(%arg0: i32) -> (i32, i32) {
    %c0_i32 = arith.constant 0 : i32
    %c0_i32_0 = arith.constant 0 : i32
    %c0_i32_1 = arith.constant 0 : i32
    return %c0_i32, %c0_i32_0 : i32, i32
  }
  func.func @transform_8(%arg0: i32) -> (i32, i32) {
    %c0_i32 = arith.constant 0 : i32
    %c0_i32_0 = arith.constant 0 : i32
    %c0_i32_1 = arith.constant 0 : i32
    return %c0_i32, %c0_i32_0 : i32, i32
  }
  func.func @transform_9(%arg0: i32) -> (i32, i32) {
    %c0_i32 = arith.constant 0 : i32
    %c0_i32_0 = arith.constant 0 : i32
    %c0_i32_1 = arith.constant 0 : i32
    return %c0_i32, %c0_i32_0 : i32, i32
  }
  func.func @transform_10(%arg0: i32) -> (i32, i32) {
    %c0_i32 = arith.constant 0 : i32
    %c0_i32_0 = arith.constant 0 : i32
    %c0_i32_1 = arith.constant 0 : i32
    return %c0_i32, %c0_i32_0 : i32, i32
  }
  func.func @transform_11(%arg0: i32) -> (i32, i32) {
    %c0_i32 = arith.constant 0 : i32
    %c0_i32_0 = arith.constant 0 : i32
    %c0_i32_1 = arith.constant 0 : i32
    return %c0_i32, %c0_i32_0 : i32, i32
  }
  func.func @transform_12(%arg0: i32) -> (i32, i32) {
    %c0_i32 = arith.constant 0 : i32
    %c0_i32_0 = arith.constant 0 : i32
    %c0_i32_1 = arith.constant 0 : i32
    return %c0_i32, %c0_i32_0 : i32, i32
  }
  func.func @transform_13(%arg0: i32) -> (i32, i32) {
    %c0_i32 = arith.constant 0 : i32
    %c0_i32_0 = arith.constant 0 : i32
    %c0_i32_1 = arith.constant 0 : i32
    return %c0_i32, %c0_i32_0 : i32, i32
  }
  func.func @transform_14(%arg0: i32) -> (i32, i32) {
    %c0_i32 = arith.constant 0 : i32
    %c0_i32_0 = arith.constant 0 : i32
    %c0_i32_1 = arith.constant 0 : i32
    return %c0_i32, %c0_i32_0 : i32, i32
  }
  func.func @transform_15(%arg0: i32) -> (i32, i32) {
    %c0_i32 = arith.constant 0 : i32
    %c0_i32_0 = arith.constant 0 : i32
    %c0_i32_1 = arith.constant 0 : i32
    return %c0_i32, %c0_i32_0 : i32, i32
  }
  func.func @transform_16(%arg0: i32) -> (i32, i32) {
    %c0_i32 = arith.constant 0 : i32
    %c0_i32_0 = arith.constant 0 : i32
    %c0_i32_1 = arith.constant 0 : i32
    return %c0_i32, %c0_i32_0 : i32, i32
  }
  func.func @transform_17(%arg0: i32) -> (i32, i32) {
    %c0_i32 = arith.constant 0 : i32
    %c0_i32_0 = arith.constant 0 : i32
    %c0_i32_1 = arith.constant 0 : i32
    return %c0_i32, %c0_i32_0 : i32, i32
  }
  func.func @transform_18(%arg0: i32) -> (i32, i32) {
    %c0_i32 = arith.constant 0 : i32
    %c0_i32_0 = arith.constant 0 : i32
    %c0_i32_1 = arith.constant 0 : i32
    return %c0_i32, %c0_i32_0 : i32, i32
  }
  func.func @transform_19(%arg0: i32) -> (i32, i32) {
    %c0_i32 = arith.constant 0 : i32
    %c0_i32_0 = arith.constant 0 : i32
    %c0_i32_1 = arith.constant 0 : i32
    return %c0_i32, %c0_i32_0 : i32, i32
  }
  func.func @transform_20(%arg0: i32) -> (i32, i32) {
    %c0_i32 = arith.constant 0 : i32
    %c0_i32_0 = arith.constant 0 : i32
    %c0_i32_1 = arith.constant 0 : i32
    return %c0_i32, %c0_i32_0 : i32, i32
  }
  func.func @transform_21(%arg0: i32) -> (i32, i32) {
    %c0_i32 = arith.constant 0 : i32
    %c0_i32_0 = arith.constant 0 : i32
    %c0_i32_1 = arith.constant 0 : i32
    return %c0_i32, %c0_i32_0 : i32, i32
  }
  func.func @transform_22(%arg0: i32) -> (i32, i32) {
    %c0_i32 = arith.constant 0 : i32
    %c0_i32_0 = arith.constant 0 : i32
    %c0_i32_1 = arith.constant 0 : i32
    return %c0_i32, %c0_i32_0 : i32, i32
  }
  func.func @transform_23(%arg0: i32) -> (i32, i32) {
    %c0_i32 = arith.constant 0 : i32
    %c0_i32_0 = arith.constant 0 : i32
    %c0_i32_1 = arith.constant 0 : i32
    return %c0_i32, %c0_i32_0 : i32, i32
  }
  func.func @transform_24(%arg0: i32) -> (i32, i32, i32) {
    %c0_i32 = arith.constant 0 : i32
    %c0_i32_0 = arith.constant 0 : i32
    %c0_i32_1 = arith.constant 0 : i32
    return %arg0, %c0_i32, %c0_i32_0 : i32, i32, i32
  }
}

module attributes {stable_mosaic.version = 11 : i64} {
  func.func @_branch_kernel(%arg0: i32, %arg1: i32, %arg2: memref<1x2x8x32xf32, #tpu.memory_space<vmem>>, %arg3: memref<1x32x32xf32, #tpu.memory_space<vmem>>, %arg4: memref<1x1x32xf32, #tpu.memory_space<vmem>>, %arg5: memref<1x32x32xf32, #tpu.memory_space<vmem>>, %arg6: memref<1x1x32xf32, #tpu.memory_space<vmem>>, %arg7: memref<1x32x32xf32, #tpu.memory_space<vmem>>, %arg8: memref<1x1x32xf32, #tpu.memory_space<vmem>>, %arg9: memref<1x1x32xf32, #tpu.memory_space<vmem>>, %arg10: memref<1x1x32xf32, #tpu.memory_space<vmem>>, %arg11: memref<1x32x64xf32, #tpu.memory_space<vmem>>, %arg12: memref<1x1x64xf32, #tpu.memory_space<vmem>>, %arg13: memref<1x64x32xf32, #tpu.memory_space<vmem>>, %arg14: memref<1x1x32xf32, #tpu.memory_space<vmem>>, %arg15: memref<1x1x32xf32, #tpu.memory_space<vmem>>, %arg16: memref<1x1x32xf32, #tpu.memory_space<vmem>>, %arg17: memref<32x32xf32, #tpu.memory_space<vmem>>, %arg18: memref<1x32xf32, #tpu.memory_space<vmem>>, %arg19: memref<32x16xf32, #tpu.memory_space<vmem>>, %arg20: memref<1x16xf32, #tpu.memory_space<vmem>>, %arg21: memref<2x8x16xf32, #tpu.memory_space<vmem>>, %arg22: memref<16x32xf32, #tpu.memory_space<vmem>>) attributes {dimension_semantics = [#tpu.dimension_semantics<parallel>, #tpu.dimension_semantics<arbitrary>], iteration_bounds = array<i64: 1, 2>, scalar_prefetch = 0 : i64, scratch_operands = 1 : i64, tpu.core_type = #tpu.core_type<tc>, window_params = [{transform_indices = @transform_0, window_bounds = array<i64: 1, 2, 8, 32>}, {transform_indices = @transform_1, window_bounds = array<i64: 1, 32, 32>}, {transform_indices = @transform_2, window_bounds = array<i64: 1, 1, 32>}, {transform_indices = @transform_3, window_bounds = array<i64: 1, 32, 32>}, {transform_indices = @transform_4, window_bounds = array<i64: 1, 1, 32>}, {transform_indices = @transform_5, window_bounds = array<i64: 1, 32, 32>}, {transform_indices = @transform_6, window_bounds = array<i64: 1, 1, 32>}, {transform_indices = @transform_7, window_bounds = array<i64: 1, 1, 32>}, {transform_indices = @transform_8, window_bounds = array<i64: 1, 1, 32>}, {transform_indices = @transform_9, window_bounds = array<i64: 1, 32, 64>}, {transform_indices = @transform_10, window_bounds = array<i64: 1, 1, 64>}, {transform_indices = @transform_11, window_bounds = array<i64: 1, 64, 32>}, {transform_indices = @transform_12, window_bounds = array<i64: 1, 1, 32>}, {transform_indices = @transform_13, window_bounds = array<i64: 1, 1, 32>}, {transform_indices = @transform_14, window_bounds = array<i64: 1, 1, 32>}, {pipeline_mode = #tpu.pipeline_mode<synchronous>, transform_indices = @transform_15, window_bounds = array<i64: 32, 32>}, {pipeline_mode = #tpu.pipeline_mode<synchronous>, transform_indices = @transform_16, window_bounds = array<i64: 1, 32>}, {pipeline_mode = #tpu.pipeline_mode<synchronous>, transform_indices = @transform_17, window_bounds = array<i64: 32, 16>}, {pipeline_mode = #tpu.pipeline_mode<synchronous>, transform_indices = @transform_18, window_bounds = array<i64: 1, 16>}, {transform_indices = @transform_19, window_bounds = array<i64: 2, 8, 16>}]} {
    %c0 = arith.constant 0 : index
    %c0_0 = arith.constant 0 : index
    %c0_1 = arith.constant 0 : index
    %c0_2 = arith.constant 0 : index
    %0 = vector.load %arg2[%c0, %c0_0, %c0_1, %c0_2] : memref<1x2x8x32xf32, #tpu.memory_space<vmem>>, vector<1x2x8x32xf32>
    %1 = vector.shape_cast %0 : vector<1x2x8x32xf32> to vector<2x8x32xf32>
    %2 = vector.shape_cast %1 : vector<2x8x32xf32> to vector<16x32xf32>
    %c0_3 = arith.constant 0 : index
    %c0_4 = arith.constant 0 : index
    %c0_5 = arith.constant 0 : index
    %3 = vector.load %arg3[%c0_3, %c0_4, %c0_5] : memref<1x32x32xf32, #tpu.memory_space<vmem>>, vector<1x32x32xf32>
    %4 = vector.shape_cast %3 : vector<1x32x32xf32> to vector<32x32xf32>
    %c0_6 = arith.constant 0 : index
    %c0_7 = arith.constant 0 : index
    %c0_8 = arith.constant 0 : index
    %5 = vector.load %arg4[%c0_6, %c0_7, %c0_8] : memref<1x1x32xf32, #tpu.memory_space<vmem>>, vector<1x1x32xf32>
    %6 = vector.shape_cast %5 : vector<1x1x32xf32> to vector<1x32xf32>
    %c0_9 = arith.constant 0 : index
    %c0_10 = arith.constant 0 : index
    %c0_11 = arith.constant 0 : index
    %7 = vector.load %arg5[%c0_9, %c0_10, %c0_11] : memref<1x32x32xf32, #tpu.memory_space<vmem>>, vector<1x32x32xf32>
    %8 = vector.shape_cast %7 : vector<1x32x32xf32> to vector<32x32xf32>
    %c0_12 = arith.constant 0 : index
    %c0_13 = arith.constant 0 : index
    %c0_14 = arith.constant 0 : index
    %9 = vector.load %arg6[%c0_12, %c0_13, %c0_14] : memref<1x1x32xf32, #tpu.memory_space<vmem>>, vector<1x1x32xf32>
    %10 = vector.shape_cast %9 : vector<1x1x32xf32> to vector<1x32xf32>
    %c0_15 = arith.constant 0 : index
    %c0_16 = arith.constant 0 : index
    %c0_17 = arith.constant 0 : index
    %11 = vector.load %arg7[%c0_15, %c0_16, %c0_17] : memref<1x32x32xf32, #tpu.memory_space<vmem>>, vector<1x32x32xf32>
    %12 = vector.shape_cast %11 : vector<1x32x32xf32> to vector<32x32xf32>
    %c0_18 = arith.constant 0 : index
    %c0_19 = arith.constant 0 : index
    %c0_20 = arith.constant 0 : index
    %13 = vector.load %arg8[%c0_18, %c0_19, %c0_20] : memref<1x1x32xf32, #tpu.memory_space<vmem>>, vector<1x1x32xf32>
    %14 = vector.shape_cast %13 : vector<1x1x32xf32> to vector<1x32xf32>
    %15 = arith.truncf %2 : vector<16x32xf32> to vector<16x32xbf16>
    %16 = arith.truncf %4 : vector<32x32xf32> to vector<32x32xbf16>
    %cst = arith.constant dense<0.000000e+00> : vector<16x32xf32>
    %17 = tpu.matmul %15, %16, %cst {dimension_numbers = #tpu.dot_dimension_numbers<[1], [0], [0], [1], [0, 0, 1, 1], [], []>} : vector<16x32xbf16>, vector<32x32xbf16>, vector<16x32xf32> -> vector<16x32xf32>
    %18 = vector.broadcast %6 : vector<1x32xf32> to vector<16x32xf32>
    %19 = arith.addf %17, %18 : vector<16x32xf32>
    %20 = arith.truncf %2 : vector<16x32xf32> to vector<16x32xbf16>
    %21 = arith.truncf %8 : vector<32x32xf32> to vector<32x32xbf16>
    %cst_21 = arith.constant dense<0.000000e+00> : vector<16x32xf32>
    %22 = tpu.matmul %20, %21, %cst_21 {dimension_numbers = #tpu.dot_dimension_numbers<[1], [0], [0], [1], [0, 0, 1, 1], [], []>} : vector<16x32xbf16>, vector<32x32xbf16>, vector<16x32xf32> -> vector<16x32xf32>
    %23 = vector.broadcast %10 : vector<1x32xf32> to vector<16x32xf32>
    %24 = arith.addf %22, %23 : vector<16x32xf32>
    %25 = vector.shape_cast %19 : vector<16x32xf32> to vector<2x8x32xf32>
    %26 = vector.shape_cast %24 : vector<16x32xf32> to vector<2x8x32xf32>
    %27 = tpu.iota {dimensions = array<i32: 1>} : vector<2x8x8xi32>
    %28 = tpu.iota {dimensions = array<i32: 2>} : vector<2x8x8xi32>
    %29 = arith.cmpi sle, %28, %27 : vector<2x8x8xi32>
    %cst_22 = arith.constant 0.000000e+00 : f32
    %cst_23 = arith.constant -1.000000e+30 : f32
    %30 = vector.broadcast %cst_22 : f32 to vector<2x8x8xf32>
    %31 = vector.broadcast %cst_23 : f32 to vector<2x8x8xf32>
    %32 = arith.select %29, %30, %31 : vector<2x8x8xi1>, vector<2x8x8xf32>
    %33 = vector.extract_strided_slice %25 {offsets = [0, 0, 0], sizes = [2, 8, 8], strides = [1, 1, 1]} : vector<2x8x32xf32> to vector<2x8x8xf32>
    %34 = vector.extract_strided_slice %26 {offsets = [0, 0, 0], sizes = [2, 8, 8], strides = [1, 1, 1]} : vector<2x8x32xf32> to vector<2x8x8xf32>
    %35 = arith.truncf %33 : vector<2x8x8xf32> to vector<2x8x8xbf16>
    %36 = arith.truncf %33 : vector<2x8x8xf32> to vector<2x8x8xbf16>
    "tpu.trace_start"() <{level = 10 : i32, message = "bqd,bkd->bqk"}> : () -> ()
    %cst_24 = arith.constant dense<0.000000e+00> : vector<2x8x8xf32>
    %37 = tpu.matmul %35, %36, %cst_24 {dimension_numbers = #tpu.dot_dimension_numbers<[2], [2], [1], [1], [0, 0, 0, 1, 1, 1], [0], [0]>} : vector<2x8x8xbf16>, vector<2x8x8xbf16>, vector<2x8x8xf32> -> vector<2x8x8xf32>
    "tpu.trace_stop"() : () -> ()
    %cst_25 = arith.constant 0.353553385 : f32
    %38 = vector.broadcast %cst_25 : f32 to vector<2x8x8xf32>
    %39 = arith.mulf %37, %38 : vector<2x8x8xf32>
    %40 = arith.addf %39, %32 : vector<2x8x8xf32>
    %cst_26 = arith.constant dense<0xFF800000> : vector<2x8xf32>
    %41 = vector.multi_reduction <maximumf>, %40, %cst_26 [2] : vector<2x8x8xf32> to vector<2x8xf32>
    %42 = vector.shape_cast %41 : vector<2x8xf32> to vector<2x8x1xf32>
    %43 = vector.broadcast %42 : vector<2x8x1xf32> to vector<2x8x8xf32>
    %44 = arith.subf %40, %43 : vector<2x8x8xf32>
    %45 = math.exp %44 : vector<2x8x8xf32>
    %cst_27 = arith.constant dense<0.000000e+00> : vector<2x8xf32>
    %46 = vector.multi_reduction <add>, %45, %cst_27 [2] : vector<2x8x8xf32> to vector<2x8xf32>
    %47 = vector.shape_cast %46 : vector<2x8xf32> to vector<2x8x1xf32>
    %48 = tpu.reciprocal %47 {approx = true} : vector<2x8x1xf32> -> vector<2x8x1xf32>
    %49 = vector.broadcast %48 : vector<2x8x1xf32> to vector<2x8x8xf32>
    %50 = arith.mulf %45, %49 : vector<2x8x8xf32>
    %51 = arith.truncf %50 : vector<2x8x8xf32> to vector<2x8x8xbf16>
    %52 = arith.truncf %34 : vector<2x8x8xf32> to vector<2x8x8xbf16>
    "tpu.trace_start"() <{level = 10 : i32, message = "bqk,bkd->bqd"}> : () -> ()
    %cst_28 = arith.constant dense<0.000000e+00> : vector<2x8x8xf32>
    %53 = tpu.matmul %51, %52, %cst_28 {dimension_numbers = #tpu.dot_dimension_numbers<[2], [1], [1], [2], [0, 0, 0, 1, 1, 2], [0], [0]>} : vector<2x8x8xbf16>, vector<2x8x8xbf16>, vector<2x8x8xf32> -> vector<2x8x8xf32>
    "tpu.trace_stop"() : () -> ()
    %54 = vector.shape_cast %53 : vector<2x8x8xf32> to vector<16x8xf32>
    %55 = vector.extract_strided_slice %12 {offsets = [0, 0], sizes = [8, 32], strides = [1, 1]} : vector<32x32xf32> to vector<8x32xf32>
    %56 = arith.truncf %54 : vector<16x8xf32> to vector<16x8xbf16>
    %57 = arith.truncf %55 : vector<8x32xf32> to vector<8x32xbf16>
    %cst_29 = arith.constant dense<0.000000e+00> : vector<16x32xf32>
    %58 = tpu.matmul %56, %57, %cst_29 {dimension_numbers = #tpu.dot_dimension_numbers<[1], [0], [0], [1], [0, 0, 1, 1], [], []>} : vector<16x8xbf16>, vector<8x32xbf16>, vector<16x32xf32> -> vector<16x32xf32>
    %59 = vector.extract_strided_slice %25 {offsets = [0, 0, 8], sizes = [2, 8, 8], strides = [1, 1, 1]} : vector<2x8x32xf32> to vector<2x8x8xf32>
    %60 = vector.extract_strided_slice %26 {offsets = [0, 0, 8], sizes = [2, 8, 8], strides = [1, 1, 1]} : vector<2x8x32xf32> to vector<2x8x8xf32>
    %61 = arith.truncf %59 : vector<2x8x8xf32> to vector<2x8x8xbf16>
    %62 = arith.truncf %59 : vector<2x8x8xf32> to vector<2x8x8xbf16>
    "tpu.trace_start"() <{level = 10 : i32, message = "bqd,bkd->bqk"}> : () -> ()
    %cst_30 = arith.constant dense<0.000000e+00> : vector<2x8x8xf32>
    %63 = tpu.matmul %61, %62, %cst_30 {dimension_numbers = #tpu.dot_dimension_numbers<[2], [2], [1], [1], [0, 0, 0, 1, 1, 1], [0], [0]>} : vector<2x8x8xbf16>, vector<2x8x8xbf16>, vector<2x8x8xf32> -> vector<2x8x8xf32>
    "tpu.trace_stop"() : () -> ()
    %cst_31 = arith.constant 0.353553385 : f32
    %64 = vector.broadcast %cst_31 : f32 to vector<2x8x8xf32>
    %65 = arith.mulf %63, %64 : vector<2x8x8xf32>
    %66 = arith.addf %65, %32 : vector<2x8x8xf32>
    %cst_32 = arith.constant dense<0xFF800000> : vector<2x8xf32>
    %67 = vector.multi_reduction <maximumf>, %66, %cst_32 [2] : vector<2x8x8xf32> to vector<2x8xf32>
    %68 = vector.shape_cast %67 : vector<2x8xf32> to vector<2x8x1xf32>
    %69 = vector.broadcast %68 : vector<2x8x1xf32> to vector<2x8x8xf32>
    %70 = arith.subf %66, %69 : vector<2x8x8xf32>
    %71 = math.exp %70 : vector<2x8x8xf32>
    %cst_33 = arith.constant dense<0.000000e+00> : vector<2x8xf32>
    %72 = vector.multi_reduction <add>, %71, %cst_33 [2] : vector<2x8x8xf32> to vector<2x8xf32>
    %73 = vector.shape_cast %72 : vector<2x8xf32> to vector<2x8x1xf32>
    %74 = tpu.reciprocal %73 {approx = true} : vector<2x8x1xf32> -> vector<2x8x1xf32>
    %75 = vector.broadcast %74 : vector<2x8x1xf32> to vector<2x8x8xf32>
    %76 = arith.mulf %71, %75 : vector<2x8x8xf32>
    %77 = arith.truncf %76 : vector<2x8x8xf32> to vector<2x8x8xbf16>
    %78 = arith.truncf %60 : vector<2x8x8xf32> to vector<2x8x8xbf16>
    "tpu.trace_start"() <{level = 10 : i32, message = "bqk,bkd->bqd"}> : () -> ()
    %cst_34 = arith.constant dense<0.000000e+00> : vector<2x8x8xf32>
    %79 = tpu.matmul %77, %78, %cst_34 {dimension_numbers = #tpu.dot_dimension_numbers<[2], [1], [1], [2], [0, 0, 0, 1, 1, 2], [0], [0]>} : vector<2x8x8xbf16>, vector<2x8x8xbf16>, vector<2x8x8xf32> -> vector<2x8x8xf32>
    "tpu.trace_stop"() : () -> ()
    %80 = vector.shape_cast %79 : vector<2x8x8xf32> to vector<16x8xf32>
    %81 = vector.extract_strided_slice %12 {offsets = [8, 0], sizes = [8, 32], strides = [1, 1]} : vector<32x32xf32> to vector<8x32xf32>
    %82 = arith.truncf %80 : vector<16x8xf32> to vector<16x8xbf16>
    %83 = arith.truncf %81 : vector<8x32xf32> to vector<8x32xbf16>
    %cst_35 = arith.constant dense<0.000000e+00> : vector<16x32xf32>
    %84 = tpu.matmul %82, %83, %cst_35 {dimension_numbers = #tpu.dot_dimension_numbers<[1], [0], [0], [1], [0, 0, 1, 1], [], []>} : vector<16x8xbf16>, vector<8x32xbf16>, vector<16x32xf32> -> vector<16x32xf32>
    %85 = arith.addf %58, %84 : vector<16x32xf32>
    %86 = vector.extract_strided_slice %25 {offsets = [0, 0, 16], sizes = [2, 8, 8], strides = [1, 1, 1]} : vector<2x8x32xf32> to vector<2x8x8xf32>
    %87 = vector.extract_strided_slice %26 {offsets = [0, 0, 16], sizes = [2, 8, 8], strides = [1, 1, 1]} : vector<2x8x32xf32> to vector<2x8x8xf32>
    %88 = arith.truncf %86 : vector<2x8x8xf32> to vector<2x8x8xbf16>
    %89 = arith.truncf %86 : vector<2x8x8xf32> to vector<2x8x8xbf16>
    "tpu.trace_start"() <{level = 10 : i32, message = "bqd,bkd->bqk"}> : () -> ()
    %cst_36 = arith.constant dense<0.000000e+00> : vector<2x8x8xf32>
    %90 = tpu.matmul %88, %89, %cst_36 {dimension_numbers = #tpu.dot_dimension_numbers<[2], [2], [1], [1], [0, 0, 0, 1, 1, 1], [0], [0]>} : vector<2x8x8xbf16>, vector<2x8x8xbf16>, vector<2x8x8xf32> -> vector<2x8x8xf32>
    "tpu.trace_stop"() : () -> ()
    %cst_37 = arith.constant 0.353553385 : f32
    %91 = vector.broadcast %cst_37 : f32 to vector<2x8x8xf32>
    %92 = arith.mulf %90, %91 : vector<2x8x8xf32>
    %93 = arith.addf %92, %32 : vector<2x8x8xf32>
    %cst_38 = arith.constant dense<0xFF800000> : vector<2x8xf32>
    %94 = vector.multi_reduction <maximumf>, %93, %cst_38 [2] : vector<2x8x8xf32> to vector<2x8xf32>
    %95 = vector.shape_cast %94 : vector<2x8xf32> to vector<2x8x1xf32>
    %96 = vector.broadcast %95 : vector<2x8x1xf32> to vector<2x8x8xf32>
    %97 = arith.subf %93, %96 : vector<2x8x8xf32>
    %98 = math.exp %97 : vector<2x8x8xf32>
    %cst_39 = arith.constant dense<0.000000e+00> : vector<2x8xf32>
    %99 = vector.multi_reduction <add>, %98, %cst_39 [2] : vector<2x8x8xf32> to vector<2x8xf32>
    %100 = vector.shape_cast %99 : vector<2x8xf32> to vector<2x8x1xf32>
    %101 = tpu.reciprocal %100 {approx = true} : vector<2x8x1xf32> -> vector<2x8x1xf32>
    %102 = vector.broadcast %101 : vector<2x8x1xf32> to vector<2x8x8xf32>
    %103 = arith.mulf %98, %102 : vector<2x8x8xf32>
    %104 = arith.truncf %103 : vector<2x8x8xf32> to vector<2x8x8xbf16>
    %105 = arith.truncf %87 : vector<2x8x8xf32> to vector<2x8x8xbf16>
    "tpu.trace_start"() <{level = 10 : i32, message = "bqk,bkd->bqd"}> : () -> ()
    %cst_40 = arith.constant dense<0.000000e+00> : vector<2x8x8xf32>
    %106 = tpu.matmul %104, %105, %cst_40 {dimension_numbers = #tpu.dot_dimension_numbers<[2], [1], [1], [2], [0, 0, 0, 1, 1, 2], [0], [0]>} : vector<2x8x8xbf16>, vector<2x8x8xbf16>, vector<2x8x8xf32> -> vector<2x8x8xf32>
    "tpu.trace_stop"() : () -> ()
    %107 = vector.shape_cast %106 : vector<2x8x8xf32> to vector<16x8xf32>
    %108 = vector.extract_strided_slice %12 {offsets = [16, 0], sizes = [8, 32], strides = [1, 1]} : vector<32x32xf32> to vector<8x32xf32>
    %109 = arith.truncf %107 : vector<16x8xf32> to vector<16x8xbf16>
    %110 = arith.truncf %108 : vector<8x32xf32> to vector<8x32xbf16>
    %cst_41 = arith.constant dense<0.000000e+00> : vector<16x32xf32>
    %111 = tpu.matmul %109, %110, %cst_41 {dimension_numbers = #tpu.dot_dimension_numbers<[1], [0], [0], [1], [0, 0, 1, 1], [], []>} : vector<16x8xbf16>, vector<8x32xbf16>, vector<16x32xf32> -> vector<16x32xf32>
    %112 = arith.addf %85, %111 : vector<16x32xf32>
    %113 = vector.extract_strided_slice %25 {offsets = [0, 0, 24], sizes = [2, 8, 8], strides = [1, 1, 1]} : vector<2x8x32xf32> to vector<2x8x8xf32>
    %114 = vector.extract_strided_slice %26 {offsets = [0, 0, 24], sizes = [2, 8, 8], strides = [1, 1, 1]} : vector<2x8x32xf32> to vector<2x8x8xf32>
    %115 = arith.truncf %113 : vector<2x8x8xf32> to vector<2x8x8xbf16>
    %116 = arith.truncf %113 : vector<2x8x8xf32> to vector<2x8x8xbf16>
    "tpu.trace_start"() <{level = 10 : i32, message = "bqd,bkd->bqk"}> : () -> ()
    %cst_42 = arith.constant dense<0.000000e+00> : vector<2x8x8xf32>
    %117 = tpu.matmul %115, %116, %cst_42 {dimension_numbers = #tpu.dot_dimension_numbers<[2], [2], [1], [1], [0, 0, 0, 1, 1, 1], [0], [0]>} : vector<2x8x8xbf16>, vector<2x8x8xbf16>, vector<2x8x8xf32> -> vector<2x8x8xf32>
    "tpu.trace_stop"() : () -> ()
    %cst_43 = arith.constant 0.353553385 : f32
    %118 = vector.broadcast %cst_43 : f32 to vector<2x8x8xf32>
    %119 = arith.mulf %117, %118 : vector<2x8x8xf32>
    %120 = arith.addf %119, %32 : vector<2x8x8xf32>
    %cst_44 = arith.constant dense<0xFF800000> : vector<2x8xf32>
    %121 = vector.multi_reduction <maximumf>, %120, %cst_44 [2] : vector<2x8x8xf32> to vector<2x8xf32>
    %122 = vector.shape_cast %121 : vector<2x8xf32> to vector<2x8x1xf32>
    %123 = vector.broadcast %122 : vector<2x8x1xf32> to vector<2x8x8xf32>
    %124 = arith.subf %120, %123 : vector<2x8x8xf32>
    %125 = math.exp %124 : vector<2x8x8xf32>
    %cst_45 = arith.constant dense<0.000000e+00> : vector<2x8xf32>
    %126 = vector.multi_reduction <add>, %125, %cst_45 [2] : vector<2x8x8xf32> to vector<2x8xf32>
    %127 = vector.shape_cast %126 : vector<2x8xf32> to vector<2x8x1xf32>
    %128 = tpu.reciprocal %127 {approx = true} : vector<2x8x1xf32> -> vector<2x8x1xf32>
    %129 = vector.broadcast %128 : vector<2x8x1xf32> to vector<2x8x8xf32>
    %130 = arith.mulf %125, %129 : vector<2x8x8xf32>
    %131 = arith.truncf %130 : vector<2x8x8xf32> to vector<2x8x8xbf16>
    %132 = arith.truncf %114 : vector<2x8x8xf32> to vector<2x8x8xbf16>
    "tpu.trace_start"() <{level = 10 : i32, message = "bqk,bkd->bqd"}> : () -> ()
    %cst_46 = arith.constant dense<0.000000e+00> : vector<2x8x8xf32>
    %133 = tpu.matmul %131, %132, %cst_46 {dimension_numbers = #tpu.dot_dimension_numbers<[2], [1], [1], [2], [0, 0, 0, 1, 1, 2], [0], [0]>} : vector<2x8x8xbf16>, vector<2x8x8xbf16>, vector<2x8x8xf32> -> vector<2x8x8xf32>
    "tpu.trace_stop"() : () -> ()
    %134 = vector.shape_cast %133 : vector<2x8x8xf32> to vector<16x8xf32>
    %135 = vector.extract_strided_slice %12 {offsets = [24, 0], sizes = [8, 32], strides = [1, 1]} : vector<32x32xf32> to vector<8x32xf32>
    %136 = arith.truncf %134 : vector<16x8xf32> to vector<16x8xbf16>
    %137 = arith.truncf %135 : vector<8x32xf32> to vector<8x32xbf16>
    %cst_47 = arith.constant dense<0.000000e+00> : vector<16x32xf32>
    %138 = tpu.matmul %136, %137, %cst_47 {dimension_numbers = #tpu.dot_dimension_numbers<[1], [0], [0], [1], [0, 0, 1, 1], [], []>} : vector<16x8xbf16>, vector<8x32xbf16>, vector<16x32xf32> -> vector<16x32xf32>
    %139 = arith.addf %112, %138 : vector<16x32xf32>
    %140 = vector.broadcast %14 : vector<1x32xf32> to vector<16x32xf32>
    %141 = arith.addf %139, %140 : vector<16x32xf32>
    %142 = arith.addf %2, %141 : vector<16x32xf32>
    %c0_48 = arith.constant 0 : index
    %c0_49 = arith.constant 0 : index
    %c0_50 = arith.constant 0 : index
    %143 = vector.load %arg9[%c0_48, %c0_49, %c0_50] : memref<1x1x32xf32, #tpu.memory_space<vmem>>, vector<1x1x32xf32>
    %144 = vector.shape_cast %143 : vector<1x1x32xf32> to vector<1x32xf32>
    %c0_51 = arith.constant 0 : index
    %c0_52 = arith.constant 0 : index
    %c0_53 = arith.constant 0 : index
    %145 = vector.load %arg10[%c0_51, %c0_52, %c0_53] : memref<1x1x32xf32, #tpu.memory_space<vmem>>, vector<1x1x32xf32>
    %146 = vector.shape_cast %145 : vector<1x1x32xf32> to vector<1x32xf32>
    %cst_54 = arith.constant dense<0.000000e+00> : vector<16xf32>
    %147 = vector.multi_reduction <add>, %142, %cst_54 [1] : vector<16x32xf32> to vector<16xf32>
    %148 = vector.shape_cast %147 : vector<16xf32> to vector<16x1xf32>
    %cst_55 = arith.constant 3.200000e+01 : f32
    %149 = vector.broadcast %cst_55 : f32 to vector<16x1xf32>
    %150 = arith.divf %148, %149 : vector<16x1xf32>
    %151 = vector.broadcast %150 : vector<16x1xf32> to vector<16x32xf32>
    %152 = arith.subf %142, %151 : vector<16x32xf32>
    %153 = arith.mulf %152, %152 : vector<16x32xf32>
    %cst_56 = arith.constant dense<0.000000e+00> : vector<16xf32>
    %154 = vector.multi_reduction <add>, %153, %cst_56 [1] : vector<16x32xf32> to vector<16xf32>
    %155 = vector.shape_cast %154 : vector<16xf32> to vector<16x1xf32>
    %cst_57 = arith.constant 3.200000e+01 : f32
    %156 = vector.broadcast %cst_57 : f32 to vector<16x1xf32>
    %157 = arith.divf %155, %156 : vector<16x1xf32>
    %158 = vector.broadcast %150 : vector<16x1xf32> to vector<16x32xf32>
    %159 = arith.subf %142, %158 : vector<16x32xf32>
    %cst_58 = arith.constant 9.99999974E-6 : f32
    %160 = vector.broadcast %cst_58 : f32 to vector<16x1xf32>
    %161 = arith.addf %157, %160 : vector<16x1xf32>
    %162 = math.rsqrt %161 : vector<16x1xf32>
    %163 = vector.broadcast %162 : vector<16x1xf32> to vector<16x32xf32>
    %164 = arith.mulf %159, %163 : vector<16x32xf32>
    %165 = vector.broadcast %144 : vector<1x32xf32> to vector<16x32xf32>
    %166 = arith.mulf %164, %165 : vector<16x32xf32>
    %167 = vector.broadcast %146 : vector<1x32xf32> to vector<16x32xf32>
    %168 = arith.addf %166, %167 : vector<16x32xf32>
    %c0_59 = arith.constant 0 : index
    %c0_60 = arith.constant 0 : index
    %c0_61 = arith.constant 0 : index
    %169 = vector.load %arg11[%c0_59, %c0_60, %c0_61] : memref<1x32x64xf32, #tpu.memory_space<vmem>>, vector<1x32x64xf32>
    %170 = vector.shape_cast %169 : vector<1x32x64xf32> to vector<32x64xf32>
    %171 = arith.truncf %168 : vector<16x32xf32> to vector<16x32xbf16>
    %172 = arith.truncf %170 : vector<32x64xf32> to vector<32x64xbf16>
    %cst_62 = arith.constant dense<0.000000e+00> : vector<16x64xf32>
    %173 = tpu.matmul %171, %172, %cst_62 {dimension_numbers = #tpu.dot_dimension_numbers<[1], [0], [0], [1], [0, 0, 1, 1], [], []>} : vector<16x32xbf16>, vector<32x64xbf16>, vector<16x64xf32> -> vector<16x64xf32>
    %c0_63 = arith.constant 0 : index
    %c0_64 = arith.constant 0 : index
    %c0_65 = arith.constant 0 : index
    %174 = vector.load %arg12[%c0_63, %c0_64, %c0_65] : memref<1x1x64xf32, #tpu.memory_space<vmem>>, vector<1x1x64xf32>
    %175 = vector.shape_cast %174 : vector<1x1x64xf32> to vector<1x64xf32>
    %176 = vector.broadcast %175 : vector<1x64xf32> to vector<16x64xf32>
    %177 = arith.addf %173, %176 : vector<16x64xf32>
    %cst_66 = arith.constant 0.000000e+00 : f32
    %178 = vector.broadcast %cst_66 : f32 to vector<16x64xf32>
    %179 = arith.maximumf %177, %178 : vector<16x64xf32>
    %c0_67 = arith.constant 0 : index
    %c0_68 = arith.constant 0 : index
    %c0_69 = arith.constant 0 : index
    %180 = vector.load %arg13[%c0_67, %c0_68, %c0_69] : memref<1x64x32xf32, #tpu.memory_space<vmem>>, vector<1x64x32xf32>
    %181 = vector.shape_cast %180 : vector<1x64x32xf32> to vector<64x32xf32>
    %182 = arith.truncf %179 : vector<16x64xf32> to vector<16x64xbf16>
    %183 = arith.truncf %181 : vector<64x32xf32> to vector<64x32xbf16>
    %cst_70 = arith.constant dense<0.000000e+00> : vector<16x32xf32>
    %184 = tpu.matmul %182, %183, %cst_70 {dimension_numbers = #tpu.dot_dimension_numbers<[1], [0], [0], [1], [0, 0, 1, 1], [], []>} : vector<16x64xbf16>, vector<64x32xbf16>, vector<16x32xf32> -> vector<16x32xf32>
    %185 = arith.addf %168, %184 : vector<16x32xf32>
    %c0_71 = arith.constant 0 : index
    %c0_72 = arith.constant 0 : index
    %c0_73 = arith.constant 0 : index
    %186 = vector.load %arg14[%c0_71, %c0_72, %c0_73] : memref<1x1x32xf32, #tpu.memory_space<vmem>>, vector<1x1x32xf32>
    %187 = vector.shape_cast %186 : vector<1x1x32xf32> to vector<1x32xf32>
    %188 = vector.broadcast %187 : vector<1x32xf32> to vector<16x32xf32>
    %189 = arith.addf %185, %188 : vector<16x32xf32>
    %c0_74 = arith.constant 0 : index
    %c0_75 = arith.constant 0 : index
    %c0_76 = arith.constant 0 : index
    %190 = vector.load %arg15[%c0_74, %c0_75, %c0_76] : memref<1x1x32xf32, #tpu.memory_space<vmem>>, vector<1x1x32xf32>
    %191 = vector.shape_cast %190 : vector<1x1x32xf32> to vector<1x32xf32>
    %c0_77 = arith.constant 0 : index
    %c0_78 = arith.constant 0 : index
    %c0_79 = arith.constant 0 : index
    %192 = vector.load %arg16[%c0_77, %c0_78, %c0_79] : memref<1x1x32xf32, #tpu.memory_space<vmem>>, vector<1x1x32xf32>
    %193 = vector.shape_cast %192 : vector<1x1x32xf32> to vector<1x32xf32>
    %cst_80 = arith.constant dense<0.000000e+00> : vector<16xf32>
    %194 = vector.multi_reduction <add>, %189, %cst_80 [1] : vector<16x32xf32> to vector<16xf32>
    %195 = vector.shape_cast %194 : vector<16xf32> to vector<16x1xf32>
    %cst_81 = arith.constant 3.200000e+01 : f32
    %196 = vector.broadcast %cst_81 : f32 to vector<16x1xf32>
    %197 = arith.divf %195, %196 : vector<16x1xf32>
    %198 = vector.broadcast %197 : vector<16x1xf32> to vector<16x32xf32>
    %199 = arith.subf %189, %198 : vector<16x32xf32>
    %200 = arith.mulf %199, %199 : vector<16x32xf32>
    %cst_82 = arith.constant dense<0.000000e+00> : vector<16xf32>
    %201 = vector.multi_reduction <add>, %200, %cst_82 [1] : vector<16x32xf32> to vector<16xf32>
    %202 = vector.shape_cast %201 : vector<16xf32> to vector<16x1xf32>
    %cst_83 = arith.constant 3.200000e+01 : f32
    %203 = vector.broadcast %cst_83 : f32 to vector<16x1xf32>
    %204 = arith.divf %202, %203 : vector<16x1xf32>
    %205 = vector.broadcast %197 : vector<16x1xf32> to vector<16x32xf32>
    %206 = arith.subf %189, %205 : vector<16x32xf32>
    %cst_84 = arith.constant 9.99999974E-6 : f32
    %207 = vector.broadcast %cst_84 : f32 to vector<16x1xf32>
    %208 = arith.addf %204, %207 : vector<16x1xf32>
    %209 = math.rsqrt %208 : vector<16x1xf32>
    %210 = vector.broadcast %209 : vector<16x1xf32> to vector<16x32xf32>
    %211 = arith.mulf %206, %210 : vector<16x32xf32>
    %212 = vector.broadcast %191 : vector<1x32xf32> to vector<16x32xf32>
    %213 = arith.mulf %211, %212 : vector<16x32xf32>
    %214 = vector.broadcast %193 : vector<1x32xf32> to vector<16x32xf32>
    %215 = arith.addf %213, %214 : vector<16x32xf32>
    %c0_i32 = arith.constant 0 : i32
    %216 = arith.cmpi eq, %arg1, %c0_i32 : i32
    %217 = arith.extui %216 : i1 to i32
    %c0_i32_85 = arith.constant 0 : i32
    %218 = arith.cmpi ne, %217, %c0_i32_85 : i32
    scf.if %218 {
      %cst_91 = arith.constant 0.000000e+00 : f32
      %225 = vector.broadcast %cst_91 : f32 to vector<16x32xf32>
      %c0_92 = arith.constant 0 : index
      %c0_93 = arith.constant 0 : index
      %226 = vector.load %arg22[%c0_92, %c0_93] : memref<16x32xf32, #tpu.memory_space<vmem>>, vector<16x32xf32>
      tpu.vector_store %arg22[%c0_92, %c0_93], %225 {strides = array<i32>} : memref<16x32xf32, #tpu.memory_space<vmem>>, vector<16x32xf32>,
    } else {
    }
    %c0_86 = arith.constant 0 : index
    %c0_87 = arith.constant 0 : index
    %219 = vector.load %arg22[%c0_86, %c0_87] : memref<16x32xf32, #tpu.memory_space<vmem>>, vector<16x32xf32>
    %220 = arith.addf %219, %215 : vector<16x32xf32>
    %c0_88 = arith.constant 0 : index
    %c0_89 = arith.constant 0 : index
    %221 = vector.load %arg22[%c0_88, %c0_89] : memref<16x32xf32, #tpu.memory_space<vmem>>, vector<16x32xf32>
    tpu.vector_store %arg22[%c0_88, %c0_89], %220 {strides = array<i32>} : memref<16x32xf32, #tpu.memory_space<vmem>>, vector<16x32xf32>,
    %c1_i32 = arith.constant 1 : i32
    %222 = arith.cmpi eq, %arg1, %c1_i32 : i32
    %223 = arith.extui %222 : i1 to i32
    %c0_i32_90 = arith.constant 0 : i32
    %224 = arith.cmpi ne, %223, %c0_i32_90 : i32
    scf.if %224 {
      %c0_91 = arith.constant 0 : index
      %c0_92 = arith.constant 0 : index
      %225 = vector.load %arg22[%c0_91, %c0_92] : memref<16x32xf32, #tpu.memory_space<vmem>>, vector<16x32xf32>
      %cst_93 = arith.constant 5.000000e-01 : f32
      %226 = vector.broadcast %cst_93 : f32 to vector<16x32xf32>
      %227 = arith.mulf %225, %226 : vector<16x32xf32>
      %c0_94 = arith.constant 0 : index
      %c0_95 = arith.constant 0 : index
      %228 = vector.load %arg17[%c0_94, %c0_95] : memref<32x32xf32, #tpu.memory_space<vmem>>, vector<32x32xf32>
      %229 = arith.truncf %227 : vector<16x32xf32> to vector<16x32xbf16>
      %230 = arith.truncf %228 : vector<32x32xf32> to vector<32x32xbf16>
      %cst_96 = arith.constant dense<0.000000e+00> : vector<16x32xf32>
      %231 = tpu.matmul %229, %230, %cst_96 {dimension_numbers = #tpu.dot_dimension_numbers<[1], [0], [0], [1], [0, 0, 1, 1], [], []>} : vector<16x32xbf16>, vector<32x32xbf16>, vector<16x32xf32> -> vector<16x32xf32>
      %c0_97 = arith.constant 0 : index
      %c0_98 = arith.constant 0 : index
      %232 = vector.load %arg18[%c0_97, %c0_98] : memref<1x32xf32, #tpu.memory_space<vmem>>, vector<1x32xf32>
      %233 = vector.broadcast %232 : vector<1x32xf32> to vector<16x32xf32>
      %234 = arith.addf %231, %233 : vector<16x32xf32>
      %cst_99 = arith.constant 0.000000e+00 : f32
      %235 = vector.broadcast %cst_99 : f32 to vector<16x32xf32>
      %236 = arith.maximumf %234, %235 : vector<16x32xf32>
      %c0_100 = arith.constant 0 : index
      %c0_101 = arith.constant 0 : index
      %237 = vector.load %arg19[%c0_100, %c0_101] : memref<32x16xf32, #tpu.memory_space<vmem>>, vector<32x16xf32>
      %238 = arith.truncf %236 : vector<16x32xf32> to vector<16x32xbf16>
      %239 = arith.truncf %237 : vector<32x16xf32> to vector<32x16xbf16>
      %cst_102 = arith.constant dense<0.000000e+00> : vector<16x16xf32>
      %240 = tpu.matmul %238, %239, %cst_102 {dimension_numbers = #tpu.dot_dimension_numbers<[1], [0], [0], [1], [0, 0, 1, 1], [], []>} : vector<16x32xbf16>, vector<32x16xbf16>, vector<16x16xf32> -> vector<16x16xf32>
      %c0_103 = arith.constant 0 : index
      %c0_104 = arith.constant 0 : index
      %241 = vector.load %arg20[%c0_103, %c0_104] : memref<1x16xf32, #tpu.memory_space<vmem>>, vector<1x16xf32>
      %242 = vector.broadcast %241 : vector<1x16xf32> to vector<16x16xf32>
      %243 = arith.addf %240, %242 : vector<16x16xf32>
      %cst_105 = arith.constant 5.000000e-01 : f32
      %244 = vector.broadcast %cst_105 : f32 to vector<16x16xf32>
      %245 = arith.mulf %244, %243 : vector<16x16xf32>
      %246 = math.tanh %245 : vector<16x16xf32>
      %cst_106 = arith.constant 1.000000e+00 : f32
      %247 = vector.broadcast %cst_106 : f32 to vector<16x16xf32>
      %248 = arith.addf %246, %247 : vector<16x16xf32>
      %cst_107 = arith.constant 5.000000e-01 : f32
      %249 = vector.broadcast %cst_107 : f32 to vector<16x16xf32>
      %250 = arith.mulf %249, %248 : vector<16x16xf32>
      %251 = vector.shape_cast %250 : vector<16x16xf32> to vector<2x8x16xf32>
      %c0_108 = arith.constant 0 : index
      %c0_109 = arith.constant 0 : index
      %c0_110 = arith.constant 0 : index
      %252 = vector.load %arg21[%c0_108, %c0_109, %c0_110] : memref<2x8x16xf32, #tpu.memory_space<vmem>>, vector<2x8x16xf32>
      tpu.vector_store %arg21[%c0_108, %c0_109, %c0_110], %251 {strides = array<i32>} : memref<2x8x16xf32, #tpu.memory_space<vmem>>, vector<2x8x16xf32>,
    } else {
    }
    return
  }
  func.func @transform_0(%arg0: i32, %arg1: i32) -> (i32, i32, i32, i32) {
    %c0_i32 = arith.constant 0 : i32
    %c0_i32_0 = arith.constant 0 : i32
    %c0_i32_1 = arith.constant 0 : i32
    return %arg1, %arg0, %c0_i32, %c0_i32_0 : i32, i32, i32, i32
  }
  func.func @transform_1(%arg0: i32, %arg1: i32) -> (i32, i32, i32) {
    %c0_i32 = arith.constant 0 : i32
    %c0_i32_0 = arith.constant 0 : i32
    %c0_i32_1 = arith.constant 0 : i32
    return %arg1, %c0_i32, %c0_i32_0 : i32, i32, i32
  }
  func.func @transform_2(%arg0: i32, %arg1: i32) -> (i32, i32, i32) {
    %c0_i32 = arith.constant 0 : i32
    %c0_i32_0 = arith.constant 0 : i32
    %c0_i32_1 = arith.constant 0 : i32
    return %arg1, %c0_i32, %c0_i32_0 : i32, i32, i32
  }
  func.func @transform_3(%arg0: i32, %arg1: i32) -> (i32, i32, i32) {
    %c0_i32 = arith.constant 0 : i32
    %c0_i32_0 = arith.constant 0 : i32
    %c0_i32_1 = arith.constant 0 : i32
    return %arg1, %c0_i32, %c0_i32_0 : i32, i32, i32
  }
  func.func @transform_4(%arg0: i32, %arg1: i32) -> (i32, i32, i32) {
    %c0_i32 = arith.constant 0 : i32
    %c0_i32_0 = arith.constant 0 : i32
    %c0_i32_1 = arith.constant 0 : i32
    return %arg1, %c0_i32, %c0_i32_0 : i32, i32, i32
  }
  func.func @transform_5(%arg0: i32, %arg1: i32) -> (i32, i32, i32) {
    %c0_i32 = arith.constant 0 : i32
    %c0_i32_0 = arith.constant 0 : i32
    %c0_i32_1 = arith.constant 0 : i32
    return %arg1, %c0_i32, %c0_i32_0 : i32, i32, i32
  }
  func.func @transform_6(%arg0: i32, %arg1: i32) -> (i32, i32, i32) {
    %c0_i32 = arith.constant 0 : i32
    %c0_i32_0 = arith.constant 0 : i32
    %c0_i32_1 = arith.constant 0 : i32
    return %arg1, %c0_i32, %c0_i32_0 : i32, i32, i32
  }
  func.func @transform_7(%arg0: i32, %arg1: i32) -> (i32, i32, i32) {
    %c0_i32 = arith.constant 0 : i32
    %c0_i32_0 = arith.constant 0 : i32
    %c0_i32_1 = arith.constant 0 : i32
    return %arg1, %c0_i32, %c0_i32_0 : i32, i32, i32
  }
  func.func @transform_8(%arg0: i32, %arg1: i32) -> (i32, i32, i32) {
    %c0_i32 = arith.constant 0 : i32
    %c0_i32_0 = arith.constant 0 : i32
    %c0_i32_1 = arith.constant 0 : i32
    return %arg1, %c0_i32, %c0_i32_0 : i32, i32, i32
  }
  func.func @transform_9(%arg0: i32, %arg1: i32) -> (i32, i32, i32) {
    %c0_i32 = arith.constant 0 : i32
    %c0_i32_0 = arith.constant 0 : i32
    %c0_i32_1 = arith.constant 0 : i32
    return %arg1, %c0_i32, %c0_i32_0 : i32, i32, i32
  }
  func.func @transform_10(%arg0: i32, %arg1: i32) -> (i32, i32, i32) {
    %c0_i32 = arith.constant 0 : i32
    %c0_i32_0 = arith.constant 0 : i32
    %c0_i32_1 = arith.constant 0 : i32
    return %arg1, %c0_i32, %c0_i32_0 : i32, i32, i32
  }
  func.func @transform_11(%arg0: i32, %arg1: i32) -> (i32, i32, i32) {
    %c0_i32 = arith.constant 0 : i32
    %c0_i32_0 = arith.constant 0 : i32
    %c0_i32_1 = arith.constant 0 : i32
    return %arg1, %c0_i32, %c0_i32_0 : i32, i32, i32
  }
  func.func @transform_12(%arg0: i32, %arg1: i32) -> (i32, i32, i32) {
    %c0_i32 = arith.constant 0 : i32
    %c0_i32_0 = arith.constant 0 : i32
    %c0_i32_1 = arith.constant 0 : i32
    return %arg1, %c0_i32, %c0_i32_0 : i32, i32, i32
  }
  func.func @transform_13(%arg0: i32, %arg1: i32) -> (i32, i32, i32) {
    %c0_i32 = arith.constant 0 : i32
    %c0_i32_0 = arith.constant 0 : i32
    %c0_i32_1 = arith.constant 0 : i32
    return %arg1, %c0_i32, %c0_i32_0 : i32, i32, i32
  }
  func.func @transform_14(%arg0: i32, %arg1: i32) -> (i32, i32, i32) {
    %c0_i32 = arith.constant 0 : i32
    %c0_i32_0 = arith.constant 0 : i32
    %c0_i32_1 = arith.constant 0 : i32
    return %arg1, %c0_i32, %c0_i32_0 : i32, i32, i32
  }
  func.func @transform_15(%arg0: i32, %arg1: i32) -> (i32, i32) {
    %c0_i32 = arith.constant 0 : i32
    %c0_i32_0 = arith.constant 0 : i32
    %c0_i32_1 = arith.constant 0 : i32
    return %c0_i32, %c0_i32_0 : i32, i32
  }
  func.func @transform_16(%arg0: i32, %arg1: i32) -> (i32, i32) {
    %c0_i32 = arith.constant 0 : i32
    %c0_i32_0 = arith.constant 0 : i32
    %c0_i32_1 = arith.constant 0 : i32
    return %c0_i32, %c0_i32_0 : i32, i32
  }
  func.func @transform_17(%arg0: i32, %arg1: i32) -> (i32, i32) {
    %c0_i32 = arith.constant 0 : i32
    %c0_i32_0 = arith.constant 0 : i32
    %c0_i32_1 = arith.constant 0 : i32
    return %c0_i32, %c0_i32_0 : i32, i32
  }
  func.func @transform_18(%arg0: i32, %arg1: i32) -> (i32, i32) {
    %c0_i32 = arith.constant 0 : i32
    %c0_i32_0 = arith.constant 0 : i32
    %c0_i32_1 = arith.constant 0 : i32
    return %c0_i32, %c0_i32_0 : i32, i32
  }
  func.func @transform_19(%arg0: i32, %arg1: i32) -> (i32, i32, i32) {
    %c0_i32 = arith.constant 0 : i32
    %c0_i32_0 = arith.constant 0 : i32
    %c0_i32_1 = arith.constant 0 : i32
    return %arg0, %c0_i32, %c0_i32_0 : i32, i32, i32
  }
}

</mosaic_0001>

<bundles_post_ra>
// kernel: lsktns_forward.4
= control target key start
LH: loop header
LB: loop body
LE: loop exit
PB: predicated region body
PF: predicated region fallthrough
CT: control target
= control target key end

     0   :  { %v33_v0 = vlaneseq  ;;  %v1253_v1 = vmov 0.0   ;;  %vm1254_vm0 = vmmov 0   ;;  %vm43_vm1 = vcmask 64512   ;;  %s1541_s0 = inlined_call_operand.vmem [shape: f32[2,8,32], index: 0, kind: input, shape index: {}]   ;;  %s1542_s1 = inlined_call_operand.vmem [shape: f32[64,32], index: 1, kind: input, shape index: {}]   ;;  %s1543_s2 = inlined_call_operand.vmem [shape: f32[1,32], index: 2, kind: input, shape index: {}]   ;;  %s1544_s3 = inlined_call_operand.vmem [shape: f32[64,32], index: 3, kind: input, shape index: {}]   ;;  %s1545_s4 = inlined_call_operand.vmem [shape: f32[1,32], index: 4, kind: input, shape index: {}]   ;;  %s1546_s5 = inlined_call_operand.vmem [shape: f32[64,32], index: 5, kind: input, shape index: {}]   ;;  %s1547_s9 = inlined_call_operand.vmem [shape: f32[2,2,8,32], index: 9, kind: output, shape index: {}]   ;;  %s1548_s6 = inlined_call_operand.vmem [shape: f32[1,32], index: 6, kind: input, shape index: {}]   ;;  %s1549_s7 = inlined_call_operand.vmem [shape: f32[64,32], index: 7, kind: input, shape index: {}]   ;;  %s1550_s8 = inlined_call_operand.vmem [shape: f32[1,32], index: 8, kind: input, shape index: {}]  }
   0x1   :  { %1147 = vmatprep.subr.mxu0 %v1253_v1  ;;  %1152 = vmatprep.subr.mxu1 %v1253_v1  ;;  %v1310_v2 = vld [vmem:[%s1541_s0] sm:$0xff]  ;;  %v1315_v3 = vld [vmem:[%s1541_s0 + $0x8] sm:$0xff]  ;;  %v196_v13 = vld [vmem:[%s1542_s1 + $0x30] sm:$0xff]  ;;  %vm201_vm3 = vcmask 261120  }
   0x2   :  { %v194_v4 = vld [vmem:[%s1542_s1 + $0x20] sm:$0xff]  ;;  %1148 = vmatpush3.msra.mxu0 %v1310_v2  ;;  %1149 = vmatprep.mubr.msk.f32.mxu0 %vm1254_vm0, %v1253_v1  ;;  %v34_v5 = vshrl.u32 %v33_v0, 7  ;;  %v36_v6 = vand.u32 127, %v33_v0  ;;  %v195_v7 = vld [vmem:[%s1542_s1 + $0x28] sm:$0xff]  ;;  %v197_v14 = vld [vmem:[%s1542_s1 + $0x38] sm:$0xff]  ;;  %v198_v17 = vpack.c.bf16 %v1315_v3, %v1310_v2 }
   0x3   :  { %v187_v8 = vld [vmem:[%s1542_s1] sm:$0xff]  ;;  %v188_v9 = vld [vmem:[%s1542_s1 + $0x8] sm:$0xff]  ;;  %1153 = vmatpush3.msra.mxu1 %v1315_v3  ;;  %1154 = vmatprep.mubr.msk.f32.mxu1 %vm1254_vm0, %v1253_v1  ;;  %v199_v11 = vpack.c.bf16 %v195_v7, %v194_v4  ;;  %v200_v16 = vpack.c.bf16 %v197_v14, %v196_v13  ;;  %v189_v18 = vld [vmem:[%s1542_s1 + $0x10] sm:$0xff] }
   0x4   :  { %v1335_v10 = vsub.s32 %v34_v5, %v36_v6  ;;  %1157 = vmatprep.subr.bf16.mxu0 %v1253_v1  ;;  %1165 = vmatprep.subr.bf16.mxu1 %v1253_v1  ;;  %v192_v12 = vpack.c.bf16 %v188_v9, %v187_v8  ;;  %v190_v19 = vld [vmem:[%s1542_s1 + $0x18] sm:$0xff]  ;;  %v1088_v31 = vld [vmem:[%s1543_s2] ss:$0 sm:$0xff]  ;;  %v449_v36 = vld [vmem:[%s1544_s3 + $0x28] sm:$0xff] }
   0x5   :  { %v193_v20 = vpack.c.bf16 %v190_v19, %v189_v18  ;;  %v448_v35 = vld [vmem:[%s1544_s3 + $0x20] sm:$0xff]  ;;  %v442_v44 = vld [vmem:[%s1544_s3 + $0x8] sm:$0xff]  ;;  %v450_v45 = vld [vmem:[%s1544_s3 + $0x30] sm:$0xff] }
   0x6   :  { %vm40_vm2 = vcmp.eq.s32.totalorder %v1335_v10, 1  ;;  %v453_v42 = vpack.c.bf16 %v449_v36, %v448_v35  ;;  %v441_v43 = vld [vmem:[%s1544_s3] sm:$0xff]  ;;  %v451_v46 = vld [vmem:[%s1544_s3 + $0x38] sm:$0xff]  ;;  %v443_v51 = vld [vmem:[%s1544_s3 + $0x10] sm:$0xff]  ;;  %vm560_vm4 = vcmp.eq.s32.totalorder %v1335_v10, 2 }
   0x7   :  { %v1083_v15 = vsel %vm40_vm2, 1.0, %v1253_v1  ;;  %v446_v48 = vpack.c.bf16 %v442_v44, %v441_v43  ;;  %v454_v50 = vpack.c.bf16 %v451_v46, %v450_v45  ;;  %v444_v52 = vld [vmem:[%s1544_s3 + $0x18] sm:$0xff]  ;;  %v1093_v0 = vld [vmem:[%s1545_s4] ss:$0 sm:$0xff]  ;;  %v714_v14 = vld [vmem:[%s1546_s5 + $0x28] sm:$0xff]  ;;  %v1431_v19 = vsel %vm560_vm4, 1.0, %v1253_v1 }
   0x8   :  { %1150 = vmatmul.mubr.msk.f32.vlgmr.msra.gmra.mrb[0].mxu0 %vm43_vm1, %v1083_v15  ;;  %1155 = vmatmul.mubr.msk.f32.vlgmr.msra.gmra.mrb[0].mxu1 %vm43_vm1, %v1083_v15  ;;  %v447_v53 = vpack.c.bf16 %v444_v52, %v443_v51  ;;  %v713_v13 = vld [vmem:[%s1546_s5 + $0x20] sm:$0xff]  ;;  %v967_v44 = vld [vmem:[%s1549_s7 + $0x28] sm:$0xff] }
   0x9   :  { %1158 = vmatpush3.bf16.msra.mxu0 %v199_v11  ;;  %1166 = vmatpush3.bf16.msra.mxu1 %v192_v12  ;;  %v706_v10 = vld [vmem:[%s1546_s5] sm:$0xff]  ;;  %v960_v52 = vld [vmem:[%s1549_s7 + $0x8] sm:$0xff] }
   0xa   :  { %1159 = vmatprep.subr.bf16.mxu0 %v1253_v1  ;;  %1161 = vmatprep.mubr.msk.bf16.mxu0 %vm1254_vm0, %v1253_v1  ;;  %v966_v43 = vld [vmem:[%s1549_s7 + $0x20] sm:$0xff] }
   0xb   :  { %1167 = vmatprep.subr.bf16.mxu1 %v1253_v1  ;;  %1169 = vmatprep.mubr.msk.bf16.mxu1 %vm1254_vm0, %v1253_v1  ;;  %v959_v51 = vld [vmem:[%s1549_s7] sm:$0xff] }
   0xd   :  { %1160 = vmatpush3.bf16.msra.mxu0 %v200_v16  ;;  %1168 = vmatpush3.bf16.msra.mxu1 %v193_v20  ;;  %v718_v20 = vpack.c.bf16 %v714_v14, %v713_v13 }
   0xe   :  { %1173 = vmatprep.subr.mxu0 %v1253_v1  ;;  %1178 = vmatprep.subr.mxu1 %v1253_v1 }
  0x10   :  { %1162 = vmatmul.mubr.msk.bf16.vlgmr.msra.gmra.mrb[4].mxu0 %vm201_vm3, %v198_v17 }
  0x11   :  { %1175 = vmatprep.mubr.msk.f32.mxu0 %vm1254_vm0, %v1253_v1 }
  0xdb   :  { %v113_v21 = vpop.f32.mrb[0].mxu0  ;;  %v183_v22 = vpop.f32.mrb[0].mxu1 }
  0xdc   :  { %v191_v23 = vpack.c.bf16 %v183_v22, %v113_v21  ;;  %v1151_v24 = vpop.f32.mrb[1].mxu0  ;;  %v1156_v25 = vpop.f32.mrb[1].mxu1  ;;  %v707_v21 = vld [vmem:[%s1546_s5 + $0x8] sm:$0xff] }
  0xde   :  { %1170 = vmatmul.mubr.msk.bf16.vlgmr.msra.gmra.mrb[4].mxu1 %vm201_vm3, %v191_v23  ;;  %v711_v23 = vpack.c.bf16 %v707_v21, %v706_v10 }
  0xdf   :  { %1180 = vmatprep.mubr.msk.f32.mxu1 %vm1254_vm0, %v1253_v1 }
  0xe3   :  { %v239_v26 = vpop.f32.mrb[4].mxu0 }
  0xe4   :  { %v1163_v27 = vpop.f32.mrb[5].mxu0 }
  0xe5   :  { %v242_v28 = vpop.f32.mrb[6].mxu0  ;;  %v709_v27 = vld [vmem:[%s1546_s5 + $0x18] sm:$0xff] }
  0xe6   :  { %v1164_v29 = vpop.f32.mrb[7].mxu0 }
 0x1b1   :  { %v283_v30 = vpop.f32.mrb[4].mxu1 }
 0x1b2   :  { %v284_v32 = vadd.f32 %v283_v30, %v239_v26  ;;  %v1171_v33 = vpop.f32.mrb[5].mxu1  ;;  %v708_v26 = vld [vmem:[%s1546_s5 + $0x10] sm:$0xff] }
 0x1b3   :  { %v286_v34 = vpop.f32.mrb[6].mxu1 }
 0x1b4   :  { %v297_v37 = vadd.f32 %v1088_v31, %v284_v32  ;;  %v287_v38 = vadd.f32 %v286_v34, %v242_v28  ;;  %v1172_v39 = vpop.f32.mrb[7].mxu1  ;;  %v712_v28 = vpack.c.bf16 %v709_v27, %v708_v26 }
 0x1b5   :  { %v1099_v39 = vld [vmem:[%s1548_s6] ss:$0 sm:$0xff] }
 0x1b6   :  { %v299_v40 = vmax.f32 %v297_v37, 0.0  ;;  %v298_v41 = vadd.f32 %v1088_v31, %v287_v38 }
 0x1b8   :  { %v300_v47 = vmax.f32 %v298_v41, 0.0  ;;  %1174 = vmatpush3.msra.mxu0 %v299_v40 }
 0x1b9   :  { %1183 = vmatprep.subr.bf16.mxu0 %v1253_v1  ;;  %1176 = vmatmul.mubr.msk.f32.vlgmr.msra.gmra.mrb[2].mxu0 %vm43_vm1, %v1083_v15 }
 0x1ba   :  { %v452_v49 = vpack.c.bf16 %v300_v47, %v299_v40  ;;  %1179 = vmatpush3.msra.mxu1 %v300_v47  ;;  %1184 = vmatpush3.bf16.msra.mxu0 %v453_v42 }
 0x1bb   :  { %1181 = vmatmul.mubr.msk.f32.vlgmr.msra.gmra.mrb[2].mxu1 %vm43_vm1, %v1083_v15  ;;  %1185 = vmatprep.subr.bf16.mxu0 %v1253_v1 }
 0x1bc   :  { %1187 = vmatprep.mubr.msk.bf16.mxu0 %vm1254_vm0, %v1253_v1  ;;  %1191 = vmatprep.subr.bf16.mxu1 %v1253_v1 }
 0x1bd   :  { %1192 = vmatpush3.bf16.msra.mxu1 %v446_v48  ;;  %1195 = vmatprep.mubr.msk.bf16.mxu1 %vm1254_vm0, %v1253_v1 }
 0x1be   :  { %1186 = vmatpush3.bf16.msra.mxu0 %v454_v50  ;;  %1193 = vmatprep.subr.bf16.mxu1 %v1253_v1  ;;  %v971_v50 = vpack.c.bf16 %v967_v44, %v966_v43 }
 0x1bf   :  { %1199 = vmatprep.subr.mxu0 %v1253_v1 }
 0x1c1   :  { %1188 = vmatmul.mubr.msk.bf16.vlgmr.msra.gmra.mrb[8].mxu0 %vm201_vm3, %v452_v49  ;;  %1194 = vmatpush3.bf16.msra.mxu1 %v447_v53  ;;  %v968_v53 = vld [vmem:[%s1549_s7 + $0x30] sm:$0xff] }
 0x1c2   :  { %1201 = vmatprep.mubr.msk.f32.mxu0 %vm1254_vm0, %v1253_v1  ;;  %1204 = vmatprep.subr.mxu1 %v1253_v1 }
 0x28c   :  { %v367_v54 = vpop.f32.mrb[2].mxu0 }
 0x28d   :  { %v1177_v55 = vpop.f32.mrb[3].mxu0 }
 0x28e   :  { %v437_v56 = vpop.f32.mrb[2].mxu1 }
 0x28f   :  { %v445_v57 = vpack.c.bf16 %v437_v56, %v367_v54  ;;  %v1182_v58 = vpop.f32.mrb[3].mxu1  ;;  %v969_v54 = vld [vmem:[%s1549_s7 + $0x38] sm:$0xff]  ;;  %v964_v56 = vpack.c.bf16 %v960_v52, %v959_v51 }
 0x290   :  { %v972_v58 = vpack.c.bf16 %v969_v54, %v968_v53 }
 0x291   :  { %1196 = vmatmul.mubr.msk.bf16.vlgmr.msra.gmra.mrb[8].mxu1 %vm201_vm3, %v445_v57 }
 0x292   :  { %1206 = vmatprep.mubr.msk.f32.mxu1 %vm1254_vm0, %v1253_v1 }
 0x294   :  { %v492_v59 = vpop.f32.mrb[8].mxu0 }
 0x295   :  { %v1189_v60 = vpop.f32.mrb[9].mxu0 }
 0x296   :  { %v495_v61 = vpop.f32.mrb[10].mxu0  ;;  %v962_v60 = vld [vmem:[%s1549_s7 + $0x18] sm:$0xff] }
 0x297   :  { %v1190_v62 = vpop.f32.mrb[11].mxu0 }
 0x364   :  { %v536_v63 = vpop.f32.mrb[8].mxu1 }
 0x365   :  { %v537_v4 = vadd.f32 %v536_v63, %v492_v59  ;;  %v1197_v5 = vpop.f32.mrb[9].mxu1  ;;  %v961_v59 = vld [vmem:[%s1549_s7 + $0x10] sm:$0xff] }
 0x366   :  { %v539_v6 = vpop.f32.mrb[10].mxu1 }
 0x367   :  { %v550_v7 = vadd.f32 %v1093_v0, %v537_v4  ;;  %v540_v8 = vadd.f32 %v539_v6, %v495_v61  ;;  %v1198_v9 = vpop.f32.mrb[11].mxu1  ;;  %v965_v61 = vpack.c.bf16 %v962_v60, %v961_v59 }
 0x369   :  { %v552_v11 = vmax.f32 %v550_v7, 0.0  ;;  %v551_v12 = vadd.f32 %v1093_v0, %v540_v8 }
 0x36b   :  { %v554_v15 = vadd.f32 %v552_v11, %v1310_v2  ;;  %v553_v16 = vmax.f32 %v551_v12, 0.0  ;;  %v715_v2 = vld [vmem:[%s1546_s5 + $0x30] sm:$0xff]  ;;  %v1104_v11 = vld [vmem:[%s1550_s8] ss:$0 sm:$0xff] }
 0x36d   :  { %v1427_v17 = vmax.f32 %v554_v15, 0.0  ;;  %v555_v18 = vadd.f32 %v553_v16, %v1315_v3  ;;  %v716_v3 = vld [vmem:[%s1546_s5 + $0x38] sm:$0xff] }
 0x36e   :  { %v719_v24 = vpack.c.bf16 %v716_v3, %v715_v2 }
 0x36f   :  { %558 = vst.msk [vmem:[%s1547_s9] sm:$0xff] %vm201_vm3, %v1427_v17  ;;  %v1450_v22 = vmax.f32 %v555_v18, 0.0  ;;  %1200 = vmatpush3.msra.mxu0 %v1427_v17 }
 0x370   :  { %1209 = vmatprep.subr.bf16.mxu0 %v1253_v1  ;;  %1202 = vmatmul.mubr.msk.f32.vlgmr.msra.gmra.mrb[12].mxu0 %vm43_vm1, %v1431_v19 }
 0x371   :  { %559 = vst.msk [vmem:[%s1547_s9 + $0x8] sm:$0xff] %vm201_vm3, %v1450_v22  ;;  %1205 = vmatpush3.msra.mxu1 %v1450_v22  ;;  %1210 = vmatpush3.bf16.msra.mxu0 %v718_v20  ;;  %v717_v25 = vpack.c.bf16 %v1450_v22, %v1427_v17 }
 0x372   :  { %1207 = vmatmul.mubr.msk.f32.vlgmr.msra.gmra.mrb[12].mxu1 %vm43_vm1, %v1431_v19  ;;  %1211 = vmatprep.subr.bf16.mxu0 %v1253_v1 }
 0x373   :  { %1213 = vmatprep.mubr.msk.bf16.mxu0 %vm1254_vm0, %v1253_v1  ;;  %1217 = vmatprep.subr.bf16.mxu1 %v1253_v1 }
 0x374   :  { %1218 = vmatpush3.bf16.msra.mxu1 %v711_v23  ;;  %1221 = vmatprep.mubr.msk.bf16.mxu1 %vm1254_vm0, %v1253_v1 }
 0x375   :  { %1212 = vmatpush3.bf16.msra.mxu0 %v719_v24  ;;  %1219 = vmatprep.subr.bf16.mxu1 %v1253_v1 }
 0x376   :  { %1225 = vmatprep.subr.mxu0 %v1253_v1 }
 0x378   :  { %1214 = vmatmul.mubr.msk.bf16.vlgmr.msra.gmra.mrb[16].mxu0 %vm201_vm3, %v717_v25  ;;  %1220 = vmatpush3.bf16.msra.mxu1 %v712_v28 }
 0x379   :  { %1227 = vmatprep.mubr.msk.f32.mxu0 %vm1254_vm0, %v1253_v1  ;;  %1230 = vmatprep.subr.mxu1 %v1253_v1 }
 0x443   :  { %v632_v29 = vpop.f32.mrb[12].mxu0 }
 0x444   :  { %v1203_v30 = vpop.f32.mrb[13].mxu0 }
 0x445   :  { %v702_v31 = vpop.f32.mrb[12].mxu1 }
 0x446   :  { %v710_v32 = vpack.c.bf16 %v702_v31, %v632_v29  ;;  %v1208_v33 = vpop.f32.mrb[13].mxu1 }
 0x448   :  { %1222 = vmatmul.mubr.msk.bf16.vlgmr.msra.gmra.mrb[16].mxu1 %vm201_vm3, %v710_v32 }
 0x449   :  { %1232 = vmatprep.mubr.msk.f32.mxu1 %vm1254_vm0, %v1253_v1 }
 0x44b   :  { %v757_v34 = vpop.f32.mrb[16].mxu0 }
 0x44c   :  { %v1215_v35 = vpop.f32.mrb[17].mxu0 }
 0x44d   :  { %v760_v36 = vpop.f32.mrb[18].mxu0 }
 0x44e   :  { %v1216_v37 = vpop.f32.mrb[19].mxu0 }
 0x51b   :  { %v801_v38 = vpop.f32.mrb[16].mxu1 }
 0x51c   :  { %v802_v40 = vadd.f32 %v801_v38, %v757_v34  ;;  %v1223_v41 = vpop.f32.mrb[17].mxu1 }
 0x51d   :  { %v804_v42 = vpop.f32.mrb[18].mxu1 }
 0x51e   :  { %v815_v45 = vadd.f32 %v1099_v39, %v802_v40  ;;  %v805_v46 = vadd.f32 %v804_v42, %v760_v36  ;;  %v1224_v47 = vpop.f32.mrb[19].mxu1 }
 0x520   :  { %v817_v48 = vmax.f32 %v815_v45, 0.0  ;;  %v816_v49 = vadd.f32 %v1099_v39, %v805_v46 }
 0x522   :  { %v818_v55 = vmax.f32 %v816_v49, 0.0  ;;  %1226 = vmatpush3.msra.mxu0 %v817_v48 }
 0x523   :  { %1235 = vmatprep.subr.bf16.mxu0 %v1253_v1  ;;  %1228 = vmatmul.mubr.msk.f32.vlgmr.msra.gmra.mrb[14].mxu0 %vm43_vm1, %v1431_v19 }
 0x524   :  { %v970_v57 = vpack.c.bf16 %v818_v55, %v817_v48  ;;  %1231 = vmatpush3.msra.mxu1 %v818_v55  ;;  %1236 = vmatpush3.bf16.msra.mxu0 %v971_v50 }
 0x525   :  { %1233 = vmatmul.mubr.msk.f32.vlgmr.msra.gmra.mrb[14].mxu1 %vm43_vm1, %v1431_v19  ;;  %1237 = vmatprep.subr.bf16.mxu0 %v1253_v1 }
 0x526   :  { %1239 = vmatprep.mubr.msk.bf16.mxu0 %vm1254_vm0, %v1253_v1  ;;  %1243 = vmatprep.subr.bf16.mxu1 %v1253_v1 }
 0x527   :  { %1244 = vmatpush3.bf16.msra.mxu1 %v964_v56  ;;  %1247 = vmatprep.mubr.msk.bf16.mxu1 %vm1254_vm0, %v1253_v1 }
 0x528   :  { %1238 = vmatpush3.bf16.msra.mxu0 %v972_v58  ;;  %1245 = vmatprep.subr.bf16.mxu1 %v1253_v1 }
 0x52b   :  { %1240 = vmatmul.mubr.msk.bf16.vlgmr.msra.gmra.mrb[20].mxu0 %vm201_vm3, %v970_v57  ;;  %1246 = vmatpush3.bf16.msra.mxu1 %v965_v61 }
 0x5f6   :  { %v885_v62 = vpop.f32.mrb[14].mxu0 }
 0x5f7   :  { %v1229_v63 = vpop.f32.mrb[15].mxu0 }
 0x5f8   :  { %v955_v0 = vpop.f32.mrb[14].mxu1 }
 0x5f9   :  { %v963_v4 = vpack.c.bf16 %v955_v0, %v885_v62  ;;  %v1234_v5 = vpop.f32.mrb[15].mxu1 }
 0x5fb   :  { %1248 = vmatmul.mubr.msk.bf16.vlgmr.msra.gmra.mrb[20].mxu1 %vm201_vm3, %v963_v4 }
 0x5fe   :  { %v1010_v1 = vpop.f32.mrb[20].mxu0 }
 0x5ff   :  { %v1241_v6 = vpop.f32.mrb[21].mxu0 }
 0x600   :  { %v1013_v7 = vpop.f32.mrb[22].mxu0 }
 0x601   :  { %v1242_v8 = vpop.f32.mrb[23].mxu0 }
 0x6ce   :  { %v1054_v9 = vpop.f32.mrb[20].mxu1 }
 0x6cf   :  { %v1055_v12 = vadd.f32 %v1054_v9, %v1010_v1  ;;  %v1249_v13 = vpop.f32.mrb[21].mxu1 }
 0x6d0   :  { %v1057_v14 = vpop.f32.mrb[22].mxu1 }
 0x6d1   :  { %v1068_v15 = vadd.f32 %v1104_v11, %v1055_v12  ;;  %v1058_v16 = vadd.f32 %v1057_v14, %v1013_v7  ;;  %v1250_v18 = vpop.f32.mrb[23].mxu1 }
 0x6d3   :  { %v1070_v19 = vmax.f32 %v1068_v15, 0.0  ;;  %v1069_v20 = vadd.f32 %v1104_v11, %v1058_v16 }
 0x6d5   :  { %v1072_v10 = vadd.f32 %v1070_v19, %v1427_v17  ;;  %v1071_v21 = vmax.f32 %v1069_v20, 0.0 }
 0x6d7   :  { %v1074_v2 = vmax.f32 %v1072_v10, 0.0  ;;  %v1073_v3 = vadd.f32 %v1071_v21, %v1450_v22 }
 0x6d9   :  { %1105 = vst.msk [vmem:[%s1547_s9 + $0x10] sm:$0xff] %vm201_vm3, %v1074_v2  ;;  %v1075_v23 = vmax.f32 %v1073_v3, 0.0 }
 0x6db   :  { %1106 = vst.msk [vmem:[%s1547_s9 + $0x18] sm:$0xff] %vm201_vm3, %v1075_v23 }

// kernel: lsktns_forward.5
= control target key start
LH: loop header
LB: loop body
LE: loop exit
PB: predicated region body
PF: predicated region fallthrough
CT: control target
= control target key end

     0   :  { %s3570_s0 = inlined_call_operand.vmem [shape: f32[2,2,8,32], index: 0, kind: input, shape index: {}]   ;;  %s3571_s1 = inlined_call_operand.vmem [shape: f32[2,32,32], index: 1, kind: input, shape index: {}]   ;;  %s3572_s2 = inlined_call_operand.vmem [shape: f32[2,1,32], index: 2, kind: input, shape index: {}]   ;;  %s3573_s3 = inlined_call_operand.vmem [shape: f32[2,32,32], index: 3, kind: input, shape index: {}]   ;;  %s3574_s4 = inlined_call_operand.vmem [shape: f32[2,1,32], index: 4, kind: input, shape index: {}]   ;;  %s3575_s5 = inlined_call_operand.vmem [shape: f32[2,32,32], index: 5, kind: input, shape index: {}]   ;;  %s3576_s6 = inlined_call_operand.vmem [shape: f32[2,1,32], index: 6, kind: input, shape index: {}]   ;;  %s3577_s7 = inlined_call_operand.vmem [shape: f32[2,1,32], index: 7, kind: input, shape index: {}]   ;;  %s3578_s8 = inlined_call_operand.vmem [shape: f32[2,1,32], index: 8, kind: input, shape index: {}]   ;;  %s3579_s9 = inlined_call_operand.vmem [shape: f32[2,32,64], index: 9, kind: input, shape index: {}]   ;;  %s3580_s10 = inlined_call_operand.vmem [shape: f32[2,1,64], index: 10, kind: input, shape index: {}]   ;;  %s3581_s11 = inlined_call_operand.vmem [shape: f32[2,64,32], index: 11, kind: input, shape index: {}]   ;;  %s3582_s12 = inlined_call_operand.vmem [shape: f32[2,1,32], index: 12, kind: input, shape index: {}]   ;;  %s3583_s13 = inlined_call_operand.vmem [shape: f32[2,1,32], index: 13, kind: input, shape index: {}]   ;;  %s3584_s14 = inlined_call_operand.vmem [shape: f32[2,1,32], index: 14, kind: input, shape index: {}]   ;;  %s3585_s15 = inlined_call_operand.vmem [shape: f32[32,32], index: 15, kind: input, shape index: {}]   ;;  %s3586_s16 = inlined_call_operand.vmem [shape: f32[1,32], index: 16, kind: input, shape index: {}]   ;;  %s3587_s17 = inlined_call_operand.vmem [shape: f32[32,16], index: 17, kind: input, shape index: {}]   ;;  %s3588_s18 = inlined_call_operand.vmem [shape: f32[1,16], index: 18, kind: input, shape index: {}]   ;;  %s3589_s19 = inlined_call_operand.hbm [shape: f32[2,8,16], index: 19, kind: output, shape index: {}]  }
   0x1   :  { %3593 = sst [smem:[#allocation9_spill]] %s3570_s0 }
   0x2   :  { %3594 = sst [smem:[#allocation10_spill]] %s3571_s1 }
   0x3   :  { %3595 = sst [smem:[#allocation11_spill]] %s3572_s2 }
   0x4   :  { %3596 = sst [smem:[#allocation12_spill]] %s3573_s3 }
   0x5   :  { %3597 = sst [smem:[#allocation13_spill]] %s3589_s19 }
   0x6   :  { %24 = vsyncpa [#allocation4], 0  ;;  %s3169_s0 = smov 0   ;;  %s3171_s30 = smov 0  }
   0x7   :  { %s3173_s20 = smov 0  }
   0x8 LB: > { %3598 = sst [smem:[#allocation6_spill]] %s3051_s30  ;;  %s39_s1 = sadd.s32 1, %s3051_s30  ;;  %s3055_s20 = sphi %s3173_s20, %s30_s20   ;;  %s3051_s30 = sphi %s3171_s30, %s3611_s30   ;;  %s3047_s0 = sphi %s3169_s0, %s3610_s0  }
   0x9   : > { %3599 = sst [smem:[#allocation7_spill]] %s3055_s20  ;;  %p40_p0 = scmp.ge.s32.totalorder %s39_s1, 2 }
   0xa   : > { %p2623_p1 = scmp.ge.s32.totalorder %s3055_s20, 1  ;;  %p679_p2 = scmp.lt.s32.totalorder %s3055_s20, 3 }
   0xb   : > { %s3613_s1 = smov (%p40_p0, %s39_s1), 0 }
   0xc   : > { %3600 = sst [smem:[#allocation8_spill]] %s3613_s1  ;;  %p680_p3 = pnand %p2623_p1, %p679_p2 }
   0xd   : > { %p787_p4 = scmp.lt.s32.totalorder (!%p680_p3), %s3047_s0, 1  ;;  %v3057_v0 = vmov (!%p680_p3), 0.0   ;;  %vm3058_vm0 = vmmov (!%p680_p3), 0   ;;  %s3601_s3 = sld [smem:[#allocation10_spill]] (!%p680_p3)  ;;  %vm876_vm1 = vcmask (!%p680_p3), 261120   ;;  %vm978_vm2 = vcmask (!%p680_p3), 64512  }
   0xe   : > { %683 = sbr.rel (%p680_p3) target bundleno = 4847 (0x12ef), region = 96  ;;  %2745 = vmatprep.subr.bf16.mxu0 (!%p680_p3), %v3057_v0  ;;  %2749 = vmatprep.mubr.msk.bf16.mxu0 (!%p680_p3), %vm3058_vm0, %v3057_v0  ;;  %s3602_s29 = sld [smem:[#allocation9_spill]] (!%p680_p3)  ;;  %vm1098_vm3 = vcmask (!%p680_p3), 1043456   ;;  %v970_v38 = vlaneseq (!%p680_p3)  ;;  %v3059_v42 = vmov (!%p680_p3), -1e+30   ;;  %vm2162_vm5 = vcmask (!%p680_p3), 523264  }
   0xf   : > { %2753 = vmatprep.subr.bf16.mxu1 (!%p680_p3), %v3057_v0  ;;  %2757 = vmatprep.mubr.msk.bf16.mxu1 (!%p680_p3), %vm3058_vm0, %v3057_v0  ;;  %s3603_s19 = sld [smem:[#allocation12_spill]] (!%p680_p3)  ;;  %s3060_s25 = smov (!%p680_p3), 120  }
  0x10   : > { %v971_v39 = vshrl.u32 (!%p680_p3), %v970_v38, 7  ;;  %v973_v40 = vand.u32 (!%p680_p3), 127, %v970_v38  ;;  %p2669_p5 = scmp.ne.s32.totalorder (!%p680_p3), %s3047_s0, 0 }
  0x12   : > { %vm974_vm4 = vcmp.le.s32.totalorder (!%p680_p3), %v973_v40, %v971_v39 }
  0x13   : > { %v3267_v43 = vsel (!%p680_p3), %vm974_vm4, 0.0, %v3059_v42 }
  0x15   : > { %s3195_s22 = scalar_select %p787_p4, %s3047_s0, 1 }
  0x17   : > { %s3201_s2 = sshll.u32 %s3195_s22, 5  ;;  %s2679_s23 = sshll.u32 %s3195_s22, 4 }
  0x18   : > { %s800_s26 = scalar_lea.vmem %s3601_s3, %s3201_s2  ;;  %s794_s21 = scalar_lea.vmem %s3602_s29, %s2679_s23 }
  0x19   : > { %v852_v1 = vld [vmem:[%s800_s26] sm:$0xff]  ;;  %v853_v2 = vld [vmem:[%s800_s26 + $0x8] sm:$0xff]  ;;  %v854_v3 = vld [vmem:[%s800_s26 + $0x10] sm:$0xff]  ;;  %s808_s20 = scalar_lea.vmem %s3603_s19, %s3201_s2  ;;  %s811_s24 = scalar_lea.vmem %s3574_s4, %s3195_s22 }
  0x1a   : > { %v868_v4 = vpack.c.bf16 %v853_v2, %v852_v1  ;;  %v855_v5 = vld [vmem:[%s800_s26 + $0x18] sm:$0xff]  ;;  %v857_v6 = vld [vmem:[%s808_s20] sm:$0xff]  ;;  %v858_v7 = vld [vmem:[%s808_s20 + $0x8] sm:$0xff]  ;;  %s3061_s3 = smov 112   ;;  %s3320_s28 = scalar_lea.vmem %s3575_s5, %s3201_s2 }
  0x1b   : > { %v859_v8 = vld [vmem:[%s808_s20 + $0x10] sm:$0xff]  ;;  %v869_v9 = vpack.c.bf16 %v855_v5, %v854_v3  ;;  %v3215_v10 = vld [vmem:[%s794_s21] sm:$0xff]  ;;  %v3217_v11 = vld [vmem:[%s794_s21 + $0x8] sm:$0xff]  ;;  %v921_v12 = vpack.c.bf16 %v858_v7, %v857_v6  ;;  %s3062_s29 = smov 104   ;;  %s830_s23 = scalar_lea.vmem %s3579_s9, %s3201_s2 }
  0x1c   : > { %2746 = vmatpush3.bf16.msra.mxu0 %v868_v4  ;;  %v860_v13 = vld [vmem:[%s808_s20 + $0x18] sm:$0xff]  ;;  %v867_v15 = vpack.c.bf16 %v3217_v11, %v3215_v10  ;;  %s3604_s20 = sld [smem:[#allocation11_spill]]  ;;  %v2638_v31 = vld [vmem:[%s811_s24] ss:$0 sm:$0xff]  ;;  %s2684_s24 = sshll.u32 %s3195_s22, 6 }
  0x1d   : > { %2747 = vmatprep.subr.bf16.mxu0 %v3057_v0  ;;  %2754 = vmatpush3.bf16.msra.mxu1 %v921_v12  ;;  %v922_v14 = vpack.c.bf16 %v860_v13, %v859_v8  ;;  %s3453_s26 = scalar_lea.vmem %s3581_s11, %s2684_s24  ;;  %s825_s30 = scalar_lea.vmem %s3578_s8, %s3195_s22 }
  0x1e   : > { %2755 = vmatprep.subr.bf16.mxu1 %v3057_v0  ;;  %s833_s1 = scalar_lea.vmem %s3580_s10, %s3195_s22  ;;  %s844_s2 = scalar_lea.vmem %s3583_s13, %s3195_s22 }
  0x20   : > { %2748 = vmatpush3.bf16.msra.mxu0 %v869_v9 }
  0x21   : > { %2761 = vmatprep.subr.bf16.mxu0 %v3057_v0  ;;  %2756 = vmatpush3.bf16.msra.mxu1 %v922_v14 }
  0x22   : > { %2767 = vmatprep.subr.bf16.mxu1 %v3057_v0  ;;  %s803_s21 = scalar_lea.vmem %s3604_s20, %s3195_s22  ;;  %s819_s20 = scalar_lea.vmem %s3576_s6, %s3195_s22 }
  0x23   : > { %2750 = vmatmul.mubr.msk.bf16.vlgmr.msra.gmra.mrb[0].mxu0 %vm876_vm1, %v867_v15  ;;  %v2636_v16 = vld [vmem:[%s803_s21] ss:$0 sm:$0xff] }
  0x24   : > { %2763 = vmatprep.mubr.msk.bf16.mxu0 %vm3058_vm0, %v3057_v0  ;;  %2758 = vmatmul.mubr.msk.bf16.vlgmr.msra.gmra.mrb[0].mxu1 %vm876_vm1, %v867_v15 }
  0x25   : > { %2769 = vmatprep.mubr.msk.bf16.mxu1 %vm3058_vm0, %v3057_v0 }
  0xf6   : > { %v914_v17 = vpop.f32.mrb[0].mxu0 }
  0xf7   : > { %v915_v18 = vadd.f32 %v2636_v16, %v914_v17  ;;  %v2751_v19 = vpop.f32.mrb[1].mxu0  ;;  %v963_v21 = vpop.f32.mrb[0].mxu1 }
  0xf8   : > { %v917_v20 = vpop.f32.mrb[2].mxu0  ;;  %v2759_v25 = vpop.f32.mrb[1].mxu1  ;;  %v964_v32 = vadd.f32 %v2638_v31, %v963_v21 }
  0xf9   : > { %v3235_v22 = vpack.c.bf16 %v915_v18, %v915_v18  ;;  %v918_v23 = vadd.f32 %v2636_v16, %v917_v20  ;;  %v2752_v24 = vpop.f32.mrb[3].mxu0  ;;  %v966_v26 = vpop.f32.mrb[2].mxu1 }
  0xfa   : > { %v2760_v29 = vpop.f32.mrb[3].mxu1  ;;  %v967_v33 = vadd.f32 %v2638_v31, %v966_v26  ;;  %v3257_v34 = vpack.c.bf16 %v964_v32, %v964_v32 }
  0xfb   : > { %v3237_v27 = vpack.c.bf16 %v918_v23, %v918_v23  ;;  %v980_v28 = vsel %vm978_vm2, %v3235_v22, 0 }
  0xfc   : > { %2762 = vmatpush3.bf16.xpose.msra.mxu0 %v980_v28  ;;  %v3259_v35 = vpack.c.bf16 %v967_v33, %v967_v33  ;;  %v1100_v36 = vsel %vm1098_vm3, %v3257_v34, 0 }
  0xfd   : > { %v1023_v30 = vsel %vm978_vm2, %v3237_v27, 0  ;;  %2773 = vmatprep.subr.bf16.mxu0 %v3057_v0 }
  0xfe   : > { %2768 = vmatpush3.bf16.xpose.msra.mxu1 %v1023_v30  ;;  %v1146_v37 = vsel %vm1098_vm3, %v3259_v35, 0 }
  0xff   : > { %2779 = vmatprep.subr.bf16.mxu1 %v3057_v0 }
 0x103   : > { %2764 = vmatmul.mubr.msk.bf16.vlgmr.msra.gmra.mrb[4].mxu0 %vm978_vm2, %v3235_v22 }
 0x104   : > { %2775 = vmatprep.mubr.msk.bf16.mxu0 %vm3058_vm0, %v3057_v0  ;;  %2774 = vmatpush3.bf16.msra.mxu0 %v1100_v36 }
 0x105   : > { %2770 = vmatmul.mubr.msk.bf16.vlgmr.msra.gmra.mrb[4].mxu1 %vm978_vm2, %v3237_v27  ;;  %2785 = vmatprep.subr.bf16.mxu0 %v3057_v0 }
 0x106   : > { %2781 = vmatprep.mubr.msk.bf16.mxu1 %vm3058_vm0, %v3057_v0  ;;  %2780 = vmatpush3.bf16.msra.mxu1 %v1146_v37 }
 0x107   : > { %2791 = vmatprep.subr.bf16.mxu1 %v3057_v0 }
 0x1d6   : > { %v1016_v41 = vpop.f32.mrb[4].mxu0 }
 0x1d7   : > { %v1065_v44 = vmul.f32 0.35355338, %v1016_v41  ;;  %v2765_v45 = vpop.f32.mrb[5].mxu0 }
 0x1d8   : > { %v1019_v46 = vpop.f32.mrb[6].mxu0  ;;  %v1059_v47 = vpop.f32.mrb[4].mxu1 }
 0x1d9   : > { %v1066_v48 = vmul.f32 0.35355338, %v1059_v47  ;;  %v2766_v49 = vpop.f32.mrb[7].mxu0  ;;  %v2771_v50 = vpop.f32.mrb[5].mxu1  ;;  %v1067_v51 = vadd.f32 %v1065_v44, %v3267_v43 }
 0x1da   : > { %v1062_v52 = vpop.f32.mrb[6].mxu1 }
 0x1db   : > { %v2772_v53 = vpop.f32.mrb[7].mxu1  ;;  %v1069_v54 = vsel %vm978_vm2, %v1067_v51, -inf  ;;  %v1068_v55 = vadd.f32 %v1066_v48, %v3267_v43 }
 0x1dc   : > { %1070 = vmax.xlane.f32.xlu0 %v1069_v54 }
 0x1dd   : > { %v1072_v56 = vsel %vm978_vm2, %v1068_v55, -inf }
 0x1e0   : > { %1073 = vmax.xlane.f32.xlu0 %v1072_v56 }
 0x1f6   : > { %1191 = vrot.lane.b32.xlu0 %v3235_v22, %s3060_s25 }
 0x269   : > { %v1071_v57 = vpop.xlane.xlu0 %1070 }
 0x26a   : > { %v1075_v58 = vsub.f32 %v1067_v51, %v1071_v57 }
 0x26c   : > { %v1077_v59 = vmul.f32 1.442695, %v1075_v58 }
 0x26d   : > { %v1074_v60 = vpop.xlane.xlu0 %1073 }
 0x26e   : > { %2959 = vpow2.f32 %v1077_v59  ;;  %v1076_v61 = vsub.f32 %v1068_v55, %v1074_v60  ;;  %v863_v60 = vld [vmem:[%s3320_s28 + $0x8] sm:$0xff] }
 0x270   : > { %v1079_v62 = vmul.f32 1.442695, %v1076_v61 }
 0x271   : > { %v1192_v8 = vpop.permute.xlu0 %1191 }
 0x272   : > { %2961 = vpow2.f32 %v1079_v62  ;;  %v1194_v13 = vsel %vm978_vm2, %v1192_v8, 0 }
 0x278   : > { %v2960_v63 = vpop.eup %2959 }
 0x279   : > { %v1081_v1 = vsel %vm978_vm2, %v2960_v63, 0.0 }
 0x27a   : > { %1082 = vadd.xlane.f32.xlu1 %v1081_v1 }
 0x27c   : > { %v2962_v2 = vpop.eup %2961 }
 0x27d   : > { %v1084_v3 = vsel %vm978_vm2, %v2962_v2, 0.0 }
 0x27e   : > { %1085 = vadd.xlane.f32.xlu1 %v1084_v3 }
 0x28f   : > { %1237 = vrot.lane.b32.xlu1 %v3237_v27, %s3060_s25 }
 0x307   : > { %v1083_v4 = vpop.xlane.xlu1 %1082 }
 0x308   : > { %2963 = vrcp.f32 %v1083_v4 }
 0x30b   : > { %v1086_v5 = vpop.xlane.xlu1 %1085 }
 0x30c   : > { %2965 = vrcp.f32 %v1086_v5 }
 0x30f   : > { %v1238_v15 = vpop.permute.xlu1 %1237 }
 0x310   : > { %v1240_v17 = vsel %vm978_vm2, %v1238_v15, 0 }
 0x312   : > { %v2964_v6 = vpop.eup %2963 }
 0x313   : > { %v1089_v7 = vmul.f32 %v2964_v6, %v2960_v63  ;;  %v1409_v63 = vpack.c.bf16 %v863_v60, %v863_v60 }
 0x315   : > { %v1091_v9 = vpack.c.bf16 %v1089_v7, %v1089_v7  ;;  %v1414_v6 = vsel %vm1098_vm3, %v1409_v63, 0 }
 0x316   : > { %v2966_v12 = vpop.eup %2965 }
 0x317   : > { %v1090_v14 = vmul.f32 %v2966_v12, %v2962_v2  ;;  %2776 = vmatmul.mubr.msk.bf16.vlgmr.msra.gmra.mrb[8].mxu0 %vm978_vm2, %v1091_v9  ;;  %v862_v2 = vld [vmem:[%s3320_s28] sm:$0xff] }
 0x318   : > { %2786 = vmatpush3.bf16.xpose.msra.mxu0 %v1194_v13  ;;  %2787 = vmatprep.mubr.msk.bf16.mxu0 %vm3058_vm0, %v3057_v0  ;;  %v1189_v5 = vpack.c.bf16 %v862_v2, %v862_v2 }
 0x319   : > { %v1092_v16 = vpack.c.bf16 %v1090_v14, %v1090_v14  ;;  %2797 = vmatprep.subr.bf16.mxu0 %v3057_v0 }
 0x31a   : > { %v1461_v12 = vsel %vm1098_vm3, %v1189_v5, 0 }
 0x31b   : > { %2782 = vmatmul.mubr.msk.bf16.vlgmr.msra.gmra.mrb[8].mxu1 %vm978_vm2, %v1092_v16 }
 0x31c   : > { %2792 = vmatpush3.bf16.xpose.msra.mxu1 %v1240_v17  ;;  %2793 = vmatprep.mubr.msk.bf16.mxu1 %vm3058_vm0, %v3057_v0 }
 0x31d   : > { %2803 = vmatprep.subr.bf16.mxu1 %v3057_v0 }
 0x31f   : > { %2788 = vmatmul.mubr.msk.bf16.vlgmr.msra.gmra.mrb[12].mxu0 %vm978_vm2, %v1192_v8 }
 0x320   : > { %2799 = vmatprep.mubr.msk.bf16.mxu0 %vm3058_vm0, %v3057_v0 }
 0x323   : > { %2794 = vmatmul.mubr.msk.bf16.vlgmr.msra.gmra.mrb[12].mxu1 %vm978_vm2, %v1238_v15 }
 0x324   : > { %2805 = vmatprep.mubr.msk.bf16.mxu1 %vm3058_vm0, %v3057_v0 }
 0x3ea   : > { %v3295_v18 = vpop.f32.mrb[8].mxu0 }
 0x3eb   : > { %v2777_v19 = vpop.f32.mrb[9].mxu0 }
 0x3ec   : > { %v1139_v20 = vpop.f32.mrb[10].mxu0 }
 0x3ed   : > { %v2778_v21 = vpop.f32.mrb[11].mxu0 }
 0x3ee   : > { %v3297_v23 = vpop.f32.mrb[8].mxu1 }
 0x3ef   : > { %v1188_v24 = vpack.c.bf16 %v3297_v23, %v3295_v18  ;;  %v2783_v25 = vpop.f32.mrb[9].mxu1 }
 0x3f0   : > { %v1185_v26 = vpop.f32.mrb[10].mxu1 }
 0x3f1   : > { %v2784_v28 = vpop.f32.mrb[11].mxu1 }
 0x3f2   : > { %v1230_v29 = vpop.f32.mrb[12].mxu0 }
 0x3f3   : > { %v1282_v30 = vmul.f32 0.35355338, %v1230_v29  ;;  %v2789_v31 = vpop.f32.mrb[13].mxu0 }
 0x3f4   : > { %v1233_v32 = vpop.f32.mrb[14].mxu0 }
 0x3f5   : > { %v2790_v33 = vpop.f32.mrb[15].mxu0  ;;  %v1284_v36 = vadd.f32 %v1282_v30, %v3267_v43 }
 0x3f6   : > { %v1276_v37 = vpop.f32.mrb[12].mxu1 }
 0x3f7   : > { %v1283_v38 = vmul.f32 0.35355338, %v1276_v37  ;;  %v2795_v39 = vpop.f32.mrb[13].mxu1  ;;  %v1286_v40 = vsel %vm978_vm2, %v1284_v36, -inf }
 0x3f8   : > { %v1279_v41 = vpop.f32.mrb[14].mxu1  ;;  %1287 = vmax.xlane.f32.xlu1 %v1286_v40 }
 0x3f9   : > { %v2796_v42 = vpop.f32.mrb[15].mxu1  ;;  %v1285_v44 = vadd.f32 %v1283_v38, %v3267_v43 }
 0x3fb   : > { %v1289_v45 = vsel %vm978_vm2, %v1285_v44, -inf }
 0x3fc   : > { %1290 = vmax.xlane.f32.xlu0 %v1289_v45 }
 0x485   : > { %v1288_v46 = vpop.xlane.xlu1 %1287 }
 0x486   : > { %v1292_v47 = vsub.f32 %v1284_v36, %v1288_v46 }
 0x488   : > { %v1294_v48 = vmul.f32 1.442695, %v1292_v47 }
 0x489   : > { %v1291_v49 = vpop.xlane.xlu0 %1290 }
 0x48a   : > { %2967 = vpow2.f32 %v1294_v48  ;;  %v1293_v50 = vsub.f32 %v1285_v44, %v1291_v49 }
 0x48c   : > { %v1296_v51 = vmul.f32 1.442695, %v1293_v50 }
 0x48e   : > { %2969 = vpow2.f32 %v1296_v51 }
 0x494   : > { %v2968_v52 = vpop.eup %2967 }
 0x495   : > { %v1298_v53 = vsel %vm978_vm2, %v2968_v52, 0.0 }
 0x496   : > { %1299 = vadd.xlane.f32.xlu0 %v1298_v53 }
 0x498   : > { %v2970_v54 = vpop.eup %2969 }
 0x499   : > { %v1301_v55 = vsel %vm978_vm2, %v2970_v54, 0.0 }
 0x49a   : > { %1302 = vadd.xlane.f32.xlu1 %v1301_v55 }
 0x4ab   : > { %1360 = vrot.lane.b32.xlu1 %v3259_v35, %s3060_s25 }
 0x4ac   : > { %1311 = vrot.lane.b32.xlu0 %v3257_v34, %s3060_s25  ;;  %s841_s25 = scalar_lea.vmem %s3582_s12, %s3195_s22 }
 0x4af   : > { %1504 = vrot.lane.b32.xlu1 %v3235_v22, %s3061_s3 }
 0x4b3   : > { %1549 = vrot.lane.b32.xlu1 %v3237_v27, %s3061_s3 }
 0x523   : > { %v1300_v56 = vpop.xlane.xlu0 %1299 }
 0x524   : > { %2971 = vrcp.f32 %v1300_v56 }
 0x527   : > { %v1312_v57 = vpop.permute.xlu0 %1311  ;;  %v1303_v58 = vpop.xlane.xlu1 %1302 }
 0x528   : > { %v1317_v59 = vsel %vm1098_vm3, %v1312_v57, 0  ;;  %2973 = vrcp.f32 %v1303_v58 }
 0x529   : > { %2798 = vmatpush3.bf16.msra.mxu0 %v1317_v59 }
 0x52a   : > { %2809 = vmatprep.subr.bf16.mxu0 %v3057_v0 }
 0x52b   : > { %v1361_v61 = vpop.permute.xlu1 %1360 }
 0x52c   : > { %v1366_v62 = vsel %vm1098_vm3, %v1361_v61, 0 }
 0x52d   : > { %2804 = vmatpush3.bf16.msra.mxu1 %v1366_v62 }
 0x52e   : > { %v2972_v1 = vpop.eup %2971  ;;  %2815 = vmatprep.subr.bf16.mxu1 %v3057_v0 }
 0x52f   : > { %v1306_v3 = vmul.f32 %v2972_v1, %v2968_v52  ;;  %v1505_v13 = vpop.permute.xlu1 %1504 }
 0x530   : > { %v1507_v25 = vsel %vm978_vm2, %v1505_v13, 0 }
 0x531   : > { %v1308_v4 = vpack.c.bf16 %v1306_v3, %v1306_v3 }
 0x532   : > { %v2974_v7 = vpop.eup %2973 }
 0x533   : > { %v1307_v8 = vmul.f32 %v2974_v7, %v2970_v54  ;;  %2800 = vmatmul.mubr.msk.bf16.vlgmr.msra.gmra.mrb[16].mxu0 %vm978_vm2, %v1308_v4  ;;  %v1550_v14 = vpop.permute.xlu1 %1549 }
 0x534   : > { %2810 = vmatpush3.bf16.msra.mxu0 %v1414_v6  ;;  %2811 = vmatprep.mubr.msk.bf16.mxu0 %vm3058_vm0, %v3057_v0  ;;  %v1552_v15 = vsel %vm978_vm2, %v1550_v14, 0 }
 0x535   : > { %v1309_v9 = vpack.c.bf16 %v1307_v8, %v1307_v8  ;;  %2821 = vmatprep.subr.bf16.mxu0 %v3057_v0 }
 0x537   : > { %2806 = vmatmul.mubr.msk.bf16.vlgmr.msra.gmra.mrb[16].mxu1 %vm978_vm2, %v1309_v9 }
 0x538   : > { %2816 = vmatpush3.bf16.msra.mxu1 %v1461_v12  ;;  %2817 = vmatprep.mubr.msk.bf16.mxu1 %vm3058_vm0, %v3057_v0 }
 0x539   : > { %2827 = vmatprep.subr.bf16.mxu1 %v3057_v0 }
 0x53f   : > { %2818 = vmatmul.mubr.msk.bf16.vlgmr.msra.gmra.mrb[20].mxu1 %vm978_vm2, %v1188_v24 }
 0x540   : > { %2829 = vmatprep.mubr.msk.bf16.mxu1 %vm3058_vm0, %v3057_v0 }
 0x541   : > { %2828 = vmatpush3.bf16.xpose.msra.mxu1 %v1552_v15 }
 0x542   : > { %2839 = vmatprep.subr.bf16.mxu1 %v3057_v0 }
 0x548   : > { %2830 = vmatmul.mubr.msk.bf16.vlgmr.msra.gmra.mrb[24].mxu1 %vm978_vm2, %v1550_v14 }
 0x549   : > { %2841 = vmatprep.mubr.msk.bf16.mxu1 %vm3058_vm0, %v3057_v0 }
 0x606   : > { %v1353_v16 = vpop.f32.mrb[16].mxu0 }
 0x607   : > { %v2801_v17 = vpop.f32.mrb[17].mxu0 }
 0x608   : > { %v1356_v19 = vpop.f32.mrb[18].mxu0 }
 0x609   : > { %v2802_v20 = vpop.f32.mrb[19].mxu0 }
 0x60a   : > { %v1402_v18 = vpop.f32.mrb[16].mxu1 }
 0x60b   : > { %v1408_v21 = vpack.c.bf16 %v1402_v18, %v1353_v16  ;;  %v2807_v23 = vpop.f32.mrb[17].mxu1 }
 0x60c   : > { %v1405_v24 = vpop.f32.mrb[18].mxu1 }
 0x60d   : > { %v2808_v26 = vpop.f32.mrb[19].mxu1  ;;  %2812 = vmatmul.mubr.msk.bf16.vlgmr.msra.gmra.mrb[20].mxu0 %vm978_vm2, %v1408_v21 }
 0x60e   : > { %2822 = vmatpush3.bf16.xpose.msra.mxu0 %v1507_v25  ;;  %2823 = vmatprep.mubr.msk.bf16.mxu0 %vm3058_vm0, %v3057_v0 }
 0x60f   : > { %2833 = vmatprep.subr.bf16.mxu0 %v3057_v0 }
 0x612   : > { %v1497_v28 = vpop.f32.mrb[20].mxu1 }
 0x613   : > { %v2819_v29 = vpop.f32.mrb[21].mxu1 }
 0x614   : > { %v1500_v30 = vpop.f32.mrb[22].mxu1 }
 0x615   : > { %v2820_v31 = vpop.f32.mrb[23].mxu1  ;;  %2824 = vmatmul.mubr.msk.bf16.vlgmr.msra.gmra.mrb[24].mxu0 %vm978_vm2, %v1505_v13  ;;  %v864_v13 = vld [vmem:[%s3320_s28 + $0x10] sm:$0xff] }
 0x616   : > { %2835 = vmatprep.mubr.msk.bf16.mxu0 %vm3058_vm0, %v3057_v0  ;;  %v1719_v14 = vpack.c.bf16 %v864_v13, %v864_v13 }
 0x618   : > { %v1724_v19 = vsel %vm1098_vm3, %v1719_v14, 0 }
 0x61b   : > { %v1588_v32 = vpop.f32.mrb[24].mxu1 }
 0x61c   : > { %v1595_v33 = vmul.f32 0.35355338, %v1588_v32  ;;  %v2831_v36 = vpop.f32.mrb[25].mxu1 }
 0x61d   : > { %v1591_v37 = vpop.f32.mrb[26].mxu1 }
 0x61e   : > { %v2832_v38 = vpop.f32.mrb[27].mxu1  ;;  %v1597_v39 = vadd.f32 %v1595_v33, %v3267_v43 }
 0x620   : > { %v1601_v40 = vsel %vm978_vm2, %v1597_v39, -inf }
 0x621   : > { %1602 = vmax.xlane.f32.xlu1 %v1601_v40 }
 0x632   : > { %1670 = vrot.lane.b32.xlu1 %v3259_v35, %s3061_s3 }
 0x636   : > { %1769 = vrot.lane.b32.xlu1 %v3235_v22, %s3062_s29 }
 0x63a   : > { %1814 = vrot.lane.b32.xlu1 %v3237_v27, %s3062_s29 }
 0x6ae   : > { %v1603_v41 = vpop.xlane.xlu1 %1602 }
 0x6af   : > { %v1605_v45 = vsub.f32 %v1597_v39, %v1603_v41 }
 0x6b1   : > { %v1608_v46 = vmul.f32 1.442695, %v1605_v45 }
 0x6b2   : > { %v1671_v42 = vpop.permute.xlu1 %1670 }
 0x6b3   : > { %v1676_v44 = vsel %vm1098_vm3, %v1671_v42, 0  ;;  %2975 = vpow2.f32 %v1608_v46 }
 0x6b4   : > { %2840 = vmatpush3.bf16.msra.mxu1 %v1676_v44 }
 0x6b5   : > { %2851 = vmatprep.subr.bf16.mxu1 %v3057_v0 }
 0x6b6   : > { %v1770_v5 = vpop.permute.xlu1 %1769 }
 0x6b7   : > { %v1772_v7 = vsel %vm978_vm2, %v1770_v5, 0 }
 0x6ba   : > { %v1815_v32 = vpop.permute.xlu1 %1814 }
 0x6bb   : > { %v1817_v40 = vsel %vm978_vm2, %v1815_v32, 0 }
 0x6bd   : > { %v2976_v58 = vpop.eup %2975 }
 0x6be   : > { %v1613_v59 = vsel %vm978_vm2, %v2976_v58, 0.0 }
 0x6e0   : > { %v1450_v47 = vpop.f32.mrb[20].mxu0 }
 0x6e1   : > { %v3366_v48 = vadd.f32 %v1497_v28, %v1450_v47  ;;  %v2813_v49 = vpop.f32.mrb[21].mxu0 }
 0x6e2   : > { %v1453_v50 = vpop.f32.mrb[22].mxu0 }
 0x6e3   : > { %v3368_v51 = vadd.f32 %v1500_v30, %v1453_v50  ;;  %v2814_v22 = vpop.f32.mrb[23].mxu0 }
 0x6e8   : > { %v1543_v52 = vpop.f32.mrb[24].mxu0 }
 0x6e9   : > { %v1594_v27 = vmul.f32 0.35355338, %v1543_v52  ;;  %v2825_v53 = vpop.f32.mrb[25].mxu0 }
 0x6ea   : > { %v1546_v54 = vpop.f32.mrb[26].mxu0 }
 0x6eb   : > { %v2826_v55 = vpop.f32.mrb[27].mxu0  ;;  %v1596_v56 = vadd.f32 %v1594_v27, %v3267_v43 }
 0x6ed   : > { %v1598_v57 = vsel %vm978_vm2, %v1596_v56, -inf }
 0x6ee   : > { %1599 = vmax.xlane.f32.xlu0 %v1598_v57 }
 0x6f2   : > { %1614 = vadd.xlane.f32.xlu0 %v1613_v59 }
 0x77b   : > { %v1600_v60 = vpop.xlane.xlu0 %1599 }
 0x77c   : > { %v1604_v61 = vsub.f32 %v1596_v56, %v1600_v60 }
 0x77e   : > { %v1606_v62 = vmul.f32 1.442695, %v1604_v61 }
 0x77f   : > { %v1615_v63 = vpop.xlane.xlu0 %1614 }
 0x780   : > { %2977 = vpow2.f32 %v1606_v62 }
 0x781   : > { %2979 = vrcp.f32 %v1615_v63 }
 0x78a   : > { %v2978_v1 = vpop.eup %2977 }
 0x78b   : > { %v2980_v2 = vpop.eup %2979  ;;  %v1610_v3 = vsel %vm978_vm2, %v2978_v1, 0.0 }
 0x78c   : > { %v1619_v4 = vmul.f32 %v2980_v2, %v2976_v58  ;;  %1611 = vadd.xlane.f32.xlu0 %v1610_v3 }
 0x78e   : > { %v1621_v6 = vpack.c.bf16 %v1619_v4, %v1619_v4 }
 0x790   : > { %2842 = vmatmul.mubr.msk.bf16.vlgmr.msra.gmra.mrb[28].mxu1 %vm978_vm2, %v1621_v6 }
 0x791   : > { %2852 = vmatpush3.bf16.xpose.msra.mxu1 %v1772_v7  ;;  %2853 = vmatprep.mubr.msk.bf16.mxu1 %vm3058_vm0, %v3057_v0 }
 0x792   : > { %2863 = vmatprep.subr.bf16.mxu1 %v3057_v0 }
 0x798   : > { %2854 = vmatmul.mubr.msk.bf16.vlgmr.msra.gmra.mrb[32].mxu1 %vm978_vm2, %v1770_v5 }
 0x799   : > { %2865 = vmatprep.mubr.msk.bf16.mxu1 %vm3058_vm0, %v3057_v0 }
 0x7a2   : > { %1622 = vrot.lane.b32.xlu0 %v3257_v34, %s3061_s3 }
 0x819   : > { %v1612_v8 = vpop.xlane.xlu0 %1611 }
 0x81a   : > { %2981 = vrcp.f32 %v1612_v8 }
 0x81d   : > { %v1623_v9 = vpop.permute.xlu0 %1622 }
 0x81e   : > { %v1628_v12 = vsel %vm1098_vm3, %v1623_v9, 0  ;;  %v865_v9 = vld [vmem:[%s3320_s28 + $0x18] sm:$0xff]  ;;  %s822_s28 = scalar_lea.vmem %s3577_s7, %s3195_s22 }
 0x81f   : > { %2834 = vmatpush3.bf16.msra.mxu0 %v1628_v12  ;;  %v1984_v12 = vpack.c.bf16 %v865_v9, %v865_v9 }
 0x820   : > { %2845 = vmatprep.subr.bf16.mxu0 %v3057_v0 }
 0x821   : > { %v1989_v13 = vsel %vm1098_vm3, %v1984_v12, 0  ;;  %v2153_v12 = vld [vmem:[%s3453_s26 + $0x20] sm:$0xff] }
 0x824   : > { %v2982_v15 = vpop.eup %2981 }
 0x825   : > { %v1618_v16 = vmul.f32 %v2982_v15, %v2978_v1 }
 0x827   : > { %v1620_v17 = vpack.c.bf16 %v1618_v16, %v1618_v16 }
 0x829   : > { %2836 = vmatmul.mubr.msk.bf16.vlgmr.msra.gmra.mrb[28].mxu0 %vm978_vm2, %v1620_v17 }
 0x82a   : > { %2846 = vmatpush3.bf16.msra.mxu0 %v1724_v19  ;;  %2847 = vmatprep.mubr.msk.bf16.mxu0 %vm3058_vm0, %v3057_v0 }
 0x82b   : > { %2857 = vmatprep.subr.bf16.mxu0 %v3057_v0 }
 0x863   : > { %v1712_v20 = vpop.f32.mrb[28].mxu1 }
 0x864   : > { %v2843_v18 = vpop.f32.mrb[29].mxu1 }
 0x865   : > { %v1715_v21 = vpop.f32.mrb[30].mxu1 }
 0x866   : > { %v2844_v23 = vpop.f32.mrb[31].mxu1 }
 0x86b   : > { %v1808_v24 = vpop.f32.mrb[32].mxu1 }
 0x86c   : > { %v1859_v25 = vmul.f32 0.35355338, %v1808_v24  ;;  %v2855_v26 = vpop.f32.mrb[33].mxu1  ;;  %v2660_v24 = vld [vmem:[%s819_s20] ss:$0 sm:$0xff] }
 0x86d   : > { %v1811_v28 = vpop.f32.mrb[34].mxu1 }
 0x86e   : > { %v2856_v29 = vpop.f32.mrb[35].mxu1  ;;  %v1861_v30 = vadd.f32 %v1859_v25, %v3267_v43 }
 0x870   : > { %v1863_v31 = vsel %vm978_vm2, %v1861_v30, -inf }
 0x871   : > { %1864 = vmax.xlane.f32.xlu0 %v1863_v31 }
 0x8fc   : > { %v1664_v33 = vpop.f32.mrb[28].mxu0 }
 0x8fd   : > { %v1718_v36 = vpack.c.bf16 %v1712_v20, %v1664_v33  ;;  %v2837_v37 = vpop.f32.mrb[29].mxu0 }
 0x8fe   : > { %v1865_v38 = vpop.xlane.xlu0 %1864  ;;  %v1667_v39 = vpop.f32.mrb[30].mxu0 }
 0x8ff   : > { %v1869_v41 = vsub.f32 %v1861_v30, %v1865_v38  ;;  %v2838_v42 = vpop.f32.mrb[31].mxu0  ;;  %2848 = vmatmul.mubr.msk.bf16.vlgmr.msra.gmra.mrb[32].mxu0 %vm978_vm2, %v1718_v36 }
 0x900   : > { %2858 = vmatpush3.bf16.xpose.msra.mxu0 %v1817_v40  ;;  %2859 = vmatprep.mubr.msk.bf16.mxu0 %vm3058_vm0, %v3057_v0 }
 0x901   : > { %v1871_v44 = vmul.f32 1.442695, %v1869_v41  ;;  %2869 = vmatprep.subr.bf16.mxu0 %v3057_v0 }
 0x903   : > { %2983 = vpow2.f32 %v1871_v44 }
 0x907   : > { %2860 = vmatmul.mubr.msk.bf16.vlgmr.msra.gmra.mrb[36].mxu0 %vm978_vm2, %v1815_v32 }
 0x908   : > { %2871 = vmatprep.mubr.msk.bf16.mxu0 %vm3058_vm0, %v3057_v0 }
 0x90d   : > { %v2984_v45 = vpop.eup %2983 }
 0x90e   : > { %v1875_v46 = vsel %vm978_vm2, %v2984_v45, 0.0 }
 0x90f   : > { %1876 = vadd.xlane.f32.xlu0 %v1875_v46 }
 0x9d2   : > { %v1760_v47 = vpop.f32.mrb[32].mxu0 }
 0x9d3   : > { %v3404_v49 = vadd.f32 %v1760_v47, %v3366_v48  ;;  %v2849_v50 = vpop.f32.mrb[33].mxu0 }
 0x9d4   : > { %v1763_v22 = vpop.f32.mrb[34].mxu0 }
 0x9d5   : > { %v3407_v52 = vadd.f32 %v1763_v22, %v3368_v51  ;;  %v2850_v27 = vpop.f32.mrb[35].mxu0  ;;  %v2090_v22 = vld [vmem:[%s830_s23 + $0x8] sm:$0xff] }
 0x9d6   : > { %v2091_v27 = vld [vmem:[%s830_s23 + $0x10] sm:$0xff] }
 0x9da   : > { %v1853_v53 = vpop.f32.mrb[36].mxu0 }
 0x9db   : > { %v1860_v54 = vmul.f32 0.35355338, %v1853_v53  ;;  %v2861_v55 = vpop.f32.mrb[37].mxu0  ;;  %v2092_v53 = vld [vmem:[%s830_s23 + $0x18] sm:$0xff] }
 0x9dc   : > { %v1856_v56 = vpop.f32.mrb[38].mxu0  ;;  %v2149_v55 = vld [vmem:[%s3453_s26] sm:$0xff] }
 0x9dd   : > { %v2862_v57 = vpop.f32.mrb[39].mxu0  ;;  %v1862_v58 = vadd.f32 %v1860_v54, %v3267_v43  ;;  %v1877_v43 = vpop.xlane.xlu0 %1876  ;;  %v2095_v54 = vpack.c.bf16 %v2092_v53, %v2091_v27  ;;  %v2150_v56 = vld [vmem:[%s3453_s26 + $0x8] sm:$0xff] }
 0x9de   : > { %v2151_v57 = vld [vmem:[%s3453_s26 + $0x10] sm:$0xff] }
 0x9df   : > { %v1866_v59 = vsel %vm978_vm2, %v1862_v58, -inf }
 0x9e0   : > { %1867 = vmax.xlane.f32.xlu1 %v1866_v59  ;;  %v2152_v59 = vld [vmem:[%s3453_s26 + $0x18] sm:$0xff] }
 0x9f1   : > { %1935 = vrot.lane.b32.xlu1 %v3259_v35, %s3062_s29 }
 0xa6d   : > { %v1868_v48 = vpop.xlane.xlu1 %1867 }
 0xa6e   : > { %v1870_v60 = vsub.f32 %v1862_v58, %v1868_v48  ;;  %v2158_v58 = vpack.c.bf16 %v2150_v56, %v2149_v55  ;;  %v2159_v48 = vpack.c.bf16 %v2152_v59, %v2151_v57 }
 0xa70   : > { %v1873_v61 = vmul.f32 1.442695, %v1870_v60 }
 0xa71   : > { %v1936_v62 = vpop.permute.xlu1 %1935 }
 0xa72   : > { %2985 = vpow2.f32 %v1873_v61  ;;  %v1941_v51 = vsel %vm1098_vm3, %v1936_v62, 0 }
 0xa73   : > { %2870 = vmatpush3.bf16.msra.mxu0 %v1941_v51  ;;  %2987 = vrcp.f32 %v1877_v43 }
 0xa74   : > { %2881 = vmatprep.subr.bf16.mxu0 %v3057_v0 }
 0xa7c   : > { %v2986_v63 = vpop.eup %2985 }
 0xa7d   : > { %v1878_v1 = vsel %vm978_vm2, %v2986_v63, 0.0  ;;  %v2988_v35 = vpop.eup %2987 }
 0xa7e   : > { %1879 = vadd.xlane.f32.xlu0 %v1878_v1  ;;  %v1883_v3 = vmul.f32 %v2988_v35, %v2984_v45  ;;  %v2661_v35 = vld [vmem:[%s822_s28] ss:$0 sm:$0xff] }
 0xa80   : > { %v1885_v6 = vpack.c.bf16 %v1883_v3, %v1883_v3 }
 0xa94   : > { %1887 = vrot.lane.b32.xlu0 %v3257_v34, %s3062_s29  ;;  %s847_s29 = scalar_lea.vmem %s3584_s14, %s3195_s22 }
 0xb0b   : > { %v1880_v2 = vpop.xlane.xlu0 %1879 }
 0xb0c   : > { %2989 = vrcp.f32 %v1880_v2 }
 0xb0f   : > { %v1888_v4 = vpop.permute.xlu0 %1887 }
 0xb10   : > { %v1893_v5 = vsel %vm1098_vm3, %v1888_v4, 0 }
 0xb11   : > { %2864 = vmatpush3.bf16.msra.mxu1 %v1893_v5 }
 0xb12   : > { %2875 = vmatprep.subr.bf16.mxu1 %v3057_v0 }
 0xb14   : > { %2866 = vmatmul.mubr.msk.bf16.vlgmr.msra.gmra.mrb[36].mxu1 %vm978_vm2, %v1885_v6  ;;  %v2662_v6 = vld [vmem:[%s825_s30] ss:$0 sm:$0xff] }
 0xb15   : > { %2877 = vmatprep.mubr.msk.bf16.mxu1 %vm3058_vm0, %v3057_v0  ;;  %2876 = vmatpush3.bf16.msra.mxu1 %v1989_v13  ;;  %v2154_v13 = vld [vmem:[%s3453_s26 + $0x28] sm:$0xff] }
 0xb16   : > { %v2990_v34 = vpop.eup %2989  ;;  %2889 = vmatprep.subr.bf16.mxu1 %v3057_v0 }
 0xb17   : > { %v1884_v7 = vmul.f32 %v2990_v34, %v2986_v63 }
 0xb19   : > { %v1886_v8 = vpack.c.bf16 %v1884_v7, %v1884_v7 }
 0xb1b   : > { %2872 = vmatmul.mubr.msk.bf16.vlgmr.msra.gmra.mrb[40].mxu0 %vm978_vm2, %v1886_v8 }
 0xb1c   : > { %2885 = vmatprep.mubr.msk.bf16.mxu0 %vm3058_vm0, %v3057_v0 }
 0xbe7   : > { %v1929_v14 = vpop.f32.mrb[36].mxu1 }
 0xbe8   : > { %v2867_v15 = vpop.f32.mrb[37].mxu1 }
 0xbe9   : > { %v1932_v16 = vpop.f32.mrb[38].mxu1  ;;  %v2155_v15 = vld [vmem:[%s3453_s26 + $0x30] sm:$0xff] }
 0xbea   : > { %v2868_v17 = vpop.f32.mrb[39].mxu1  ;;  %v2156_v16 = vld [vmem:[%s3453_s26 + $0x38] sm:$0xff] }
 0xbeb   : > { %v2161_v17 = vpack.c.bf16 %v2156_v16, %v2155_v15 }
 0xbee   : > { %v1977_v19 = vpop.f32.mrb[40].mxu0 }
 0xbef   : > { %v1983_v20 = vpack.c.bf16 %v1977_v19, %v1929_v14  ;;  %v2873_v18 = vpop.f32.mrb[41].mxu0  ;;  %v2160_v14 = vpack.c.bf16 %v2154_v13, %v2153_v12  ;;  %v2663_v19 = vld [vmem:[%s833_s1] ss:$0 sm:$0xff] }
 0xbf0   : > { %v1980_v21 = vpop.f32.mrb[42].mxu0 }
 0xbf1   : > { %v2874_v23 = vpop.f32.mrb[43].mxu0  ;;  %2878 = vmatmul.mubr.msk.bf16.vlgmr.msra.gmra.mrb[40].mxu1 %vm978_vm2, %v1983_v20 }
 0xbf2   : > { %2897 = vmatprep.mubr.msk.bf16.mxu1 %vm3058_vm0, %v3057_v0  ;;  %2890 = vmatpush3.bf16.msra.mxu1 %v2158_v58  ;;  %v2667_v58 = vld [vmem:[%s844_s2] ss:$0 sm:$0xff] }
 0xbf3   : > { %2891 = vmatprep.subr.bf16.mxu1 %v3057_v0 }
 0xbf6   : > { %2892 = vmatpush3.bf16.msra.mxu1 %v2159_v48 }
 0xbf7   : > { %2893 = vmatprep.subr.bf16.mxu1 %v3057_v0 }
 0xbfa   : > { %2894 = vmatpush3.bf16.msra.mxu1 %v2160_v14 }
 0xbfb   : > { %2895 = vmatprep.subr.bf16.mxu1 %v3057_v0 }
 0xbfe   : > { %2896 = vmatpush3.bf16.msra.mxu1 %v2161_v17 }
 0xcc4   : > { %v2025_v25 = vpop.f32.mrb[40].mxu1 }
 0xcc5   : > { %v2032_v26 = vadd.f32 %v2025_v25, %v3404_v49  ;;  %v2879_v28 = vpop.f32.mrb[41].mxu1 }
 0xcc6   : > { %v2028_v29 = vpop.f32.mrb[42].mxu1 }
 0xcc7   : > { %v2040_v30 = vadd.f32 %v2660_v24, %v2032_v26  ;;  %v2033_v31 = vadd.f32 %v2028_v29, %v3407_v52  ;;  %v2880_v32 = vpop.f32.mrb[43].mxu1 }
 0xcc9   : > { %v2041_v33 = vadd.f32 %v2660_v24, %v2033_v31  ;;  %v2042_v36 = vadd.f32 %v2040_v30, %v3215_v10  ;;  %v2666_v30 = vld [vmem:[%s841_s25] ss:$0 sm:$0xff] }
 0xccb   : > { %v2046_v37 = vsel %vm876_vm1, %v2042_v36, 0.0  ;;  %v2043_v38 = vadd.f32 %v2041_v33, %v3217_v11  ;;  %v2089_v11 = vld [vmem:[%s830_s23] sm:$0xff] }
 0xccc   : > { %2047 = vadd.xlane.f32.xlu1 %v2046_v37  ;;  %v2094_v52 = vpack.c.bf16 %v2090_v22, %v2089_v11 }
 0xccd   : > { %v2049_v39 = vsel %vm876_vm1, %v2043_v38, 0.0 }
 0xcce   : > { %2050 = vadd.xlane.f32.xlu0 %v2049_v39  ;;  %2882 = vmatpush3.bf16.msra.mxu0 %v2094_v52 }
 0xccf   : > { %2883 = vmatprep.subr.bf16.mxu0 %v3057_v0 }
 0xcd2   : > { %2884 = vmatpush3.bf16.msra.mxu0 %v2095_v54 }
 0xd59   : > { %v2048_v40 = vpop.xlane.xlu1 %2047 }
 0xd5a   : > { %v2053_v41 = vmul.f32 0.03125, %v2048_v40 }
 0xd5b   : > { %v2051_v42 = vpop.xlane.xlu0 %2050 }
 0xd5c   : > { %v2055_v44 = vsub.f32 %v2042_v36, %v2053_v41  ;;  %v2054_v45 = vmul.f32 0.03125, %v2051_v42 }
 0xd5e   : > { %v2056_v46 = vsub.f32 %v2043_v38, %v2054_v45  ;;  %v2057_v47 = vmul.f32 %v2055_v44, %v2055_v44 }
 0xd60   : > { %v2059_v49 = vsel %vm876_vm1, %v2057_v47, 0.0  ;;  %v2058_v10 = vmul.f32 %v2056_v46, %v2056_v46 }
 0xd61   : > { %2060 = vadd.xlane.f32.xlu0 %v2059_v49 }
 0xd62   : > { %v2062_v50 = vsel %vm876_vm1, %v2058_v10, 0.0 }
 0xd63   : > { %2063 = vadd.xlane.f32.xlu1 %v2062_v50 }
 0xdee   : > { %v2061_v60 = vpop.xlane.xlu0 %2060 }
 0xdef   : > { %v2065_v61 = vmul.f32 0.03125, %v2061_v60  ;;  %v2668_v60 = vld [vmem:[%s847_s29] ss:$0 sm:$0xff] }
 0xdf0   : > { %v2064_v62 = vpop.xlane.xlu1 %2063 }
 0xdf1   : > { %v2067_v51 = vadd.f32 1e-05, %v2065_v61  ;;  %v2066_v63 = vmul.f32 0.03125, %v2064_v62 }
 0xdf3   : > { %2991 = vrsqrt.f32 %v2067_v51  ;;  %v2068_v1 = vadd.f32 1e-05, %v2066_v63 }
 0xdf5   : > { %2993 = vrsqrt.f32 %v2068_v1 }
 0xdfd   : > { %v2992_v43 = vpop.eup %2991 }
 0xdfe   : > { %v2071_v2 = vmul.f32 %v2992_v43, %v2055_v44  ;;  %v3063_v43 = vmov (!%p2669_p5), 0.0  }
 0xdff   : > { %v2994_v3 = vpop.eup %2993  ;;  %2266 = vst.msk [vmem:[#allocation2] sm:$0xff] (!%p2669_p5), %vm876_vm1, %v3063_v43  ;;  %2267 = vst.msk [vmem:[#allocation2 + $0x8] sm:$0xff] (!%p2669_p5), %vm876_vm1, %v3063_v43 }
 0xe00   : > { %v2079_v4 = vmul.f32 %v2661_v35, %v2071_v2  ;;  %v2072_v5 = vmul.f32 %v2994_v3, %v2056_v46 }
 0xe02   : > { %v2080_v34 = vmul.f32 %v2661_v35, %v2072_v5  ;;  %v2087_v7 = vadd.f32 %v2662_v6, %v2079_v4 }
 0xe04   : > { %v2088_v8 = vadd.f32 %v2662_v6, %v2080_v34 }
 0xe06   : > { %v2093_v9 = vpack.c.bf16 %v2088_v8, %v2087_v7 }
 0xe08   : > { %2886 = vmatmul.mubr.msk.bf16.vlgmr.msra.gmra.mrb[44].mxu0 %vm876_vm1, %v2093_v9 }
 0xedb   : > { %v2140_v20 = vpop.f32.mrb[44].mxu0 }
 0xedc   : > { %v2141_v18 = vadd.f32 %v2663_v19, %v2140_v20  ;;  %v2887_v21 = vpop.f32.mrb[45].mxu0 }
 0xedd   : > { %v2143_v23 = vpop.f32.mrb[46].mxu0 }
 0xede   : > { %v2144_v24 = vadd.f32 %v2663_v19, %v2143_v23  ;;  %v2888_v25 = vpop.f32.mrb[47].mxu0  ;;  %v2147_v26 = vmax.f32 %v2141_v18, 0.0 }
 0xee0   : > { %v2148_v28 = vmax.f32 %v2144_v24, 0.0 }
 0xee2   : > { %v2157_v0 = vpack.c.bf16 %v2148_v28, %v2147_v26 }
 0xee4   : > { %2898 = vmatmul.mubr.msk.bf16.vlgmr.msra.gmra.mrb[44].mxu1 %vm2162_vm5, %v2157_v0 }
 0xfb7   : > { %v2200_v29 = vpop.f32.mrb[44].mxu1 }
 0xfb8   : > { %v2207_v31 = vadd.f32 %v2200_v29, %v2087_v7  ;;  %v2899_v32 = vpop.f32.mrb[45].mxu1 }
 0xfb9   : > { %v2203_v33 = vpop.f32.mrb[46].mxu1 }
 0xfba   : > { %v2208_v36 = vadd.f32 %v2203_v33, %v2088_v8  ;;  %v2900_v37 = vpop.f32.mrb[47].mxu1  ;;  %v2216_v38 = vadd.f32 %v2666_v30, %v2207_v31 }
 0xfbc   : > { %v2220_v39 = vsel %vm876_vm1, %v2216_v38, 0.0  ;;  %v2217_v40 = vadd.f32 %v2666_v30, %v2208_v36 }
 0xfbd   : > { %2221 = vadd.xlane.f32.xlu0 %v2220_v39 }
 0xfbe   : > { %v2223_v41 = vsel %vm876_vm1, %v2217_v40, 0.0 }
 0xfbf   : > { %2224 = vadd.xlane.f32.xlu1 %v2223_v41 }
0x104a   : > { %v2222_v42 = vpop.xlane.xlu0 %2221 }
0x104b   : > { %v2226_v44 = vmul.f32 0.03125, %v2222_v42 }
0x104c   : > { %v2225_v45 = vpop.xlane.xlu1 %2224 }
0x104d   : > { %v2228_v46 = vsub.f32 %v2216_v38, %v2226_v44  ;;  %v2227_v47 = vmul.f32 0.03125, %v2225_v45 }
0x104f   : > { %v2229_v49 = vsub.f32 %v2217_v40, %v2227_v47  ;;  %v2230_v10 = vmul.f32 %v2228_v46, %v2228_v46 }
0x1051   : > { %v2232_v50 = vsel %vm876_vm1, %v2230_v10, 0.0  ;;  %v2231_v11 = vmul.f32 %v2229_v49, %v2229_v49 }
0x1052   : > { %2233 = vadd.xlane.f32.xlu0 %v2232_v50 }
0x1053   : > { %v2235_v22 = vsel %vm876_vm1, %v2231_v11, 0.0 }
0x1054   : > { %2236 = vadd.xlane.f32.xlu1 %v2235_v22 }
0x10df   : > { %v2234_v52 = vpop.xlane.xlu0 %2233 }
0x10e0   : > { %v2238_v27 = vmul.f32 0.03125, %v2234_v52 }
0x10e1   : > { %v2237_v53 = vpop.xlane.xlu1 %2236 }
0x10e2   : > { %v2240_v54 = vadd.f32 1e-05, %v2238_v27  ;;  %v2239_v55 = vmul.f32 0.03125, %v2237_v53 }
0x10e4   : > { %2995 = vrsqrt.f32 %v2240_v54  ;;  %v2241_v56 = vadd.f32 1e-05, %v2239_v55 }
0x10e6   : > { %2997 = vrsqrt.f32 %v2241_v56 }
0x10ee   : > { %v2996_v57 = vpop.eup %2995 }
0x10ef   : > { %v2244_v59 = vmul.f32 %v2996_v57, %v2228_v46  ;;  %2265 = sbr.rel (%p2669_p5) target bundleno = 4342 (0x10f6), region = 100 }
0x10f0   : > { %v2998_v48 = vpop.eup %2997 }
0x10f1   : > { %v2252_v61 = vmul.f32 %v2667_v58, %v2244_v59  ;;  %v2245_v62 = vmul.f32 %v2998_v48, %v2229_v49 }
0x10f3   : > { %v2260_v51 = vadd.f32 %v2668_v60, %v2252_v61  ;;  %v2253_v63 = vmul.f32 %v2667_v58, %v2245_v62 }
0x10f5   : > { %v2261_v1 = vadd.f32 %v2668_v60, %v2253_v63 }
0x10f6 PF: > { %v2268_v35 = vld [vmem:[#allocation2] sm:$0xff]  ;;  %v2269_v2 = vld [vmem:[#allocation2 + $0x8] sm:$0xff]  ;;  %p2670_p6 = scmp.ne.s32.totalorder %s3047_s0, 1 }
0x10f7   : > { %v2270_v3 = vadd.f32 %v2268_v35, %v2260_v51  ;;  %v2271_v4 = vadd.f32 %v2269_v2, %v2261_v1  ;;  %v2282_v5 = vld [vmem:[%s3585_s15] sm:$0xff] (!%p2670_p6)  ;;  %v2283_v6 = vld [vmem:[%s3585_s15 + $0x8] sm:$0xff] (!%p2670_p6)  ;;  %v2284_v34 = vld [vmem:[%s3585_s15 + $0x10] sm:$0xff] (!%p2670_p6)  ;;  %v3064_v7 = vmov (!%p2670_p6), 0.0   ;;  %vm3065_vm6 = vmmov (!%p2670_p6), 0  }
0x10f8   : > { %2277 = sbr.rel (%p2670_p6) target bundleno = 4811 (0x12cb), region = 104  ;;  %2901 = vmatprep.subr.bf16.mxu0 (!%p2670_p6), %v3064_v7  ;;  %v2287_v8 = vpack.c.bf16 (!%p2670_p6), %v2283_v6, %v2282_v5  ;;  %v2285_v9 = vld [vmem:[%s3585_s15 + $0x18] sm:$0xff] (!%p2670_p6)  ;;  %2905 = vmatprep.mubr.msk.bf16.mxu0 (!%p2670_p6), %vm3065_vm6, %v3064_v7  ;;  %v2342_v19 = vld [vmem:[%s3587_s17] sm:$0xff] (!%p2670_p6)  ;;  %v2343_v20 = vld [vmem:[%s3587_s17 + $0x8] sm:$0xff] (!%p2670_p6)  ;;  %vm2408_vm7 = vcmask (!%p2670_p6), 130048  }
0x10f9   : > { %2272 = vst.msk [vmem:[#allocation2] sm:$0xff] %vm876_vm1, %v2270_v3  ;;  %2273 = vst.msk [vmem:[#allocation2 + $0x8] sm:$0xff] %vm876_vm1, %v2271_v4  ;;  %2909 = vmatprep.subr.bf16.mxu1 (!%p2670_p6), %v3064_v7  ;;  %2913 = vmatprep.mubr.msk.bf16.mxu1 (!%p2670_p6), %vm3065_vm6, %v3064_v7  ;;  %v2288_v16 = vpack.c.bf16 (!%p2670_p6), %v2285_v9, %v2284_v34  ;;  %v2347_v18 = vpack.c.bf16 (!%p2670_p6), %v2343_v20, %v2342_v19  ;;  %v2344_v21 = vld [vmem:[%s3587_s17 + $0x10] sm:$0xff] (!%p2670_p6)  ;;  %v2345_v23 = vld [vmem:[%s3587_s17 + $0x18] sm:$0xff] (!%p2670_p6) }
0x10fa   : > { %2902 = vmatpush3.bf16.msra.mxu0 (!%p2670_p6), %v2287_v8  ;;  %v2348_v24 = vpack.c.bf16 (!%p2670_p6), %v2345_v23, %v2344_v21  ;;  %v2671_v25 = vld [vmem:[%s3586_s16] ss:$0 sm:$0xff] (!%p2670_p6) }
0x10fb   : > { %2903 = vmatprep.subr.bf16.mxu0 (!%p2670_p6), %v3064_v7  ;;  %2910 = vmatpush3.bf16.msra.mxu1 (!%p2670_p6), %v2347_v18  ;;  %v2673_v37 = vld [vmem:[%s3588_s18] ss:$0 sm:$0xff] (!%p2670_p6) }
0x10fc   : > { %2911 = vmatprep.subr.bf16.mxu1 (!%p2670_p6), %v3064_v7 }
0x10fe   : > { %2904 = vmatpush3.bf16.msra.mxu0 (!%p2670_p6), %v2288_v16 }
0x10ff   : > { %2912 = vmatpush3.bf16.msra.mxu1 %v2348_v24 }
0x1100   : > { %v2278_v12 = vld [vmem:[#allocation2] sm:$0xff]  ;;  %v2279_v13 = vld [vmem:[#allocation2 + $0x8] sm:$0xff] }
0x1101   : > { %v2280_v14 = vmul.f32 0.5, %v2278_v12  ;;  %v2281_v15 = vmul.f32 0.5, %v2279_v13 }
0x1103   : > { %v2286_v17 = vpack.c.bf16 %v2281_v15, %v2280_v14 }
0x1105   : > { %2906 = vmatmul.mubr.msk.bf16.vlgmr.msra.gmra.mrb[0].mxu0 %vm876_vm1, %v2286_v17 }
0x11d8   : > { %v2333_v26 = vpop.f32.mrb[0].mxu0 }
0x11d9   : > { %v2334_v28 = vadd.f32 %v2671_v25, %v2333_v26  ;;  %v2907_v0 = vpop.f32.mrb[1].mxu0 }
0x11da   : > { %v2336_v29 = vpop.f32.mrb[2].mxu0 }
0x11db   : > { %v2337_v30 = vadd.f32 %v2671_v25, %v2336_v29  ;;  %v2908_v31 = vpop.f32.mrb[3].mxu0  ;;  %v2340_v32 = vmax.f32 %v2334_v28, 0.0 }
0x11dd   : > { %v2341_v33 = vmax.f32 %v2337_v30, 0.0 }
0x11df   : > { %v2346_v36 = vpack.c.bf16 %v2341_v33, %v2340_v32 }
0x11e1   : > { %2914 = vmatmul.mubr.msk.bf16.vlgmr.msra.gmra.mrb[0].mxu1 %vm876_vm1, %v2346_v36 }
0x12b4   : > { %v2393_v38 = vpop.f32.mrb[0].mxu1 }
0x12b5   : > { %v2394_v39 = vadd.f32 %v2673_v37, %v2393_v38  ;;  %v2915_v40 = vpop.f32.mrb[1].mxu1 }
0x12b6   : > { %v2396_v41 = vpop.f32.mrb[2].mxu1 }
0x12b7   : > { %v2400_v42 = vmul.f32 0.5, %v2394_v39  ;;  %v2397_v44 = vadd.f32 %v2673_v37, %v2396_v41  ;;  %v2916_v45 = vpop.f32.mrb[3].mxu1 }
0x12b9   : > { %2999 = vtanh.f32 %v2400_v42  ;;  %v2401_v46 = vmul.f32 0.5, %v2397_v44 }
0x12bb   : > { %3001 = vtanh.f32 %v2401_v46 }
0x12c3   : > { %v3000_v47 = vpop.eup %2999 }
0x12c4   : > { %v2404_v49 = vadd.f32 1.0, %v3000_v47 }
0x12c5   : > { %v3002_v10 = vpop.eup %3001 }
0x12c6   : > { %v2406_v50 = vmul.f32 0.5, %v2404_v49  ;;  %v2405_v11 = vadd.f32 1.0, %v3002_v10 }
0x12c8   : > { %2409 = vst.msk [vmem:[#allocation3] sm:$0xff] %vm2408_vm7, %v2406_v50  ;;  %v2407_v22 = vmul.f32 0.5, %v2405_v11 }
0x12ca   : > { %2410 = vst.msk [vmem:[#allocation3 + $0x8] sm:$0xff] %vm2408_vm7, %v2407_v22 }
0x12cb PF: > { %s3605_s21 = sld [smem:[#allocation7_spill]]  ;;  %s3066_s24 = smov [#allocation3]  }
0x12cc   : > { %s2420_s0 = sshll.u32 %s3066_s24, 4  ;;  %s2421_s0 = int_to_ptr.vmem [resolvable:$true] %s2420_s0 }
0x12cd   : > { %s3003_s25 = scalar_lea.vmem %s2421_s0, 256  ;;  %p3010_p11 = scmp.lt.s32.totalorder %s2421_s0, %s2421_s0 }
0x12ce   : > { %p3004_p8 = scmp.ne.s32.totalorder %s2421_s0, %s3003_s25  ;;  %p3011_p12 = scmp.lt.s32.totalorder %s3003_s25, %s3003_s25 }
0x12d0   : > { %p3012_p13 = por %p3011_p12, %p3010_p11 }
0x12d1   : > { %s3606_s1 = sadd.s32 4294967295, %s3605_s21  }
0x12d2   : > { %p3535_p7 = scmp.eq.s32.totalorder %s3606_s1, 1 }
0x12d4   : > { %p3005_p9 = pnand %p3004_p8, %p3535_p7 }
0x12d6   : > { %p3006_p10 = pneg %p3005_p9 }
0x12d8   : > { %p3013_p0 = pnand %p3012_p13, %p3006_p10 }
0x12da   : > { %3016 = shalt.err (!%p3013_p0)
}
0x12db   : > { %s3608_s2 = sld [smem:[#allocation13_spill]] }
0x12e1   : > { %s3017_s27 = scalar_lea.hbm %s3608_s2, 256 }
0x12e2   : > { %p3018_p1 = scmp.ne.s32.totalorder %s3608_s2, %s3017_s27  ;;  %p3023_p4 = scmp.lt.u32.totalorder %s3017_s27, %s3608_s2 }
0x12e4   : > { %p3019_p2 = pnand %p3018_p1, %p3535_p7 }
0x12e6   : > { %p3020_p3 = pneg %p3019_p2 }
0x12e8   : > { %p3025_p5 = pnand %p3023_p4, %p3020_p3 }
0x12ea   : > { %3028 = shalt.err (!%p3025_p5)
}
0x12eb   : > { %s3067_s30 = smov 128   ;;  %s3068_s20 = smov 8  }
0x12ec   : > { %2918 = dma.vmem_to_hbm [thread:$0]  (%p3535_p7), %s2421_s0, 256, %s3608_s2, [#allocation4], %s3067_s30, %s3067_s30, %s3068_s20  }
0x12ed   : > { %3042 = dma.done.wait (%p3535_p7), [#allocation4], 256  }
0x12ee   : > { %3044 = vsyncadd (%p3535_p7), [#allocation4], 4294967040 }
0x12ef PF: > { %s3609_s24 = sld [smem:[#allocation7_spill]]  ;;  %s3610_s0 = sld [smem:[#allocation6_spill]] }
0x12f0   : > { %s3611_s30 = sld [smem:[#allocation8_spill]] }
0x12f5   : > { %s30_s20 = sadd.s32 1, %s3609_s24  }
0x12f6   : > { %p27_p6 = scmp.ge.s32.totalorder %s30_s20, 4  }
0x12f8   :  { %29 = sbr.rel (!%p27_p6) target bundleno = 8 (0x8), region = 174 }
0x12ff   :  { %2436 = vsyncpa [#allocation4], 1 }
0x1300   :  { %2438 = vsyncpa [#allocation4 + $0x1], 1 }

// kernel: lsktns_forward.3
= control target key start
LH: loop header
LB: loop body
LE: loop exit
PB: predicated region body
PF: predicated region fallthrough
CT: control target
= control target key end

     0   :  { %v3265_v0 = vmov 0.0   ;;  %vm3266_vm0 = vmmov 0   ;;  %vm108_vm1 = vcmask 261120   ;;  %vm210_vm2 = vcmask 64512   ;;  %s3270_s29 = smov 104   ;;  %s4005_s3 = inlined_call_operand.vmem [shape: f32[32,32], index: 3, kind: input, shape index: {}]   ;;  %s4006_s5 = inlined_call_operand.vmem [shape: f32[32,32], index: 5, kind: input, shape index: {}]   ;;  %s4007_s0 = inlined_call_operand.vmem [shape: f32[2,8,32], index: 0, kind: input, shape index: {}]   ;;  %s4008_s4 = inlined_call_operand.vmem [shape: f32[1,32], index: 4, kind: input, shape index: {}]   ;;  %s4009_s6 = inlined_call_operand.vmem [shape: f32[1,32], index: 6, kind: input, shape index: {}]   ;;  %s4010_s7 = inlined_call_operand.vmem [shape: f32[32,32], index: 7, kind: input, shape index: {}]   ;;  %s4011_s11 = inlined_call_operand.vmem [shape: f32[32,32], index: 11, kind: input, shape index: {}]   ;;  %s4012_s1 = inlined_call_operand.vmem [shape: f32[2,8,32], index: 1, kind: input, shape index: {}]   ;;  %s4013_s13 = inlined_call_operand.vmem [shape: f32[32,32], index: 13, kind: input, shape index: {}]   ;;  %s4014_s2 = inlined_call_operand.vmem [shape: f32[2,8,32], index: 2, kind: input, shape index: {}]   ;;  %s4015_s12 = inlined_call_operand.vmem [shape: f32[1,32], index: 12, kind: input, shape index: {}]   ;;  %s4016_s8 = inlined_call_operand.vmem [shape: f32[1,32], index: 8, kind: input, shape index: {}]   ;;  %s4017_s14 = inlined_call_operand.vmem [shape: f32[1,32], index: 14, kind: input, shape index: {}]   ;;  %s4018_s15 = inlined_call_operand.vmem [shape: f32[32,32], index: 15, kind: input, shape index: {}]   ;;  %s4019_s16 = inlined_call_operand.vmem [shape: f32[1,32], index: 16, kind: input, shape index: {}]   ;;  %s4020_s19 = inlined_call_operand.vmem [shape: f32[32,32], index: 19, kind: input, shape index: {}]   ;;  %s4021_s9 = inlined_call_operand.vmem [shape: f32[1,32], index: 9, kind: input, shape index: {}]   ;;  %s4022_s10 = inlined_call_operand.vmem [shape: f32[1,32], index: 10, kind: input, shape index: {}]   ;;  %s4023_s20 = inlined_call_operand.vmem [shape: f32[32,32], index: 20, kind: input, shape index: {}]   ;;  %s4024_s17 = inlined_call_operand.vmem [shape: f32[1,32], index: 17, kind: input, shape index: {}]   ;;  %s4025_s18 = inlined_call_operand.vmem [shape: f32[1,32], index: 18, kind: input, shape index: {}]   ;;  %s4026_s22 = inlined_call_operand.vmem [shape: f32[32,32], index: 22, kind: input, shape index: {}]   ;;  %s4027_s21 = inlined_call_operand.vmem [shape: f32[1,32], index: 21, kind: input, shape index: {}]   ;;  %s4028_s23 = inlined_call_operand.vmem [shape: f32[1,32], index: 23, kind: input, shape index: {}]   ;;  %s4029_s24 = inlined_call_operand.vmem [shape: f32[2,8,32], index: 24, kind: output, shape index: {}]  }
   0x1   :  { %4037 = sst [smem:[#allocation2_spill]] %s4005_s3  ;;  %2889 = vmatprep.subr.bf16.mxu0 %v3265_v0  ;;  %2893 = vmatprep.mubr.msk.bf16.mxu0 %vm3266_vm0, %v3265_v0  ;;  %vm330_vm3 = vcmask 1043456   ;;  %v202_v38 = vlaneseq  ;;  %v3267_v42 = vmov -1e+30  }
   0x2   :  { %4038 = sst [smem:[#allocation3_spill]] %s4006_s5  ;;  %s4046_s27 = sld [smem:[#allocation2_spill]]  ;;  %2897 = vmatprep.subr.bf16.mxu1 %v3265_v0  ;;  %2901 = vmatprep.mubr.msk.bf16.mxu1 %vm3266_vm0, %v3265_v0 }
   0x3   :  { %4039 = sst [smem:[#allocation4_spill]] %s4007_s0  ;;  %s4047_s25 = sld [smem:[#allocation3_spill]]  ;;  %v203_v39 = vshrl.u32 %v202_v38, 7  ;;  %v205_v40 = vand.u32 127, %v202_v38 }
   0x4   :  { %4040 = sst [smem:[#allocation5_spill]] %s4008_s4  ;;  %s4048_s28 = sld [smem:[#allocation4_spill]] }
   0x5   :  { %4041 = sst [smem:[#allocation6_spill]] %s4009_s6  ;;  %s4049_s4 = sld [smem:[#allocation5_spill]]  ;;  %vm206_vm4 = vcmp.le.s32.totalorder %v205_v40, %v203_v39 }
   0x6   :  { %4042 = sst [smem:[#allocation7_spill]] %s4010_s7  ;;  %s4050_s6 = sld [smem:[#allocation6_spill]]  ;;  %v3476_v43 = vsel %vm206_vm4, 0.0, %v3267_v42 }
   0x7   :  { %4043 = sst [smem:[#allocation8_spill]] %s4011_s11  ;;  %s3268_s5 = smov 120  }
   0x8   :  { %4044 = sst [smem:[#allocation9_spill]] %s4012_s1  ;;  %v84_v1 = vld [vmem:[%s4046_s27] sm:$0xff]  ;;  %v85_v2 = vld [vmem:[%s4046_s27 + $0x8] sm:$0xff]  ;;  %v86_v3 = vld [vmem:[%s4046_s27 + $0x10] sm:$0xff]  ;;  %s3269_s7 = smov 112  }
   0x9   :  { %4045 = sst [smem:[#allocation10_spill]] %s4013_s13  ;;  %v100_v4 = vpack.c.bf16 %v85_v2, %v84_v1  ;;  %v87_v5 = vld [vmem:[%s4046_s27 + $0x18] sm:$0xff]  ;;  %v89_v6 = vld [vmem:[%s4047_s25] sm:$0xff]  ;;  %v90_v7 = vld [vmem:[%s4047_s25 + $0x8] sm:$0xff]  ;;  %s4051_s11 = sld [smem:[#allocation7_spill]] }
   0xa   :  { %v91_v8 = vld [vmem:[%s4047_s25 + $0x10] sm:$0xff]  ;;  %v101_v9 = vpack.c.bf16 %v87_v5, %v86_v3  ;;  %v78_v10 = vld [vmem:[%s4048_s28] sm:$0xff]  ;;  %v79_v11 = vld [vmem:[%s4048_s28 + $0x8] sm:$0xff]  ;;  %v153_v12 = vpack.c.bf16 %v90_v7, %v89_v6  ;;  %s4052_s13 = sld [smem:[#allocation8_spill]]  ;;  %s4054_s3 = sld [smem:[#allocation10_spill]] }
   0xb   :  { %2890 = vmatpush3.bf16.msra.mxu0 %v100_v4  ;;  %v92_v13 = vld [vmem:[%s4047_s25 + $0x18] sm:$0xff]  ;;  %v99_v15 = vpack.c.bf16 %v79_v11, %v78_v10  ;;  %v2729_v16 = vld [vmem:[%s4049_s4] ss:$0 sm:$0xff]  ;;  %s4053_s25 = sld [smem:[#allocation9_spill]] }
   0xc   :  { %2891 = vmatprep.subr.bf16.mxu0 %v3265_v0  ;;  %2898 = vmatpush3.bf16.msra.mxu1 %v153_v12  ;;  %v154_v14 = vpack.c.bf16 %v92_v13, %v91_v8  ;;  %v2731_v31 = vld [vmem:[%s4050_s6] ss:$0 sm:$0xff] }
   0xd   :  { %2899 = vmatprep.subr.bf16.mxu1 %v3265_v0 }
   0xf   :  { %2892 = vmatpush3.bf16.msra.mxu0 %v101_v9 }
  0x10   :  { %2905 = vmatprep.subr.bf16.mxu0 %v3265_v0  ;;  %2900 = vmatpush3.bf16.msra.mxu1 %v154_v14 }
  0x11   :  { %2911 = vmatprep.subr.bf16.mxu1 %v3265_v0 }
  0x12   :  { %2894 = vmatmul.mubr.msk.bf16.vlgmr.msra.gmra.mrb[0].mxu0 %vm108_vm1, %v99_v15 }
  0x13   :  { %2907 = vmatprep.mubr.msk.bf16.mxu0 %vm3266_vm0, %v3265_v0  ;;  %2902 = vmatmul.mubr.msk.bf16.vlgmr.msra.gmra.mrb[0].mxu1 %vm108_vm1, %v99_v15 }
  0x14   :  { %2913 = vmatprep.mubr.msk.bf16.mxu1 %vm3266_vm0, %v3265_v0 }
  0xe5   :  { %v146_v17 = vpop.f32.mrb[0].mxu0 }
  0xe6   :  { %v147_v18 = vadd.f32 %v2729_v16, %v146_v17  ;;  %v2895_v19 = vpop.f32.mrb[1].mxu0  ;;  %v195_v21 = vpop.f32.mrb[0].mxu1 }
  0xe7   :  { %v149_v20 = vpop.f32.mrb[2].mxu0  ;;  %v2903_v25 = vpop.f32.mrb[1].mxu1  ;;  %v196_v32 = vadd.f32 %v2731_v31, %v195_v21 }
  0xe8   :  { %v3445_v22 = vpack.c.bf16 %v147_v18, %v147_v18  ;;  %v150_v23 = vadd.f32 %v2729_v16, %v149_v20  ;;  %v2896_v24 = vpop.f32.mrb[3].mxu0  ;;  %v198_v26 = vpop.f32.mrb[2].mxu1 }
  0xe9   :  { %v2904_v29 = vpop.f32.mrb[3].mxu1  ;;  %v199_v33 = vadd.f32 %v2731_v31, %v198_v26  ;;  %v3466_v34 = vpack.c.bf16 %v196_v32, %v196_v32 }
  0xea   :  { %v3447_v27 = vpack.c.bf16 %v150_v23, %v150_v23  ;;  %v212_v28 = vsel %vm210_vm2, %v3445_v22, 0 }
  0xeb   :  { %2906 = vmatpush3.bf16.xpose.msra.mxu0 %v212_v28  ;;  %v3468_v35 = vpack.c.bf16 %v199_v33, %v199_v33  ;;  %v332_v36 = vsel %vm330_vm3, %v3466_v34, 0 }
  0xec   :  { %v255_v30 = vsel %vm210_vm2, %v3447_v27, 0  ;;  %2917 = vmatprep.subr.bf16.mxu0 %v3265_v0 }
  0xed   :  { %2912 = vmatpush3.bf16.xpose.msra.mxu1 %v255_v30  ;;  %v378_v37 = vsel %vm330_vm3, %v3468_v35, 0 }
  0xee   :  { %2923 = vmatprep.subr.bf16.mxu1 %v3265_v0 }
  0xf2   :  { %2908 = vmatmul.mubr.msk.bf16.vlgmr.msra.gmra.mrb[4].mxu0 %vm210_vm2, %v3445_v22 }
  0xf3   :  { %2919 = vmatprep.mubr.msk.bf16.mxu0 %vm3266_vm0, %v3265_v0  ;;  %2918 = vmatpush3.bf16.msra.mxu0 %v332_v36 }
  0xf4   :  { %2914 = vmatmul.mubr.msk.bf16.vlgmr.msra.gmra.mrb[4].mxu1 %vm210_vm2, %v3447_v27  ;;  %2929 = vmatprep.subr.bf16.mxu0 %v3265_v0 }
  0xf5   :  { %2925 = vmatprep.mubr.msk.bf16.mxu1 %vm3266_vm0, %v3265_v0  ;;  %2924 = vmatpush3.bf16.msra.mxu1 %v378_v37 }
  0xf6   :  { %2935 = vmatprep.subr.bf16.mxu1 %v3265_v0 }
 0x1c5   :  { %v248_v41 = vpop.f32.mrb[4].mxu0 }
 0x1c6   :  { %v297_v44 = vmul.f32 0.35355338, %v248_v41  ;;  %v2909_v45 = vpop.f32.mrb[5].mxu0 }
 0x1c7   :  { %v251_v46 = vpop.f32.mrb[6].mxu0  ;;  %v291_v47 = vpop.f32.mrb[4].mxu1 }
 0x1c8   :  { %v298_v48 = vmul.f32 0.35355338, %v291_v47  ;;  %v2910_v49 = vpop.f32.mrb[7].mxu0  ;;  %v2915_v50 = vpop.f32.mrb[5].mxu1  ;;  %v299_v51 = vadd.f32 %v297_v44, %v3476_v43 }
 0x1c9   :  { %v294_v52 = vpop.f32.mrb[6].mxu1 }
 0x1ca   :  { %v2916_v53 = vpop.f32.mrb[7].mxu1  ;;  %v301_v54 = vsel %vm210_vm2, %v299_v51, -inf  ;;  %v300_v55 = vadd.f32 %v298_v48, %v3476_v43 }
 0x1cb   :  { %302 = vmax.xlane.f32.xlu0 %v301_v54 }
 0x1cc   :  { %v304_v56 = vsel %vm210_vm2, %v300_v55, -inf }
 0x1cf   :  { %305 = vmax.xlane.f32.xlu0 %v304_v56 }
 0x1e5   :  { %423 = vrot.lane.b32.xlu0 %v3445_v22, %s3268_s5 }
 0x258   :  { %v303_v57 = vpop.xlane.xlu0 %302 }
 0x259   :  { %v307_v58 = vsub.f32 %v299_v51, %v303_v57 }
 0x25b   :  { %v309_v59 = vmul.f32 1.442695, %v307_v58  ;;  %v95_v58 = vld [vmem:[%s4051_s11 + $0x8] sm:$0xff] }
 0x25c   :  { %v306_v60 = vpop.xlane.xlu0 %305 }
 0x25d   :  { %3191 = vpow2.f32 %v309_v59  ;;  %v308_v61 = vsub.f32 %v300_v55, %v306_v60 }
 0x25f   :  { %v311_v62 = vmul.f32 1.442695, %v308_v61  ;;  %v641_v61 = vpack.c.bf16 %v95_v58, %v95_v58 }
 0x260   :  { %v424_v8 = vpop.permute.xlu0 %423 }
 0x261   :  { %3193 = vpow2.f32 %v311_v62  ;;  %v426_v11 = vsel %vm210_vm2, %v424_v8, 0 }
 0x267   :  { %v3192_v63 = vpop.eup %3191 }
 0x268   :  { %v313_v1 = vsel %vm210_vm2, %v3192_v63, 0.0 }
 0x269   :  { %314 = vadd.xlane.f32.xlu1 %v313_v1 }
 0x26b   :  { %v3194_v2 = vpop.eup %3193 }
 0x26c   :  { %v316_v3 = vsel %vm210_vm2, %v3194_v2, 0.0 }
 0x26d   :  { %317 = vadd.xlane.f32.xlu1 %v316_v3 }
 0x27e   :  { %469 = vrot.lane.b32.xlu1 %v3447_v27, %s3268_s5 }
 0x2f6   :  { %v315_v4 = vpop.xlane.xlu1 %314 }
 0x2f7   :  { %3195 = vrcp.f32 %v315_v4  ;;  %v646_v4 = vsel %vm330_vm3, %v641_v61, 0 }
 0x2fa   :  { %v318_v5 = vpop.xlane.xlu1 %317 }
 0x2fb   :  { %3197 = vrcp.f32 %v318_v5 }
 0x2fe   :  { %v470_v13 = vpop.permute.xlu1 %469 }
 0x2ff   :  { %v472_v15 = vsel %vm210_vm2, %v470_v13, 0 }
 0x301   :  { %v3196_v6 = vpop.eup %3195 }
 0x302   :  { %v321_v7 = vmul.f32 %v3196_v6, %v3192_v63  ;;  %v94_v63 = vld [vmem:[%s4051_s11] sm:$0xff] }
 0x303   :  { %v421_v3 = vpack.c.bf16 %v94_v63, %v94_v63 }
 0x304   :  { %v323_v9 = vpack.c.bf16 %v321_v7, %v321_v7 }
 0x305   :  { %v3198_v10 = vpop.eup %3197 }
 0x306   :  { %v322_v12 = vmul.f32 %v3198_v10, %v3194_v2  ;;  %2920 = vmatmul.mubr.msk.bf16.vlgmr.msra.gmra.mrb[8].mxu0 %vm210_vm2, %v323_v9 }
 0x307   :  { %2930 = vmatpush3.bf16.xpose.msra.mxu0 %v426_v11  ;;  %2931 = vmatprep.mubr.msk.bf16.mxu0 %vm3266_vm0, %v3265_v0 }
 0x308   :  { %v324_v14 = vpack.c.bf16 %v322_v12, %v322_v12  ;;  %2941 = vmatprep.subr.bf16.mxu0 %v3265_v0 }
 0x30a   :  { %2926 = vmatmul.mubr.msk.bf16.vlgmr.msra.gmra.mrb[8].mxu1 %vm210_vm2, %v324_v14 }
 0x30b   :  { %2936 = vmatpush3.bf16.xpose.msra.mxu1 %v472_v15  ;;  %2937 = vmatprep.mubr.msk.bf16.mxu1 %vm3266_vm0, %v3265_v0 }
 0x30c   :  { %2947 = vmatprep.subr.bf16.mxu1 %v3265_v0 }
 0x30e   :  { %2932 = vmatmul.mubr.msk.bf16.vlgmr.msra.gmra.mrb[12].mxu0 %vm210_vm2, %v424_v8  ;;  %v693_v8 = vsel %vm330_vm3, %v421_v3, 0 }
 0x30f   :  { %2943 = vmatprep.mubr.msk.bf16.mxu0 %vm3266_vm0, %v3265_v0 }
 0x312   :  { %2938 = vmatmul.mubr.msk.bf16.vlgmr.msra.gmra.mrb[12].mxu1 %vm210_vm2, %v470_v13 }
 0x313   :  { %2949 = vmatprep.mubr.msk.bf16.mxu1 %vm3266_vm0, %v3265_v0 }
 0x3d9   :  { %v3504_v16 = vpop.f32.mrb[8].mxu0 }
 0x3da   :  { %v2921_v17 = vpop.f32.mrb[9].mxu0 }
 0x3db   :  { %v371_v18 = vpop.f32.mrb[10].mxu0 }
 0x3dc   :  { %v2922_v19 = vpop.f32.mrb[11].mxu0 }
 0x3dd   :  { %v3506_v20 = vpop.f32.mrb[8].mxu1 }
 0x3de   :  { %v420_v21 = vpack.c.bf16 %v3506_v20, %v3504_v16  ;;  %v2927_v23 = vpop.f32.mrb[9].mxu1 }
 0x3df   :  { %v417_v24 = vpop.f32.mrb[10].mxu1 }
 0x3e0   :  { %v2928_v25 = vpop.f32.mrb[11].mxu1 }
 0x3e1   :  { %v462_v26 = vpop.f32.mrb[12].mxu0 }
 0x3e2   :  { %v514_v28 = vmul.f32 0.35355338, %v462_v26  ;;  %v2933_v29 = vpop.f32.mrb[13].mxu0 }
 0x3e3   :  { %v465_v30 = vpop.f32.mrb[14].mxu0 }
 0x3e4   :  { %v2934_v31 = vpop.f32.mrb[15].mxu0  ;;  %v516_v32 = vadd.f32 %v514_v28, %v3476_v43 }
 0x3e5   :  { %v508_v33 = vpop.f32.mrb[12].mxu1 }
 0x3e6   :  { %v515_v36 = vmul.f32 0.35355338, %v508_v33  ;;  %v2939_v37 = vpop.f32.mrb[13].mxu1  ;;  %v518_v38 = vsel %vm210_vm2, %v516_v32, -inf }
 0x3e7   :  { %v511_v39 = vpop.f32.mrb[14].mxu1  ;;  %519 = vmax.xlane.f32.xlu1 %v518_v38 }
 0x3e8   :  { %v2940_v40 = vpop.f32.mrb[15].mxu1  ;;  %v517_v41 = vadd.f32 %v515_v36, %v3476_v43 }
 0x3ea   :  { %v521_v42 = vsel %vm210_vm2, %v517_v41, -inf }
 0x3eb   :  { %522 = vmax.xlane.f32.xlu0 %v521_v42 }
 0x474   :  { %v520_v44 = vpop.xlane.xlu1 %519 }
 0x475   :  { %v524_v45 = vsub.f32 %v516_v32, %v520_v44 }
 0x477   :  { %v526_v46 = vmul.f32 1.442695, %v524_v45 }
 0x478   :  { %v523_v47 = vpop.xlane.xlu0 %522 }
 0x479   :  { %3199 = vpow2.f32 %v526_v46  ;;  %v525_v48 = vsub.f32 %v517_v41, %v523_v47 }
 0x47b   :  { %v528_v49 = vmul.f32 1.442695, %v525_v48 }
 0x47d   :  { %3201 = vpow2.f32 %v528_v49 }
 0x483   :  { %v3200_v50 = vpop.eup %3199 }
 0x484   :  { %v530_v51 = vsel %vm210_vm2, %v3200_v50, 0.0 }
 0x485   :  { %531 = vadd.xlane.f32.xlu0 %v530_v51 }
 0x487   :  { %v3202_v52 = vpop.eup %3201 }
 0x488   :  { %v533_v53 = vsel %vm210_vm2, %v3202_v52, 0.0 }
 0x489   :  { %534 = vadd.xlane.f32.xlu1 %v533_v53 }
 0x49a   :  { %592 = vrot.lane.b32.xlu1 %v3468_v35, %s3268_s5 }
 0x49b   :  { %543 = vrot.lane.b32.xlu0 %v3466_v34, %s3268_s5 }
 0x49e   :  { %736 = vrot.lane.b32.xlu1 %v3445_v22, %s3269_s7 }
 0x4a2   :  { %781 = vrot.lane.b32.xlu1 %v3447_v27, %s3269_s7 }
 0x512   :  { %v532_v54 = vpop.xlane.xlu0 %531 }
 0x513   :  { %3203 = vrcp.f32 %v532_v54 }
 0x516   :  { %v544_v55 = vpop.permute.xlu0 %543  ;;  %v535_v56 = vpop.xlane.xlu1 %534 }
 0x517   :  { %v549_v57 = vsel %vm330_vm3, %v544_v55, 0  ;;  %3205 = vrcp.f32 %v535_v56 }
 0x518   :  { %2942 = vmatpush3.bf16.msra.mxu0 %v549_v57 }
 0x519   :  { %2953 = vmatprep.subr.bf16.mxu0 %v3265_v0 }
 0x51a   :  { %v593_v59 = vpop.permute.xlu1 %592 }
 0x51b   :  { %v598_v60 = vsel %vm330_vm3, %v593_v59, 0 }
 0x51c   :  { %2948 = vmatpush3.bf16.msra.mxu1 %v598_v60 }
 0x51d   :  { %v3204_v62 = vpop.eup %3203  ;;  %2959 = vmatprep.subr.bf16.mxu1 %v3265_v0 }
 0x51e   :  { %v538_v1 = vmul.f32 %v3204_v62, %v3200_v50  ;;  %v737_v9 = vpop.permute.xlu1 %736 }
 0x51f   :  { %v739_v20 = vsel %vm210_vm2, %v737_v9, 0 }
 0x520   :  { %v540_v2 = vpack.c.bf16 %v538_v1, %v538_v1 }
 0x521   :  { %v3206_v5 = vpop.eup %3205 }
 0x522   :  { %v539_v6 = vmul.f32 %v3206_v5, %v3202_v52  ;;  %2944 = vmatmul.mubr.msk.bf16.vlgmr.msra.gmra.mrb[16].mxu0 %vm210_vm2, %v540_v2  ;;  %v782_v10 = vpop.permute.xlu1 %781 }
 0x523   :  { %2954 = vmatpush3.bf16.msra.mxu0 %v646_v4  ;;  %2955 = vmatprep.mubr.msk.bf16.mxu0 %vm3266_vm0, %v3265_v0  ;;  %v784_v11 = vsel %vm210_vm2, %v782_v10, 0 }
 0x524   :  { %v541_v7 = vpack.c.bf16 %v539_v6, %v539_v6  ;;  %2965 = vmatprep.subr.bf16.mxu0 %v3265_v0 }
 0x526   :  { %2950 = vmatmul.mubr.msk.bf16.vlgmr.msra.gmra.mrb[16].mxu1 %vm210_vm2, %v541_v7  ;;  %v96_v7 = vld [vmem:[%s4051_s11 + $0x10] sm:$0xff] }
 0x527   :  { %2960 = vmatpush3.bf16.msra.mxu1 %v693_v8  ;;  %2961 = vmatprep.mubr.msk.bf16.mxu1 %vm3266_vm0, %v3265_v0  ;;  %v951_v8 = vpack.c.bf16 %v96_v7, %v96_v7  ;;  %v1323_v7 = vld [vmem:[%s4052_s13 + $0x10] sm:$0xff] }
 0x528   :  { %2971 = vmatprep.subr.bf16.mxu1 %v3265_v0 }
 0x52e   :  { %2962 = vmatmul.mubr.msk.bf16.vlgmr.msra.gmra.mrb[20].mxu1 %vm210_vm2, %v420_v21 }
 0x52f   :  { %2973 = vmatprep.mubr.msk.bf16.mxu1 %vm3266_vm0, %v3265_v0 }
 0x530   :  { %2972 = vmatpush3.bf16.xpose.msra.mxu1 %v784_v11 }
 0x531   :  { %2983 = vmatprep.subr.bf16.mxu1 %v3265_v0 }
 0x537   :  { %2974 = vmatmul.mubr.msk.bf16.vlgmr.msra.gmra.mrb[24].mxu1 %vm210_vm2, %v782_v10 }
 0x538   :  { %2985 = vmatprep.mubr.msk.bf16.mxu1 %vm3266_vm0, %v3265_v0 }
 0x5f5   :  { %v585_v12 = vpop.f32.mrb[16].mxu0 }
 0x5f6   :  { %v2945_v13 = vpop.f32.mrb[17].mxu0 }
 0x5f7   :  { %v588_v14 = vpop.f32.mrb[18].mxu0 }
 0x5f8   :  { %v2946_v15 = vpop.f32.mrb[19].mxu0 }
 0x5f9   :  { %v634_v16 = vpop.f32.mrb[16].mxu1 }
 0x5fa   :  { %v640_v17 = vpack.c.bf16 %v634_v16, %v585_v12  ;;  %v2951_v18 = vpop.f32.mrb[17].mxu1  ;;  %v956_v12 = vsel %vm330_vm3, %v951_v8, 0  ;;  %v1324_v8 = vld [vmem:[%s4052_s13 + $0x18] sm:$0xff] }
 0x5fb   :  { %v637_v19 = vpop.f32.mrb[18].mxu1 }
 0x5fc   :  { %v2952_v21 = vpop.f32.mrb[19].mxu1  ;;  %2956 = vmatmul.mubr.msk.bf16.vlgmr.msra.gmra.mrb[20].mxu0 %vm210_vm2, %v640_v17 }
 0x5fd   :  { %2966 = vmatpush3.bf16.xpose.msra.mxu0 %v739_v20  ;;  %2967 = vmatprep.mubr.msk.bf16.mxu0 %vm3266_vm0, %v3265_v0 }
 0x5fe   :  { %2977 = vmatprep.subr.bf16.mxu0 %v3265_v0 }
 0x601   :  { %v729_v23 = vpop.f32.mrb[20].mxu1 }
 0x602   :  { %v2963_v24 = vpop.f32.mrb[21].mxu1 }
 0x603   :  { %v732_v25 = vpop.f32.mrb[22].mxu1 }
 0x604   :  { %v2964_v26 = vpop.f32.mrb[23].mxu1  ;;  %2968 = vmatmul.mubr.msk.bf16.vlgmr.msra.gmra.mrb[24].mxu0 %vm210_vm2, %v737_v9 }
 0x605   :  { %2979 = vmatprep.mubr.msk.bf16.mxu0 %vm3266_vm0, %v3265_v0 }
 0x60a   :  { %v820_v28 = vpop.f32.mrb[24].mxu1 }
 0x60b   :  { %v827_v29 = vmul.f32 0.35355338, %v820_v28  ;;  %v2975_v30 = vpop.f32.mrb[25].mxu1 }
 0x60c   :  { %v823_v31 = vpop.f32.mrb[26].mxu1 }
 0x60d   :  { %v2976_v32 = vpop.f32.mrb[27].mxu1  ;;  %v829_v33 = vadd.f32 %v827_v29, %v3476_v43 }
 0x60f   :  { %v833_v36 = vsel %vm210_vm2, %v829_v33, -inf }
 0x610   :  { %834 = vmax.xlane.f32.xlu1 %v833_v36 }
 0x621   :  { %902 = vrot.lane.b32.xlu1 %v3468_v35, %s3269_s7 }
 0x625   :  { %1001 = vrot.lane.b32.xlu1 %v3445_v22, %s3270_s29 }
 0x629   :  { %1046 = vrot.lane.b32.xlu1 %v3447_v27, %s3270_s29 }
 0x69d   :  { %v835_v37 = vpop.xlane.xlu1 %834 }
 0x69e   :  { %v837_v40 = vsub.f32 %v829_v33, %v835_v37 }
 0x6a0   :  { %v840_v41 = vmul.f32 1.442695, %v837_v40 }
 0x6a1   :  { %v903_v38 = vpop.permute.xlu1 %902 }
 0x6a2   :  { %v908_v39 = vsel %vm330_vm3, %v903_v38, 0  ;;  %3207 = vpow2.f32 %v840_v41 }
 0x6a3   :  { %2984 = vmatpush3.bf16.msra.mxu1 %v908_v39 }
 0x6a4   :  { %2995 = vmatprep.subr.bf16.mxu1 %v3265_v0 }
 0x6a5   :  { %v1002_v1 = vpop.permute.xlu1 %1001 }
 0x6a6   :  { %v1004_v3 = vsel %vm210_vm2, %v1002_v1, 0 }
 0x6ac   :  { %v3208_v54 = vpop.eup %3207 }
 0x6ad   :  { %v845_v55 = vsel %vm210_vm2, %v3208_v54, 0.0 }
 0x6cf   :  { %v682_v42 = vpop.f32.mrb[20].mxu0 }
 0x6d0   :  { %v3573_v44 = vadd.f32 %v729_v23, %v682_v42  ;;  %v2957_v45 = vpop.f32.mrb[21].mxu0 }
 0x6d1   :  { %v685_v46 = vpop.f32.mrb[22].mxu0 }
 0x6d2   :  { %v3575_v47 = vadd.f32 %v732_v25, %v685_v46  ;;  %v2958_v22 = vpop.f32.mrb[23].mxu0  ;;  %v1047_v25 = vpop.permute.xlu1 %1046 }
 0x6d3   :  { %v1049_v32 = vsel %vm210_vm2, %v1047_v25, 0 }
 0x6d7   :  { %v775_v48 = vpop.f32.mrb[24].mxu0 }
 0x6d8   :  { %v826_v27 = vmul.f32 0.35355338, %v775_v48  ;;  %v2969_v49 = vpop.f32.mrb[25].mxu0 }
 0x6d9   :  { %v778_v50 = vpop.f32.mrb[26].mxu0 }
 0x6da   :  { %v2970_v51 = vpop.f32.mrb[27].mxu0  ;;  %v828_v52 = vadd.f32 %v826_v27, %v3476_v43 }
 0x6dc   :  { %v830_v53 = vsel %vm210_vm2, %v828_v52, -inf }
 0x6dd   :  { %831 = vmax.xlane.f32.xlu0 %v830_v53 }
 0x6e1   :  { %846 = vadd.xlane.f32.xlu0 %v845_v55 }
 0x76a   :  { %v832_v56 = vpop.xlane.xlu0 %831 }
 0x76b   :  { %v836_v57 = vsub.f32 %v828_v52, %v832_v56 }
 0x76d   :  { %v838_v58 = vmul.f32 1.442695, %v836_v57 }
 0x76e   :  { %v847_v59 = vpop.xlane.xlu0 %846 }
 0x76f   :  { %3209 = vpow2.f32 %v838_v58 }
 0x770   :  { %3211 = vrcp.f32 %v847_v59 }
 0x779   :  { %v3210_v60 = vpop.eup %3209 }
 0x77a   :  { %v3212_v61 = vpop.eup %3211  ;;  %v842_v62 = vsel %vm210_vm2, %v3210_v60, 0.0 }
 0x77b   :  { %v851_v63 = vmul.f32 %v3212_v61, %v3208_v54  ;;  %843 = vadd.xlane.f32.xlu0 %v842_v62 }
 0x77d   :  { %v853_v2 = vpack.c.bf16 %v851_v63, %v851_v63 }
 0x77f   :  { %2986 = vmatmul.mubr.msk.bf16.vlgmr.msra.gmra.mrb[28].mxu1 %vm210_vm2, %v853_v2  ;;  %v1321_v2 = vld [vmem:[%s4052_s13] sm:$0xff] }
 0x780   :  { %2996 = vmatpush3.bf16.xpose.msra.mxu1 %v1004_v3  ;;  %2997 = vmatprep.mubr.msk.bf16.mxu1 %vm3266_vm0, %v3265_v0 }
 0x781   :  { %3007 = vmatprep.subr.bf16.mxu1 %v3265_v0 }
 0x787   :  { %2998 = vmatmul.mubr.msk.bf16.vlgmr.msra.gmra.mrb[32].mxu1 %vm210_vm2, %v1002_v1 }
 0x788   :  { %3009 = vmatprep.mubr.msk.bf16.mxu1 %vm3266_vm0, %v3265_v0 }
 0x791   :  { %854 = vrot.lane.b32.xlu0 %v3466_v34, %s3269_s7 }
 0x808   :  { %v844_v4 = vpop.xlane.xlu0 %843 }
 0x809   :  { %3213 = vrcp.f32 %v844_v4 }
 0x80c   :  { %v855_v5 = vpop.permute.xlu0 %854 }
 0x80d   :  { %v860_v6 = vsel %vm330_vm3, %v855_v5, 0 }
 0x80e   :  { %2978 = vmatpush3.bf16.msra.mxu0 %v860_v6 }
 0x80f   :  { %2989 = vmatprep.subr.bf16.mxu0 %v3265_v0 }
 0x813   :  { %v3214_v9 = vpop.eup %3213 }
 0x814   :  { %v850_v10 = vmul.f32 %v3214_v9, %v3210_v60  ;;  %v1338_v9 = vpack.c.bf16 %v1324_v8, %v1323_v7 }
 0x816   :  { %v852_v11 = vpack.c.bf16 %v850_v10, %v850_v10  ;;  %v3650_v10 = vld [vmem:[%s4053_s25] sm:$0xff] }
 0x818   :  { %2980 = vmatmul.mubr.msk.bf16.vlgmr.msra.gmra.mrb[28].mxu0 %vm210_vm2, %v852_v11  ;;  %v3655_v11 = vld [vmem:[%s4053_s25 + $0x8] sm:$0xff] }
 0x819   :  { %2990 = vmatpush3.bf16.msra.mxu0 %v956_v12  ;;  %2991 = vmatprep.mubr.msk.bf16.mxu0 %vm3266_vm0, %v3265_v0  ;;  %v1336_v12 = vpack.c.bf16 %v3655_v11, %v3650_v10 }
 0x81a   :  { %3001 = vmatprep.subr.bf16.mxu0 %v3265_v0 }
 0x852   :  { %v944_v13 = vpop.f32.mrb[28].mxu1 }
 0x853   :  { %v2987_v14 = vpop.f32.mrb[29].mxu1 }
 0x854   :  { %v947_v15 = vpop.f32.mrb[30].mxu1 }
 0x855   :  { %v2988_v16 = vpop.f32.mrb[31].mxu1 }
 0x85a   :  { %v1040_v17 = vpop.f32.mrb[32].mxu1 }
 0x85b   :  { %v1091_v18 = vmul.f32 0.35355338, %v1040_v17  ;;  %v2999_v19 = vpop.f32.mrb[33].mxu1 }
 0x85c   :  { %v1043_v20 = vpop.f32.mrb[34].mxu1 }
 0x85d   :  { %v3000_v21 = vpop.f32.mrb[35].mxu1  ;;  %v1093_v23 = vadd.f32 %v1091_v18, %v3476_v43  ;;  %v1326_v20 = vld [vmem:[%s4054_s3] sm:$0xff] }
 0x85e   :  { %v1327_v21 = vld [vmem:[%s4054_s3 + $0x8] sm:$0xff] }
 0x85f   :  { %v1095_v24 = vsel %vm210_vm2, %v1093_v23, -inf }
 0x860   :  { %1096 = vmax.xlane.f32.xlu0 %v1095_v24  ;;  %v1390_v24 = vpack.c.bf16 %v1327_v21, %v1326_v20 }
 0x8eb   :  { %v896_v26 = vpop.f32.mrb[28].mxu0 }
 0x8ec   :  { %v950_v28 = vpack.c.bf16 %v944_v13, %v896_v26  ;;  %v2981_v29 = vpop.f32.mrb[29].mxu0  ;;  %v97_v13 = vld [vmem:[%s4051_s11 + $0x18] sm:$0xff] }
 0x8ed   :  { %v1097_v30 = vpop.xlane.xlu0 %1096  ;;  %v899_v31 = vpop.f32.mrb[30].mxu0  ;;  %v1216_v14 = vpack.c.bf16 %v97_v13, %v97_v13  ;;  %v1329_v29 = vld [vmem:[%s4054_s3 + $0x18] sm:$0xff] }
 0x8ee   :  { %v1101_v33 = vsub.f32 %v1093_v23, %v1097_v30  ;;  %v2982_v36 = vpop.f32.mrb[31].mxu0  ;;  %2992 = vmatmul.mubr.msk.bf16.vlgmr.msra.gmra.mrb[32].mxu0 %vm210_vm2, %v950_v28  ;;  %v1328_v28 = vld [vmem:[%s4054_s3 + $0x10] sm:$0xff] }
 0x8ef   :  { %3002 = vmatpush3.bf16.xpose.msra.mxu0 %v1049_v32  ;;  %3003 = vmatprep.mubr.msk.bf16.mxu0 %vm3266_vm0, %v3265_v0  ;;  %v1221_v15 = vsel %vm330_vm3, %v1216_v14, 0  ;;  %v1391_v32 = vpack.c.bf16 %v1329_v29, %v1328_v28  ;;  %v83_v36 = vld [vmem:[%s4014_s2 + $0x8] sm:$0xff] }
 0x8f0   :  { %v1103_v37 = vmul.f32 1.442695, %v1101_v33  ;;  %3013 = vmatprep.subr.bf16.mxu0 %v3265_v0  ;;  %v82_v33 = vld [vmem:[%s4014_s2] sm:$0xff] }
 0x8f2   :  { %3215 = vpow2.f32 %v1103_v37  ;;  %v2756_v37 = vld [vmem:[%s4015_s12] ss:$0 sm:$0xff] }
 0x8f6   :  { %3004 = vmatmul.mubr.msk.bf16.vlgmr.msra.gmra.mrb[36].mxu0 %vm210_vm2, %v1047_v25 }
 0x8f7   :  { %3015 = vmatprep.mubr.msk.bf16.mxu0 %vm3266_vm0, %v3265_v0 }
 0x8fc   :  { %v3216_v38 = vpop.eup %3215 }
 0x8fd   :  { %v1107_v39 = vsel %vm210_vm2, %v3216_v38, 0.0 }
 0x8fe   :  { %1108 = vadd.xlane.f32.xlu0 %v1107_v39 }
 0x98b   :  { %v1109_v59 = vpop.xlane.xlu0 %1108 }
 0x9c1   :  { %v992_v40 = vpop.f32.mrb[32].mxu0 }
 0x9c2   :  { %v3613_v41 = vadd.f32 %v992_v40, %v3573_v44  ;;  %v2993_v42 = vpop.f32.mrb[33].mxu0 }
 0x9c3   :  { %v995_v45 = vpop.f32.mrb[34].mxu0 }
 0x9c4   :  { %v3616_v46 = vadd.f32 %v995_v45, %v3575_v47  ;;  %v2994_v22 = vpop.f32.mrb[35].mxu0 }
 0x9c9   :  { %v1085_v48 = vpop.f32.mrb[36].mxu0 }
 0x9ca   :  { %v1092_v27 = vmul.f32 0.35355338, %v1085_v48  ;;  %v3005_v49 = vpop.f32.mrb[37].mxu0 }
 0x9cb   :  { %v1088_v50 = vpop.f32.mrb[38].mxu0 }
 0x9cc   :  { %v3006_v51 = vpop.f32.mrb[39].mxu0  ;;  %v1094_v52 = vadd.f32 %v1092_v27, %v3476_v43 }
 0x9ce   :  { %v1098_v53 = vsel %vm210_vm2, %v1094_v52, -inf }
 0x9cf   :  { %1099 = vmax.xlane.f32.xlu1 %v1098_v53 }
 0x9e0   :  { %1167 = vrot.lane.b32.xlu1 %v3468_v35, %s3270_s29 }
 0xa5c   :  { %v1100_v44 = vpop.xlane.xlu1 %1099 }
 0xa5d   :  { %v1102_v54 = vsub.f32 %v1094_v52, %v1100_v44 }
 0xa5f   :  { %v1105_v55 = vmul.f32 1.442695, %v1102_v54 }
 0xa60   :  { %v1168_v56 = vpop.permute.xlu1 %1167 }
 0xa61   :  { %3217 = vpow2.f32 %v1105_v55  ;;  %v1173_v47 = vsel %vm330_vm3, %v1168_v56, 0 }
 0xa62   :  { %3014 = vmatpush3.bf16.msra.mxu0 %v1173_v47  ;;  %3219 = vrcp.f32 %v1109_v59  ;;  %v3723_v47 = vld [vmem:[%s4016_s8] ss:$0 sm:$0xff] }
 0xa63   :  { %3025 = vmatprep.subr.bf16.mxu0 %v3265_v0 }
 0xa6b   :  { %v3218_v57 = vpop.eup %3217 }
 0xa6c   :  { %v1110_v58 = vsel %vm210_vm2, %v3218_v57, 0.0  ;;  %v3220_v35 = vpop.eup %3219 }
 0xa6d   :  { %1111 = vadd.xlane.f32.xlu0 %v1110_v58  ;;  %v1115_v61 = vmul.f32 %v3220_v35, %v3216_v38  ;;  %v1389_v38 = vpack.c.bf16 %v83_v36, %v82_v33  ;;  %v2758_v58 = vld [vmem:[%s4017_s14] ss:$0 sm:$0xff] }
 0xa6f   :  { %v1117_v1 = vpack.c.bf16 %v1115_v61, %v1115_v61 }
 0xa83   :  { %1119 = vrot.lane.b32.xlu0 %v3466_v34, %s3270_s29  ;;  %v1322_v34 = vld [vmem:[%s4052_s13 + $0x8] sm:$0xff] }
 0xa84   :  { %v1337_v5 = vpack.c.bf16 %v1322_v34, %v1321_v2 }
 0xafa   :  { %v1112_v60 = vpop.xlane.xlu0 %1111 }
 0xafb   :  { %3221 = vrcp.f32 %v1112_v60 }
 0xafe   :  { %v1120_v62 = vpop.permute.xlu0 %1119 }
 0xaff   :  { %v1125_v63 = vsel %vm330_vm3, %v1120_v62, 0 }
 0xb00   :  { %3008 = vmatpush3.bf16.msra.mxu1 %v1125_v63 }
 0xb01   :  { %3019 = vmatprep.subr.bf16.mxu1 %v3265_v0 }
 0xb03   :  { %3010 = vmatmul.mubr.msk.bf16.vlgmr.msra.gmra.mrb[36].mxu1 %vm210_vm2, %v1117_v1 }
 0xb04   :  { %3021 = vmatprep.mubr.msk.bf16.mxu1 %vm3266_vm0, %v3265_v0  ;;  %3020 = vmatpush3.bf16.msra.mxu1 %v1221_v15 }
 0xb05   :  { %v3222_v3 = vpop.eup %3221  ;;  %3033 = vmatprep.subr.bf16.mxu1 %v3265_v0 }
 0xb06   :  { %v1116_v4 = vmul.f32 %v3222_v3, %v3218_v57 }
 0xb08   :  { %v1118_v6 = vpack.c.bf16 %v1116_v4, %v1116_v4 }
 0xb0a   :  { %3016 = vmatmul.mubr.msk.bf16.vlgmr.msra.gmra.mrb[40].mxu0 %vm210_vm2, %v1118_v6 }
 0xb0b   :  { %3026 = vmatpush3.bf16.msra.mxu0 %v1337_v5  ;;  %3029 = vmatprep.mubr.msk.bf16.mxu0 %vm3266_vm0, %v3265_v0 }
 0xb0c   :  { %3027 = vmatprep.subr.bf16.mxu0 %v3265_v0 }
 0xb0f   :  { %3028 = vmatpush3.bf16.msra.mxu0 %v1338_v9 }
 0xb10   :  { %3041 = vmatprep.subr.bf16.mxu0 %v3265_v0 }
 0xb12   :  { %3030 = vmatmul.mubr.msk.bf16.vlgmr.msra.gmra.mrb[44].mxu0 %vm108_vm1, %v1336_v12 }
 0xb13   :  { %3043 = vmatprep.mubr.msk.bf16.mxu0 %vm3266_vm0, %v3265_v0 }
 0xbd6   :  { %v1161_v16 = vpop.f32.mrb[36].mxu1 }
 0xbd7   :  { %v3011_v17 = vpop.f32.mrb[37].mxu1 }
 0xbd8   :  { %v1164_v18 = vpop.f32.mrb[38].mxu1 }
 0xbd9   :  { %v3012_v19 = vpop.f32.mrb[39].mxu1 }
 0xbdd   :  { %v1209_v23 = vpop.f32.mrb[40].mxu0 }
 0xbde   :  { %v1215_v25 = vpack.c.bf16 %v1209_v23, %v1161_v16  ;;  %v3017_v26 = vpop.f32.mrb[41].mxu0 }
 0xbdf   :  { %v1212_v30 = vpop.f32.mrb[42].mxu0 }
 0xbe0   :  { %v3018_v31 = vpop.f32.mrb[43].mxu0  ;;  %3022 = vmatmul.mubr.msk.bf16.vlgmr.msra.gmra.mrb[40].mxu1 %vm210_vm2, %v1215_v25 }
 0xbe1   :  { %3034 = vmatpush3.bf16.msra.mxu1 %v1390_v24  ;;  %3037 = vmatprep.mubr.msk.bf16.mxu1 %vm3266_vm0, %v3265_v0 }
 0xbe2   :  { %3035 = vmatprep.subr.bf16.mxu1 %v3265_v0 }
 0xbe5   :  { %3036 = vmatpush3.bf16.msra.mxu1 %v1391_v32  ;;  %v1382_v39 = vpop.f32.mrb[44].mxu0 }
 0xbe6   :  { %v1383_v40 = vadd.f32 %v2756_v37, %v1382_v39  ;;  %v3031_v42 = vpop.f32.mrb[45].mxu0  ;;  %3047 = vmatprep.subr.bf16.mxu1 %v3265_v0 }
 0xbe7   :  { %v1385_v45 = vpop.f32.mrb[46].mxu0 }
 0xbe8   :  { %v3695_v22 = vpack.c.bf16 %v1383_v40, %v1383_v40  ;;  %v1386_v48 = vadd.f32 %v2756_v37, %v1385_v45  ;;  %v3032_v27 = vpop.f32.mrb[47].mxu0  ;;  %3038 = vmatmul.mubr.msk.bf16.vlgmr.msra.gmra.mrb[44].mxu1 %vm108_vm1, %v1389_v38 }
 0xbe9   :  { %3049 = vmatprep.mubr.msk.bf16.mxu1 %vm3266_vm0, %v3265_v0 }
 0xbea   :  { %v3700_v49 = vpack.c.bf16 %v1386_v48, %v1386_v48  ;;  %v1445_v50 = vsel %vm210_vm2, %v3695_v22, 0 }
 0xbeb   :  { %3042 = vmatpush3.bf16.xpose.msra.mxu0 %v1445_v50 }
 0xbec   :  { %v1488_v51 = vsel %vm210_vm2, %v3700_v49, 0  ;;  %3053 = vmatprep.subr.bf16.mxu0 %v3265_v0 }
 0xbee   :  { %3048 = vmatpush3.bf16.xpose.msra.mxu1 %v1488_v51 }
 0xbef   :  { %3059 = vmatprep.subr.bf16.mxu1 %v3265_v0 }
 0xbf2   :  { %3044 = vmatmul.mubr.msk.bf16.vlgmr.msra.gmra.mrb[48].mxu0 %vm210_vm2, %v3695_v22 }
 0xbf3   :  { %3055 = vmatprep.mubr.msk.bf16.mxu0 %vm3266_vm0, %v3265_v0 }
 0xbf5   :  { %3050 = vmatmul.mubr.msk.bf16.vlgmr.msra.gmra.mrb[48].mxu1 %vm210_vm2, %v3700_v49 }
 0xbf6   :  { %3061 = vmatprep.mubr.msk.bf16.mxu1 %vm3266_vm0, %v3265_v0 }
 0xcb3   :  { %v1257_v52 = vpop.f32.mrb[40].mxu1 }
 0xcb4   :  { %v3717_v53 = vadd.f32 %v1257_v52, %v3613_v41  ;;  %v3023_v44 = vpop.f32.mrb[41].mxu1 }
 0xcb5   :  { %v1260_v54 = vpop.f32.mrb[42].mxu1 }
 0xcb6   :  { %v1265_v55 = vadd.f32 %v1260_v54, %v3616_v46  ;;  %v3024_v56 = vpop.f32.mrb[43].mxu1 }
 0xcb8   :  { %v3726_v57 = vadd.f32 %v3723_v47, %v1265_v55 }
 0xcbb   :  { %v1435_v59 = vpop.f32.mrb[44].mxu1 }
 0xcbc   :  { %v1436_v41 = vadd.f32 %v2758_v58, %v1435_v59  ;;  %v3039_v35 = vpop.f32.mrb[45].mxu1 }
 0xcbd   :  { %v1438_v60 = vpop.f32.mrb[46].mxu1 }
 0xcbe   :  { %v3731_v61 = vpack.c.bf16 %v1436_v41, %v1436_v41  ;;  %v1439_v46 = vadd.f32 %v2758_v58, %v1438_v60  ;;  %v3040_v62 = vpop.f32.mrb[47].mxu1 }
 0xcc0   :  { %v3733_v63 = vpack.c.bf16 %v1439_v46, %v1439_v46  ;;  %v1564_v1 = vsel %vm330_vm3, %v3731_v61, 0 }
 0xcc1   :  { %3054 = vmatpush3.bf16.msra.mxu0 %v1564_v1 }
 0xcc2   :  { %v1610_v2 = vsel %vm330_vm3, %v3733_v63, 0  ;;  %3065 = vmatprep.subr.bf16.mxu0 %v3265_v0 }
 0xcc3   :  { %3060 = vmatpush3.bf16.msra.mxu1 %v1610_v2 }
 0xcc4   :  { %3071 = vmatprep.subr.bf16.mxu1 %v3265_v0 }
 0xcc5   :  { %v1481_v34 = vpop.f32.mrb[48].mxu0 }
 0xcc6   :  { %v1530_v3 = vmul.f32 0.35355338, %v1481_v34  ;;  %v3045_v4 = vpop.f32.mrb[49].mxu0 }
 0xcc7   :  { %v1484_v5 = vpop.f32.mrb[50].mxu0 }
 0xcc8   :  { %v1524_v6 = vpop.f32.mrb[48].mxu1  ;;  %v3046_v7 = vpop.f32.mrb[51].mxu0  ;;  %v1532_v8 = vadd.f32 %v1530_v3, %v3476_v43 }
 0xcc9   :  { %v1531_v9 = vmul.f32 0.35355338, %v1524_v6  ;;  %v3051_v12 = vpop.f32.mrb[49].mxu1 }
 0xcca   :  { %v1527_v13 = vpop.f32.mrb[50].mxu1  ;;  %v1534_v14 = vsel %vm210_vm2, %v1532_v8, -inf }
 0xccb   :  { %v3052_v15 = vpop.f32.mrb[51].mxu1  ;;  %1535 = vmax.xlane.f32.xlu1 %v1534_v14  ;;  %v1533_v16 = vadd.f32 %v1531_v9, %v3476_v43 }
 0xccd   :  { %v1537_v17 = vsel %vm210_vm2, %v1533_v16, -inf }
 0xcce   :  { %1538 = vmax.xlane.f32.xlu0 %v1537_v17 }
 0xd58   :  { %v1536_v18 = vpop.xlane.xlu1 %1535 }
 0xd59   :  { %v1540_v19 = vsub.f32 %v1532_v8, %v1536_v18 }
 0xd5b   :  { %v1542_v20 = vmul.f32 1.442695, %v1540_v19  ;;  %v1539_v21 = vpop.xlane.xlu0 %1538 }
 0xd5c   :  { %v1541_v23 = vsub.f32 %v1533_v16, %v1539_v21 }
 0xd5d   :  { %3223 = vpow2.f32 %v1542_v20 }
 0xd5e   :  { %v1544_v24 = vmul.f32 1.442695, %v1541_v23 }
 0xd60   :  { %3225 = vpow2.f32 %v1544_v24 }
 0xd67   :  { %v3224_v25 = vpop.eup %3223 }
 0xd68   :  { %v1546_v26 = vsel %vm210_vm2, %v3224_v25, 0.0 }
 0xd69   :  { %1547 = vadd.xlane.f32.xlu0 %v1546_v26  ;;  %v1332_v26 = vld [vmem:[%s4018_s15 + $0x8] sm:$0xff] }
 0xd6a   :  { %v3226_v28 = vpop.eup %3225 }
 0xd6b   :  { %v1549_v29 = vsel %vm210_vm2, %v3226_v28, 0.0 }
 0xd6c   :  { %1550 = vadd.xlane.f32.xlu1 %v1549_v29  ;;  %v1331_v29 = vld [vmem:[%s4018_s15] sm:$0xff] }
 0xd7d   :  { %1701 = vrot.lane.b32.xlu1 %v3700_v49, %s3268_s5 }
 0xd7f   :  { %1655 = vrot.lane.b32.xlu0 %v3695_v22, %s3268_s5 }
 0xdf6   :  { %v1548_v30 = vpop.xlane.xlu0 %1547 }
 0xdf7   :  { %3227 = vrcp.f32 %v1548_v30  ;;  %v1873_v30 = vpack.c.bf16 %v1332_v26, %v1332_v26 }
 0xdf9   :  { %v1551_v31 = vpop.xlane.xlu1 %1550 }
 0xdfa   :  { %3229 = vrcp.f32 %v1551_v31  ;;  %v1656_v36 = vpop.permute.xlu0 %1655 }
 0xdfb   :  { %v1658_v40 = vsel %vm210_vm2, %v1656_v36, 0 }
 0xdfd   :  { %v1702_v42 = vpop.permute.xlu1 %1701 }
 0xdfe   :  { %v1704_v48 = vsel %vm210_vm2, %v1702_v42, 0 }
 0xe01   :  { %v3228_v32 = vpop.eup %3227 }
 0xe02   :  { %v1554_v33 = vmul.f32 %v3228_v32, %v3224_v25 }
 0xe04   :  { %v3230_v37 = vpop.eup %3229  ;;  %v1556_v38 = vpack.c.bf16 %v1554_v33, %v1554_v33  ;;  %v1653_v33 = vpack.c.bf16 %v1331_v29, %v1331_v29 }
 0xe05   :  { %v1555_v39 = vmul.f32 %v3230_v37, %v3226_v28 }
 0xe06   :  { %3056 = vmatmul.mubr.msk.bf16.vlgmr.msra.gmra.mrb[52].mxu0 %vm210_vm2, %v1556_v38  ;;  %v1878_v38 = vsel %vm330_vm3, %v1873_v30, 0 }
 0xe07   :  { %3066 = vmatpush3.bf16.xpose.msra.mxu0 %v1658_v40  ;;  %v1557_v45 = vpack.c.bf16 %v1555_v39, %v1555_v39  ;;  %3067 = vmatprep.mubr.msk.bf16.mxu0 %vm3266_vm0, %v3265_v0 }
 0xe08   :  { %3077 = vmatprep.subr.bf16.mxu0 %v3265_v0 }
 0xe09   :  { %3062 = vmatmul.mubr.msk.bf16.vlgmr.msra.gmra.mrb[52].mxu1 %vm210_vm2, %v1557_v45 }
 0xe0a   :  { %3072 = vmatpush3.bf16.xpose.msra.mxu1 %v1704_v48  ;;  %3073 = vmatprep.mubr.msk.bf16.mxu1 %vm3266_vm0, %v3265_v0 }
 0xe0b   :  { %3083 = vmatprep.subr.bf16.mxu1 %v3265_v0 }
 0xe0e   :  { %3068 = vmatmul.mubr.msk.bf16.vlgmr.msra.gmra.mrb[56].mxu0 %vm210_vm2, %v1656_v36 }
 0xe0f   :  { %3079 = vmatprep.mubr.msk.bf16.mxu0 %vm3266_vm0, %v3265_v0 }
 0xe11   :  { %3074 = vmatmul.mubr.msk.bf16.vlgmr.msra.gmra.mrb[56].mxu1 %vm210_vm2, %v1702_v42  ;;  %v1925_v42 = vsel %vm330_vm3, %v1653_v33, 0 }
 0xe12   :  { %3085 = vmatprep.mubr.msk.bf16.mxu1 %vm3266_vm0, %v3265_v0 }
 0xed9   :  { %v3767_v27 = vpop.f32.mrb[52].mxu0 }
 0xeda   :  { %v3057_v50 = vpop.f32.mrb[53].mxu0 }
 0xedb   :  { %v1603_v51 = vpop.f32.mrb[54].mxu0 }
 0xedc   :  { %v3769_v52 = vpop.f32.mrb[52].mxu1  ;;  %v3058_v44 = vpop.f32.mrb[55].mxu0 }
 0xedd   :  { %v1652_v54 = vpack.c.bf16 %v3769_v52, %v3767_v27  ;;  %v3063_v55 = vpop.f32.mrb[53].mxu1 }
 0xede   :  { %v1649_v56 = vpop.f32.mrb[54].mxu1 }
 0xedf   :  { %v3064_v58 = vpop.f32.mrb[55].mxu1 }
 0xee1   :  { %v1694_v59 = vpop.f32.mrb[56].mxu0 }
 0xee2   :  { %v1746_v41 = vmul.f32 0.35355338, %v1694_v59  ;;  %v3069_v35 = vpop.f32.mrb[57].mxu0 }
 0xee3   :  { %v1697_v60 = vpop.f32.mrb[58].mxu0 }
 0xee4   :  { %v1740_v46 = vpop.f32.mrb[56].mxu1  ;;  %v3070_v62 = vpop.f32.mrb[59].mxu0  ;;  %v1748_v1 = vadd.f32 %v1746_v41, %v3476_v43 }
 0xee5   :  { %v1747_v2 = vmul.f32 0.35355338, %v1740_v46  ;;  %v3075_v34 = vpop.f32.mrb[57].mxu1 }
 0xee6   :  { %v1743_v3 = vpop.f32.mrb[58].mxu1  ;;  %v1750_v4 = vsel %vm210_vm2, %v1748_v1, -inf }
 0xee7   :  { %v3076_v5 = vpop.f32.mrb[59].mxu1  ;;  %1751 = vmax.xlane.f32.xlu1 %v1750_v4  ;;  %v1749_v6 = vadd.f32 %v1747_v2, %v3476_v43 }
 0xee9   :  { %v1753_v7 = vsel %vm210_vm2, %v1749_v6, -inf }
 0xeea   :  { %1754 = vmax.xlane.f32.xlu0 %v1753_v7 }
 0xf74   :  { %v1752_v8 = vpop.xlane.xlu1 %1751 }
 0xf75   :  { %v1756_v9 = vsub.f32 %v1748_v1, %v1752_v8 }
 0xf77   :  { %v1758_v12 = vmul.f32 1.442695, %v1756_v9  ;;  %v1755_v13 = vpop.xlane.xlu0 %1754 }
 0xf78   :  { %v1757_v14 = vsub.f32 %v1749_v6, %v1755_v13 }
 0xf79   :  { %3231 = vpow2.f32 %v1758_v12 }
 0xf7a   :  { %v1760_v15 = vmul.f32 1.442695, %v1757_v14 }
 0xf7c   :  { %3233 = vpow2.f32 %v1760_v15 }
 0xf83   :  { %v3232_v16 = vpop.eup %3231 }
 0xf84   :  { %v1762_v17 = vsel %vm210_vm2, %v3232_v16, 0.0 }
 0xf85   :  { %1763 = vadd.xlane.f32.xlu0 %v1762_v17 }
 0xf86   :  { %v3234_v18 = vpop.eup %3233 }
 0xf87   :  { %v1765_v19 = vsel %vm210_vm2, %v3234_v18, 0.0 }
 0xf88   :  { %1766 = vadd.xlane.f32.xlu1 %v1765_v19 }
 0xf99   :  { %1824 = vrot.lane.b32.xlu1 %v3733_v63, %s3268_s5 }
 0xf9b   :  { %1775 = vrot.lane.b32.xlu0 %v3731_v61, %s3268_s5 }
 0xf9d   :  { %1968 = vrot.lane.b32.xlu1 %v3695_v22, %s3269_s7 }
 0xfa1   :  { %2013 = vrot.lane.b32.xlu1 %v3700_v49, %s3269_s7 }
0x1012   :  { %v1764_v20 = vpop.xlane.xlu0 %1763 }
0x1013   :  { %3235 = vrcp.f32 %v1764_v20 }
0x1015   :  { %v1767_v21 = vpop.xlane.xlu1 %1766 }
0x1016   :  { %3237 = vrcp.f32 %v1767_v21  ;;  %v1776_v23 = vpop.permute.xlu0 %1775 }
0x1017   :  { %v1781_v24 = vsel %vm330_vm3, %v1776_v23, 0 }
0x1018   :  { %3078 = vmatpush3.bf16.msra.mxu0 %v1781_v24 }
0x1019   :  { %v1825_v25 = vpop.permute.xlu1 %1824  ;;  %3089 = vmatprep.subr.bf16.mxu0 %v3265_v0 }
0x101a   :  { %v1830_v28 = vsel %vm330_vm3, %v1825_v25, 0 }
0x101b   :  { %3084 = vmatpush3.bf16.msra.mxu1 %v1830_v28 }
0x101c   :  { %3095 = vmatprep.subr.bf16.mxu1 %v3265_v0 }
0x101d   :  { %v3236_v31 = vpop.eup %3235  ;;  %v1969_v45 = vpop.permute.xlu1 %1968 }
0x101e   :  { %v1770_v32 = vmul.f32 %v3236_v31, %v3232_v16  ;;  %v1971_v59 = vsel %vm210_vm2, %v1969_v45, 0 }
0x1020   :  { %v3238_v36 = vpop.eup %3237  ;;  %v1772_v37 = vpack.c.bf16 %v1770_v32, %v1770_v32 }
0x1021   :  { %v1771_v39 = vmul.f32 %v3238_v36, %v3234_v18  ;;  %v2014_v48 = vpop.permute.xlu1 %2013 }
0x1022   :  { %3080 = vmatmul.mubr.msk.bf16.vlgmr.msra.gmra.mrb[60].mxu0 %vm210_vm2, %v1772_v37  ;;  %v2016_v50 = vsel %vm210_vm2, %v2014_v48, 0 }
0x1023   :  { %v1773_v40 = vpack.c.bf16 %v1771_v39, %v1771_v39  ;;  %3090 = vmatpush3.bf16.msra.mxu0 %v1878_v38  ;;  %3091 = vmatprep.mubr.msk.bf16.mxu0 %vm3266_vm0, %v3265_v0 }
0x1024   :  { %3101 = vmatprep.subr.bf16.mxu0 %v3265_v0 }
0x1025   :  { %3086 = vmatmul.mubr.msk.bf16.vlgmr.msra.gmra.mrb[60].mxu1 %vm210_vm2, %v1773_v40 }
0x1026   :  { %3096 = vmatpush3.bf16.msra.mxu1 %v1925_v42  ;;  %3097 = vmatprep.mubr.msk.bf16.mxu1 %vm3266_vm0, %v3265_v0 }
0x1027   :  { %3107 = vmatprep.subr.bf16.mxu1 %v3265_v0 }
0x102d   :  { %3098 = vmatmul.mubr.msk.bf16.vlgmr.msra.gmra.mrb[64].mxu1 %vm210_vm2, %v1652_v54 }
0x102e   :  { %3109 = vmatprep.mubr.msk.bf16.mxu1 %vm3266_vm0, %v3265_v0 }
0x102f   :  { %3108 = vmatpush3.bf16.xpose.msra.mxu1 %v2016_v50 }
0x1030   :  { %3119 = vmatprep.subr.bf16.mxu1 %v3265_v0 }
0x1036   :  { %3110 = vmatmul.mubr.msk.bf16.vlgmr.msra.gmra.mrb[68].mxu1 %vm210_vm2, %v2014_v48 }
0x1037   :  { %3121 = vmatprep.mubr.msk.bf16.mxu1 %vm3266_vm0, %v3265_v0 }
0x10f5   :  { %v1817_v51 = vpop.f32.mrb[60].mxu0 }
0x10f6   :  { %v3081_v44 = vpop.f32.mrb[61].mxu0 }
0x10f7   :  { %v1820_v55 = vpop.f32.mrb[62].mxu0 }
0x10f8   :  { %v1866_v56 = vpop.f32.mrb[60].mxu1  ;;  %v3082_v27 = vpop.f32.mrb[63].mxu0 }
0x10f9   :  { %v1872_v52 = vpack.c.bf16 %v1866_v56, %v1817_v51  ;;  %v3087_v54 = vpop.f32.mrb[61].mxu1  ;;  %v1333_v51 = vld [vmem:[%s4018_s15 + $0x10] sm:$0xff] }
0x10fa   :  { %v1869_v58 = vpop.f32.mrb[62].mxu1  ;;  %v2183_v44 = vpack.c.bf16 %v1333_v51, %v1333_v51 }
0x10fb   :  { %v3088_v41 = vpop.f32.mrb[63].mxu1  ;;  %3092 = vmatmul.mubr.msk.bf16.vlgmr.msra.gmra.mrb[64].mxu0 %vm210_vm2, %v1872_v52 }
0x10fc   :  { %3102 = vmatpush3.bf16.xpose.msra.mxu0 %v1971_v59  ;;  %3103 = vmatprep.mubr.msk.bf16.mxu0 %vm3266_vm0, %v3265_v0  ;;  %v2188_v52 = vsel %vm330_vm3, %v2183_v44, 0 }
0x10fd   :  { %3113 = vmatprep.subr.bf16.mxu0 %v3265_v0 }
0x1100   :  { %v1961_v35 = vpop.f32.mrb[64].mxu1 }
0x1101   :  { %v3099_v60 = vpop.f32.mrb[65].mxu1 }
0x1102   :  { %v1964_v46 = vpop.f32.mrb[66].mxu1 }
0x1103   :  { %v3100_v62 = vpop.f32.mrb[67].mxu1  ;;  %3104 = vmatmul.mubr.msk.bf16.vlgmr.msra.gmra.mrb[68].mxu0 %vm210_vm2, %v1969_v45 }
0x1104   :  { %3115 = vmatprep.mubr.msk.bf16.mxu0 %vm3266_vm0, %v3265_v0 }
0x1109   :  { %v2052_v1 = vpop.f32.mrb[68].mxu1 }
0x110a   :  { %v2059_v2 = vmul.f32 0.35355338, %v2052_v1  ;;  %v3111_v34 = vpop.f32.mrb[69].mxu1 }
0x110b   :  { %v2055_v3 = vpop.f32.mrb[70].mxu1 }
0x110c   :  { %v3112_v4 = vpop.f32.mrb[71].mxu1  ;;  %v2061_v5 = vadd.f32 %v2059_v2, %v3476_v43 }
0x110e   :  { %v2065_v6 = vsel %vm210_vm2, %v2061_v5, -inf }
0x110f   :  { %2066 = vmax.xlane.f32.xlu1 %v2065_v6 }
0x1120   :  { %2134 = vrot.lane.b32.xlu1 %v3733_v63, %s3269_s7 }
0x1124   :  { %2233 = vrot.lane.b32.xlu1 %v3695_v22, %s3270_s29 }
0x1128   :  { %2278 = vrot.lane.b32.xlu1 %v3700_v49, %s3270_s29 }
0x119c   :  { %v2067_v7 = vpop.xlane.xlu1 %2066 }
0x119d   :  { %v2069_v12 = vsub.f32 %v2061_v5, %v2067_v7 }
0x119f   :  { %v2072_v13 = vmul.f32 1.442695, %v2069_v12 }
0x11a0   :  { %v2135_v8 = vpop.permute.xlu1 %2134 }
0x11a1   :  { %v2140_v9 = vsel %vm330_vm3, %v2135_v8, 0  ;;  %3239 = vpow2.f32 %v2072_v13 }
0x11a2   :  { %3120 = vmatpush3.bf16.msra.mxu1 %v2140_v9 }
0x11a3   :  { %3131 = vmatprep.subr.bf16.mxu1 %v3265_v0 }
0x11a4   :  { %v2234_v39 = vpop.permute.xlu1 %2233 }
0x11a5   :  { %v2236_v42 = vsel %vm210_vm2, %v2234_v39, 0 }
0x11a8   :  { %v2279_v3 = vpop.permute.xlu1 %2278 }
0x11a9   :  { %v2281_v9 = vsel %vm210_vm2, %v2279_v3, 0 }
0x11ab   :  { %v3240_v26 = vpop.eup %3239 }
0x11ac   :  { %v2077_v28 = vsel %vm210_vm2, %v3240_v26, 0.0 }
0x11ce   :  { %v1914_v14 = vpop.f32.mrb[64].mxu0 }
0x11cf   :  { %v3836_v15 = vadd.f32 %v1961_v35, %v1914_v14  ;;  %v3093_v16 = vpop.f32.mrb[65].mxu0 }
0x11d0   :  { %v1917_v17 = vpop.f32.mrb[66].mxu0 }
0x11d1   :  { %v3838_v18 = vadd.f32 %v1964_v46, %v1917_v17  ;;  %v3094_v22 = vpop.f32.mrb[67].mxu0 }
0x11d6   :  { %v2007_v19 = vpop.f32.mrb[68].mxu0 }
0x11d7   :  { %v2058_v49 = vmul.f32 0.35355338, %v2007_v19  ;;  %v3105_v20 = vpop.f32.mrb[69].mxu0 }
0x11d8   :  { %v2010_v21 = vpop.f32.mrb[70].mxu0 }
0x11d9   :  { %v3106_v23 = vpop.f32.mrb[71].mxu0  ;;  %v2060_v24 = vadd.f32 %v2058_v49, %v3476_v43 }
0x11db   :  { %v2062_v25 = vsel %vm210_vm2, %v2060_v24, -inf }
0x11dc   :  { %2063 = vmax.xlane.f32.xlu0 %v2062_v25 }
0x11e0   :  { %2078 = vadd.xlane.f32.xlu0 %v2077_v28 }
0x1269   :  { %v2064_v29 = vpop.xlane.xlu0 %2063 }
0x126a   :  { %v2068_v30 = vsub.f32 %v2060_v24, %v2064_v29 }
0x126c   :  { %v2070_v31 = vmul.f32 1.442695, %v2068_v30 }
0x126d   :  { %v2079_v32 = vpop.xlane.xlu0 %2078 }
0x126e   :  { %3241 = vpow2.f32 %v2070_v31 }
0x126f   :  { %3243 = vrcp.f32 %v2079_v32 }
0x1278   :  { %v3242_v33 = vpop.eup %3241 }
0x1279   :  { %v3244_v36 = vpop.eup %3243  ;;  %v2074_v37 = vsel %vm210_vm2, %v3242_v33, 0.0 }
0x127a   :  { %v2083_v38 = vmul.f32 %v3244_v36, %v3240_v26  ;;  %2075 = vadd.xlane.f32.xlu0 %v2074_v37 }
0x127c   :  { %v2085_v40 = vpack.c.bf16 %v2083_v38, %v2083_v38 }
0x127e   :  { %3122 = vmatmul.mubr.msk.bf16.vlgmr.msra.gmra.mrb[72].mxu1 %vm210_vm2, %v2085_v40 }
0x127f   :  { %3132 = vmatpush3.bf16.xpose.msra.mxu1 %v2236_v42  ;;  %3133 = vmatprep.mubr.msk.bf16.mxu1 %vm3266_vm0, %v3265_v0 }
0x1280   :  { %3143 = vmatprep.subr.bf16.mxu1 %v3265_v0 }
0x1286   :  { %3134 = vmatmul.mubr.msk.bf16.vlgmr.msra.gmra.mrb[76].mxu1 %vm210_vm2, %v2234_v39  ;;  %v3264_v39 = vld [vmem:[%s4048_s28 + $0x8] sm:$0xff] }
0x1287   :  { %3145 = vmatprep.mubr.msk.bf16.mxu1 %vm3266_vm0, %v3265_v0  ;;  %v1275_v40 = vadd.f32 %v3264_v39, %v3726_v57 }
0x1289   :  { %v1281_v42 = vsel %vm108_vm1, %v1275_v40, 0.0 }
0x1290   :  { %2086 = vrot.lane.b32.xlu0 %v3731_v61, %s3269_s7 }
0x1307   :  { %v2076_v45 = vpop.xlane.xlu0 %2075 }
0x1308   :  { %3245 = vrcp.f32 %v2076_v45 }
0x130b   :  { %v2087_v48 = vpop.permute.xlu0 %2086 }
0x130c   :  { %v2092_v50 = vsel %vm330_vm3, %v2087_v48, 0 }
0x130d   :  { %3114 = vmatpush3.bf16.msra.mxu0 %v2092_v50 }
0x130e   :  { %3125 = vmatprep.subr.bf16.mxu0 %v3265_v0 }
0x1312   :  { %v3246_v55 = vpop.eup %3245 }
0x1313   :  { %v2082_v56 = vmul.f32 %v3246_v55, %v3242_v33 }
0x1315   :  { %v2084_v27 = vpack.c.bf16 %v2082_v56, %v2082_v56 }
0x1317   :  { %3116 = vmatmul.mubr.msk.bf16.vlgmr.msra.gmra.mrb[72].mxu0 %vm210_vm2, %v2084_v27 }
0x1318   :  { %3126 = vmatpush3.bf16.msra.mxu0 %v2188_v52  ;;  %3127 = vmatprep.mubr.msk.bf16.mxu0 %vm3266_vm0, %v3265_v0  ;;  %v1334_v52 = vld [vmem:[%s4018_s15 + $0x18] sm:$0xff] }
0x1319   :  { %3137 = vmatprep.subr.bf16.mxu0 %v3265_v0 }
0x1351   :  { %v2176_v54 = vpop.f32.mrb[72].mxu1 }
0x1352   :  { %v3123_v58 = vpop.f32.mrb[73].mxu1 }
0x1353   :  { %v2179_v59 = vpop.f32.mrb[74].mxu1 }
0x1354   :  { %v3124_v41 = vpop.f32.mrb[75].mxu1 }
0x1359   :  { %v2272_v35 = vpop.f32.mrb[76].mxu1 }
0x135a   :  { %v2323_v60 = vmul.f32 0.35355338, %v2272_v35  ;;  %v3135_v46 = vpop.f32.mrb[77].mxu1 }
0x135b   :  { %v2275_v62 = vpop.f32.mrb[78].mxu1 }
0x135c   :  { %v3136_v1 = vpop.f32.mrb[79].mxu1  ;;  %v2325_v2 = vadd.f32 %v2323_v60, %v3476_v43 }
0x135e   :  { %v2327_v34 = vsel %vm210_vm2, %v2325_v2, -inf }
0x135f   :  { %2328 = vmax.xlane.f32.xlu0 %v2327_v34 }
0x13ea   :  { %v2128_v4 = vpop.f32.mrb[72].mxu0 }
0x13eb   :  { %v2182_v5 = vpack.c.bf16 %v2176_v54, %v2128_v4  ;;  %v3117_v6 = vpop.f32.mrb[73].mxu0  ;;  %v2448_v54 = vpack.c.bf16 %v1334_v52, %v1334_v52  ;;  %v2755_v52 = vld [vmem:[%s4022_s10] ss:$0 sm:$0xff] }
0x13ec   :  { %v2329_v7 = vpop.xlane.xlu0 %2328  ;;  %v2131_v8 = vpop.f32.mrb[74].mxu0  ;;  %v2780_v6 = vld [vmem:[%s4019_s16] ss:$0 sm:$0xff] }
0x13ed   :  { %v2333_v12 = vsub.f32 %v2325_v2, %v2329_v7  ;;  %v3118_v13 = vpop.f32.mrb[75].mxu0  ;;  %3128 = vmatmul.mubr.msk.bf16.vlgmr.msra.gmra.mrb[76].mxu0 %vm210_vm2, %v2182_v5  ;;  %v2453_v58 = vsel %vm330_vm3, %v2448_v54, 0 }
0x13ee   :  { %3138 = vmatpush3.bf16.xpose.msra.mxu0 %v2281_v9  ;;  %3139 = vmatprep.mubr.msk.bf16.mxu0 %vm3266_vm0, %v3265_v0 }
0x13ef   :  { %v2335_v14 = vmul.f32 1.442695, %v2333_v12  ;;  %3149 = vmatprep.subr.bf16.mxu0 %v3265_v0 }
0x13f1   :  { %3247 = vpow2.f32 %v2335_v14 }
0x13f5   :  { %3140 = vmatmul.mubr.msk.bf16.vlgmr.msra.gmra.mrb[80].mxu0 %vm210_vm2, %v2279_v3 }
0x13f6   :  { %3151 = vmatprep.mubr.msk.bf16.mxu0 %vm3266_vm0, %v3265_v0 }
0x13fb   :  { %v3248_v16 = vpop.eup %3247 }
0x13fc   :  { %v2339_v17 = vsel %vm210_vm2, %v3248_v16, 0.0 }
0x13fd   :  { %2340 = vadd.xlane.f32.xlu0 %v2339_v17 }
0x148a   :  { %v2341_v45 = vpop.xlane.xlu0 %2340 }
0x14c0   :  { %v2224_v22 = vpop.f32.mrb[76].mxu0 }
0x14c1   :  { %v3876_v19 = vadd.f32 %v2224_v22, %v3836_v15  ;;  %v3129_v49 = vpop.f32.mrb[77].mxu0  ;;  %v1272_v15 = vadd.f32 %v3723_v47, %v3717_v53 }
0x14c2   :  { %v2227_v20 = vpop.f32.mrb[78].mxu0 }
0x14c3   :  { %v3879_v21 = vadd.f32 %v2227_v20, %v3838_v18  ;;  %v3130_v23 = vpop.f32.mrb[79].mxu0  ;;  %v3263_v18 = vld [vmem:[%s4048_s28] sm:$0xff] }
0x14c4   :  { %v3890_v32 = vadd.f32 %v3263_v18, %v1272_v15  ;;  %v2555_v15 = vld [vmem:[%s4020_s19 + $0x18] sm:$0xff] }
0x14c6   :  { %v1278_v33 = vsel %vm108_vm1, %v3890_v32, 0.0 }
0x14c8   :  { %v2317_v24 = vpop.f32.mrb[80].mxu0 }
0x14c9   :  { %v2324_v25 = vmul.f32 0.35355338, %v2317_v24  ;;  %v3141_v26 = vpop.f32.mrb[81].mxu0 }
0x14ca   :  { %v2320_v28 = vpop.f32.mrb[82].mxu0 }
0x14cb   :  { %v3142_v29 = vpop.f32.mrb[83].mxu0  ;;  %v2326_v30 = vadd.f32 %v2324_v25, %v3476_v43 }
0x14cd   :  { %v2330_v31 = vsel %vm210_vm2, %v2326_v30, -inf }
0x14ce   :  { %2331 = vmax.xlane.f32.xlu1 %v2330_v31  ;;  %v2554_v31 = vld [vmem:[%s4020_s19 + $0x10] sm:$0xff] }
0x14cf   :  { %v2558_v18 = vpack.c.bf16 %v2555_v15, %v2554_v31  ;;  %v2785_v15 = vld [vmem:[%s4027_s21] ss:$0 sm:$0xff] }
0x14df   :  { %2399 = vrot.lane.b32.xlu1 %v3733_v63, %s3270_s29 }
0x1503   :  { %1279 = vadd.xlane.f32.xlu1 %v1278_v33 }
0x155b   :  { %v2332_v43 = vpop.xlane.xlu1 %2331 }
0x155c   :  { %v2334_v36 = vsub.f32 %v2326_v30, %v2332_v43 }
0x155e   :  { %v2337_v37 = vmul.f32 1.442695, %v2334_v36 }
0x155f   :  { %v2400_v38 = vpop.permute.xlu1 %2399 }
0x1560   :  { %3249 = vpow2.f32 %v2337_v37  ;;  %v2405_v63 = vsel %vm330_vm3, %v2400_v38, 0 }
0x1561   :  { %3150 = vmatpush3.bf16.msra.mxu0 %v2405_v63  ;;  %3251 = vrcp.f32 %v2341_v45 }
0x1562   :  { %3161 = vmatprep.subr.bf16.mxu0 %v3265_v0 }
0x156a   :  { %v3250_v53 = vpop.eup %3249 }
0x156b   :  { %v2342_v47 = vsel %vm210_vm2, %v3250_v53, 0.0  ;;  %v3252_v48 = vpop.eup %3251 }
0x156c   :  { %2343 = vadd.xlane.f32.xlu0 %v2342_v47  ;;  %v2347_v51 = vmul.f32 %v3252_v48, %v3248_v16 }
0x1582   :  { %2351 = vrot.lane.b32.xlu0 %v3731_v61, %s3270_s29  ;;  %v2349_v61 = vpack.c.bf16 %v2347_v51, %v2347_v51 }
0x1590   :  { %v1280_v3 = vpop.xlane.xlu1 %1279 }
0x1591   :  { %v1285_v5 = vmul.f32 0.03125, %v1280_v3 }
0x1593   :  { %v1287_v14 = vsub.f32 %v3890_v32, %v1285_v5 }
0x1595   :  { %v1289_v26 = vmul.f32 %v1287_v14, %v1287_v14 }
0x1597   :  { %v1291_v29 = vsel %vm108_vm1, %v1289_v26, 0.0 }
0x15a1   :  { %1282 = vadd.xlane.f32.xlu0 %v1281_v42 }
0x15f9   :  { %v2344_v50 = vpop.xlane.xlu0 %2343 }
0x15fa   :  { %3253 = vrcp.f32 %v2344_v50 }
0x15fd   :  { %v2352_v44 = vpop.permute.xlu0 %2351 }
0x15fe   :  { %v2357_v55 = vsel %vm330_vm3, %v2352_v44, 0 }
0x15ff   :  { %3144 = vmatpush3.bf16.msra.mxu1 %v2357_v55  ;;  %v2754_v55 = vld [vmem:[%s4021_s9] ss:$0 sm:$0xff] }
0x1600   :  { %3155 = vmatprep.subr.bf16.mxu1 %v3265_v0 }
0x1602   :  { %3146 = vmatmul.mubr.msk.bf16.vlgmr.msra.gmra.mrb[80].mxu1 %vm210_vm2, %v2349_v61 }
0x1603   :  { %3157 = vmatprep.mubr.msk.bf16.mxu1 %vm3266_vm0, %v3265_v0  ;;  %3156 = vmatpush3.bf16.msra.mxu1 %v2453_v58 }
0x1604   :  { %v3254_v57 = vpop.eup %3253  ;;  %3169 = vmatprep.subr.bf16.mxu1 %v3265_v0 }
0x1605   :  { %v2348_v56 = vmul.f32 %v3254_v57, %v3250_v53 }
0x1607   :  { %v2350_v27 = vpack.c.bf16 %v2348_v56, %v2348_v56 }
0x1609   :  { %3152 = vmatmul.mubr.msk.bf16.vlgmr.msra.gmra.mrb[84].mxu0 %vm210_vm2, %v2350_v27 }
0x160a   :  { %3165 = vmatprep.mubr.msk.bf16.mxu0 %vm3266_vm0, %v3265_v0 }
0x162e   :  { %v1283_v4 = vpop.xlane.xlu0 %1282 }
0x162f   :  { %v1286_v8 = vmul.f32 0.03125, %v1283_v4 }
0x1631   :  { %v1288_v49 = vsub.f32 %v1275_v40, %v1286_v8 }
0x1633   :  { %v1290_v28 = vmul.f32 %v1288_v49, %v1288_v49 }
0x16d5   :  { %v2393_v59 = vpop.f32.mrb[80].mxu1 }
0x16d6   :  { %v3147_v41 = vpop.f32.mrb[81].mxu1 }
0x16d7   :  { %v2396_v35 = vpop.f32.mrb[82].mxu1 }
0x16d8   :  { %v3148_v60 = vpop.f32.mrb[83].mxu1  ;;  %v2559_v35 = vld [vmem:[%s4023_s20] sm:$0xff] }
0x16d9   :  { %v2560_v60 = vld [vmem:[%s4023_s20 + $0x8] sm:$0xff] }
0x16dc   :  { %v2441_v46 = vpop.f32.mrb[84].mxu0 }
0x16dd   :  { %v2447_v62 = vpack.c.bf16 %v2441_v46, %v2393_v59  ;;  %v3153_v1 = vpop.f32.mrb[85].mxu0  ;;  %v2564_v46 = vpack.c.bf16 %v2560_v60, %v2559_v35 }
0x16de   :  { %v2444_v2 = vpop.f32.mrb[86].mxu0  ;;  %v2562_v1 = vld [vmem:[%s4023_s20 + $0x18] sm:$0xff] }
0x16df   :  { %v3154_v34 = vpop.f32.mrb[87].mxu0  ;;  %3158 = vmatmul.mubr.msk.bf16.vlgmr.msra.gmra.mrb[84].mxu1 %vm210_vm2, %v2447_v62  ;;  %v2561_v62 = vld [vmem:[%s4023_s20 + $0x10] sm:$0xff]  ;;  %3162 = vmatpush3.bf16.msra.mxu0 %v2564_v46 }
0x16e0   :  { %3173 = vmatprep.mubr.msk.bf16.mxu1 %vm3266_vm0, %v3265_v0  ;;  %v2565_v2 = vpack.c.bf16 %v2562_v1, %v2561_v62  ;;  %3163 = vmatprep.subr.bf16.mxu0 %v3265_v0 }
0x16e3   :  { %3164 = vmatpush3.bf16.msra.mxu0 %v2565_v2 }
0x16e4   :  { %3177 = vmatprep.subr.bf16.mxu0 %v3265_v0 }
0x17b2   :  { %v2489_v7 = vpop.f32.mrb[84].mxu1 }
0x17b3   :  { %v2496_v9 = vadd.f32 %v2489_v7, %v3876_v19  ;;  %v3159_v12 = vpop.f32.mrb[85].mxu1 }
0x17b4   :  { %v2492_v13 = vpop.f32.mrb[86].mxu1 }
0x17b5   :  { %v2504_v16 = vadd.f32 %v2780_v6, %v2496_v9  ;;  %v2497_v17 = vadd.f32 %v2492_v13, %v3879_v21  ;;  %v3160_v22 = vpop.f32.mrb[87].mxu1  ;;  %v1294_v21 = vsel %vm108_vm1, %v1290_v28, 0.0  ;;  %v2781_v9 = vld [vmem:[%s4024_s17] ss:$0 sm:$0xff] }
0x17b6   :  { %v2665_v28 = vld [vmem:[%s4026_s22] sm:$0xff] }
0x17b7   :  { %v2505_v20 = vadd.f32 %v2780_v6, %v2497_v17  ;;  %v2506_v23 = vadd.f32 %v2504_v16, %v3650_v10  ;;  %v2552_v10 = vld [vmem:[%s4020_s19] sm:$0xff] }
0x17b8   :  { %v2782_v17 = vld [vmem:[%s4025_s18] ss:$0 sm:$0xff] }
0x17b9   :  { %v2510_v24 = vsel %vm108_vm1, %v2506_v23, 0.0  ;;  %v2507_v25 = vadd.f32 %v2505_v20, %v3655_v11  ;;  %v2553_v11 = vld [vmem:[%s4020_s19 + $0x8] sm:$0xff] }
0x17ba   :  { %2511 = vadd.xlane.f32.xlu0 %v2510_v24  ;;  %v2557_v30 = vpack.c.bf16 %v2553_v11, %v2552_v10  ;;  %v2667_v10 = vld [vmem:[%s4026_s22 + $0x10] sm:$0xff]  ;;  %v2668_v11 = vld [vmem:[%s4026_s22 + $0x18] sm:$0xff] }
0x17bb   :  { %v2513_v19 = vsel %vm108_vm1, %v2507_v25, 0.0 }
0x17bc   :  { %2514 = vadd.xlane.f32.xlu1 %v2513_v19  ;;  %3170 = vmatpush3.bf16.msra.mxu1 %v2557_v30  ;;  %v2671_v30 = vpack.c.bf16 %v2668_v11, %v2667_v10 }
0x17bd   :  { %3171 = vmatprep.subr.bf16.mxu1 %v3265_v0 }
0x17be   :  { %1292 = vadd.xlane.f32.xlu0 %v1291_v29  ;;  %v2666_v29 = vld [vmem:[%s4026_s22 + $0x8] sm:$0xff] }
0x17c0   :  { %1295 = vadd.xlane.f32.xlu1 %v1294_v21  ;;  %3172 = vmatpush3.bf16.msra.mxu1 %v2558_v18  ;;  %v2670_v21 = vpack.c.bf16 %v2666_v29, %v2665_v28 }
0x1847   :  { %v2512_v32 = vpop.xlane.xlu0 %2511 }
0x1848   :  { %v2516_v33 = vmul.f32 0.03125, %v2512_v32 }
0x1849   :  { %v2515_v43 = vpop.xlane.xlu1 %2514 }
0x184a   :  { %v2518_v36 = vsub.f32 %v2506_v23, %v2516_v33  ;;  %v2517_v37 = vmul.f32 0.03125, %v2515_v43 }
0x184b   :  { %v1293_v38 = vpop.xlane.xlu0 %1292 }
0x184c   :  { %v2519_v63 = vsub.f32 %v2507_v25, %v2517_v37  ;;  %v1297_v53 = vmul.f32 0.03125, %v1293_v38  ;;  %v2520_v47 = vmul.f32 %v2518_v36, %v2518_v36 }
0x184d   :  { %v1296_v39 = vpop.xlane.xlu1 %1295 }
0x184e   :  { %v1299_v40 = vadd.f32 1e-05, %v1297_v53  ;;  %v1298_v42 = vmul.f32 0.03125, %v1296_v39  ;;  %v2522_v45 = vsel %vm108_vm1, %v2520_v47, 0.0  ;;  %v2521_v48 = vmul.f32 %v2519_v63, %v2519_v63  ;;  %v2786_v47 = vld [vmem:[%s4028_s23] ss:$0 sm:$0xff] }
0x184f   :  { %2523 = vadd.xlane.f32.xlu0 %v2522_v45 }
0x1850   :  { %3255 = vrsqrt.f32 %v1299_v40  ;;  %v1300_v50 = vadd.f32 1e-05, %v1298_v42  ;;  %v2525_v51 = vsel %vm108_vm1, %v2521_v48, 0.0 }
0x1851   :  { %2526 = vadd.xlane.f32.xlu1 %v2525_v51 }
0x1852   :  { %3257 = vrsqrt.f32 %v1300_v50 }
0x185a   :  { %v3256_v44 = vpop.eup %3255 }
0x185b   :  { %v1303_v61 = vmul.f32 %v3256_v44, %v1287_v14 }
0x185c   :  { %v3258_v57 = vpop.eup %3257 }
0x185d   :  { %v1311_v56 = vmul.f32 %v2754_v55, %v1303_v61  ;;  %v1304_v27 = vmul.f32 %v3258_v57, %v1288_v49 }
0x185f   :  { %v1312_v54 = vmul.f32 %v2754_v55, %v1304_v27  ;;  %v1319_v58 = vadd.f32 %v2755_v52, %v1311_v56 }
0x1861   :  { %v1320_v59 = vadd.f32 %v2755_v52, %v1312_v54 }
0x1863   :  { %v2556_v41 = vpack.c.bf16 %v1320_v59, %v1319_v58 }
0x1865   :  { %3174 = vmatmul.mubr.msk.bf16.vlgmr.msra.gmra.mrb[88].mxu1 %vm108_vm1, %v2556_v41 }
0x18dc   :  { %v2524_v34 = vpop.xlane.xlu0 %2523 }
0x18dd   :  { %v2528_v3 = vmul.f32 0.03125, %v2524_v34 }
0x18de   :  { %v2527_v4 = vpop.xlane.xlu1 %2526 }
0x18df   :  { %v2530_v5 = vadd.f32 1e-05, %v2528_v3  ;;  %v2529_v6 = vmul.f32 0.03125, %v2527_v4 }
0x18e1   :  { %3259 = vrsqrt.f32 %v2530_v5  ;;  %v2531_v7 = vadd.f32 1e-05, %v2529_v6 }
0x18e3   :  { %3261 = vrsqrt.f32 %v2531_v7 }
0x18eb   :  { %v3260_v8 = vpop.eup %3259 }
0x18ec   :  { %v2534_v12 = vmul.f32 %v3260_v8, %v2518_v36 }
0x18ed   :  { %v3262_v13 = vpop.eup %3261 }
0x18ee   :  { %v2542_v14 = vmul.f32 %v2781_v9, %v2534_v12  ;;  %v2535_v16 = vmul.f32 %v3262_v13, %v2519_v63 }
0x18f0   :  { %v2543_v22 = vmul.f32 %v2781_v9, %v2535_v16  ;;  %v2550_v49 = vadd.f32 %v2782_v17, %v2542_v14 }
0x18f2   :  { %v2551_v20 = vadd.f32 %v2782_v17, %v2543_v22 }
0x18f4   :  { %v2563_v23 = vpack.c.bf16 %v2551_v20, %v2550_v49 }
0x18f6   :  { %3166 = vmatmul.mubr.msk.bf16.vlgmr.msra.gmra.mrb[88].mxu0 %vm108_vm1, %v2563_v23 }
0x18f7   :  { %3181 = vmatprep.mubr.msk.bf16.mxu0 %vm3266_vm0, %v3265_v0  ;;  %3178 = vmatpush3.bf16.msra.mxu0 %v2670_v21 }
0x18f8   :  { %3179 = vmatprep.subr.bf16.mxu0 %v3265_v0 }
0x18fb   :  { %3180 = vmatpush3.bf16.msra.mxu0 %v2671_v30 }
0x1938   :  { %v2647_v24 = vpop.f32.mrb[88].mxu1 }
0x1939   :  { %v3175_v25 = vpop.f32.mrb[89].mxu1 }
0x193a   :  { %v2650_v26 = vpop.f32.mrb[90].mxu1 }
0x193b   :  { %v3176_v19 = vpop.f32.mrb[91].mxu1 }
0x19c9   :  { %v2603_v31 = vpop.f32.mrb[88].mxu0 }
0x19ca   :  { %v2648_v18 = vadd.f32 %v2647_v24, %v2603_v31  ;;  %v3167_v32 = vpop.f32.mrb[89].mxu0 }
0x19cb   :  { %v2606_v33 = vpop.f32.mrb[90].mxu0 }
0x19cc   :  { %v2661_v43 = vadd.f32 %v2785_v15, %v2648_v18  ;;  %v2651_v0 = vadd.f32 %v2650_v26, %v2606_v33  ;;  %v3168_v36 = vpop.f32.mrb[91].mxu0 }
0x19ce   :  { %v2662_v37 = vadd.f32 %v2785_v15, %v2651_v0  ;;  %v2663_v38 = vmax.f32 %v2661_v43, 0.0 }
0x19d0   :  { %v2664_v63 = vmax.f32 %v2662_v37, 0.0 }
0x19d2   :  { %v2669_v53 = vpack.c.bf16 %v2664_v63, %v2663_v38 }
0x19d4   :  { %3182 = vmatmul.mubr.msk.bf16.vlgmr.msra.gmra.mrb[92].mxu0 %vm108_vm1, %v2669_v53 }
0x1aa7   :  { %v2716_v39 = vpop.f32.mrb[92].mxu0 }
0x1aa8   :  { %v2717_v40 = vadd.f32 %v2786_v47, %v2716_v39  ;;  %v3183_v42 = vpop.f32.mrb[93].mxu0 }
0x1aa9   :  { %v2719_v45 = vpop.f32.mrb[94].mxu0 }
0x1aaa   :  { %2723 = vst.msk [vmem:[%s4029_s24] sm:$0xff] %vm108_vm1, %v2717_v40  ;;  %v2720_v48 = vadd.f32 %v2786_v47, %v2719_v45  ;;  %v3184_v50 = vpop.f32.mrb[95].mxu0 }
0x1aac   :  { %2724 = vst.msk [vmem:[%s4029_s24 + $0x8] sm:$0xff] %vm108_vm1, %v2720_v48 }

</bundles_post_ra>
